<compile_context>
chip_gen: v6e
topology: v6e:2x2x1
jax: 0.10.0
libtpu: 0.0.40
codegen_flags: <defaults>
</compile_context>

<pallas_src>
import functools

import jax
import jax.numpy as jnp
import numpy as np
from jax.experimental import pallas as pl
from jax.experimental.pallas import tpu as pltpu


def _window_attention_kernel(x_ref, wqkv_ref, bqkv_ref, bias_ref, wp_ref, bp_ref,
                             o_ref, *, num_heads, sub_b, n_sub, seq, dim,
                             compute_dtype):
    """One grid step == n_sub chunks of sub_b windows, flattened to token rows.

    x_ref:    (rows, C)   activations, native dtype (cast in-kernel)
    wqkv_ref: (C, 3C)     fused QKV weight, Q columns pre-scaled by C**-0.5 (bf16)
    bqkv_ref: (1, 3C)     fused QKV bias, Q part pre-scaled (f32)
    bias_ref: (h, T, T)   block-diagonal relative-position bias, off-diag = -1e9 (f32)
    wp_ref:   (h, hd, C)  output-projection row slabs per head (bf16)
    bp_ref:   (1, C)      output-projection bias (f32)
    o_ref:    (rows, C)   output
    """
    hd = dim // num_heads
    T = sub_b * seq

    # Static unroll over independent T-row attention chunks inside this grid step
    # (n_sub is small; chunk size keeps the vreg working set bounded while the
    # x/out DMA tile is as large as the grid allows).
    for s in range(n_sub):
        rows = slice(s * T, (s + 1) * T)

        # Fused lane-dense QKV projection: one (T,C)@(C,3C) MXU matmul.
        x = x_ref[rows, :].astype(compute_dtype)                       # (T, C)
        qkv = jnp.dot(x, wqkv_ref[...], preferred_element_type=jnp.float32)
        qkv = (qkv + bqkv_ref[...]).astype(compute_dtype)              # (T, 3C) bf16

        out_acc = jnp.zeros((T, dim), jnp.float32)
        for h in range(num_heads):                                     # static unroll
            qh = qkv[:, h * hd:(h + 1) * hd]                            # (T, hd)
            kh = qkv[:, dim + h * hd:dim + (h + 1) * hd]                # (T, hd)
            vh = qkv[:, 2 * dim + h * hd:2 * dim + (h + 1) * hd]        # (T, hd)

            # Dense (T, T) scores in one MXU pass; softmax vregs are 128-lane dense.
            scores = jnp.einsum("nd,md->nm", qh, kh,
                                preferred_element_type=jnp.float32)     # (T, T) f32
            scores = scores + bias_ref[h]          # block-diag rel bias + window mask

            # Numerically stable softmax in f32; divide via the EUP approx reciprocal.
            scores = scores - jnp.max(scores, axis=-1, keepdims=True)
            p = jnp.exp(scores)
            p = p * pl.reciprocal(jnp.sum(p, axis=-1, keepdims=True), approx=True)

            oh = jnp.dot(p.astype(compute_dtype), vh,
                         preferred_element_type=jnp.float32)            # (T, hd) f32
            # Per-head projection accumulation (no lane-interleave concat of heads).
            out_acc = out_acc + jnp.dot(oh.astype(compute_dtype), wp_ref[h],
                                        preferred_element_type=jnp.float32)

        o_ref[rows, :] = (out_acc + bp_ref[...]).astype(o_ref.dtype)


def _pick_blocks(B, N):
    """Pick (block_b, sub_b): windows per grid step / per flattened-attention chunk."""
    # ~128 token rows per flattened attention chunk (MXU-friendly, bounded vregs).
    sub_b = max(1, min(B, pl.cdiv(128, N)))
    while B % sub_b:
        sub_b -= 1
    # Grid block: a multiple of sub_b dividing B.  Prefer >= 512 rows per step (better
    # HBM DMA efficiency, fewer grid-step overheads) while keeping >= 2 grid steps
    # (even when possible) so both v7x TensorCores get work.
    cands = [m for m in range(sub_b, B + 1, sub_b) if B % m == 0]
    multi = [m for m in cands if B // m >= 2]
    if multi:
        even = [m for m in multi if (B // m) % 2 == 0]
        cands = even if even else multi
    big = [m for m in cands if m * N >= 512]
    block_b = min(big) if big else max(cands)
    return block_b, sub_b


def window_attention(x, w_qkv, b_qkv, rel_bias, w_proj, b_proj, *, num_heads,
                     block_b=None, sub_b=None, compute_dtype=jnp.bfloat16,
                     out_dtype=None):
    """x: (B, N, C); w_qkv: (C, 3C); b_qkv: (3C,); rel_bias: (h, N, N);
    w_proj: (C, C); b_proj: (C,).  Returns (B, N, C) in out_dtype (default bf16)."""
    B, N, C = x.shape
    assert C % num_heads == 0
    hd = C // num_heads
    scale = C ** (-0.5)   # whole-dim scale: attn = q @ k^T * C**-0.5, as in the module
    out_dtype = compute_dtype if out_dtype is None else out_dtype

    if block_b is None or sub_b is None:
        auto_block, auto_sub = _pick_blocks(B, N)
        block_b = auto_block if block_b is None else block_b
        sub_b = auto_sub if sub_b is None else sub_b
    assert B % block_b == 0 and block_b % sub_b == 0
    n_sub = block_b // sub_b
    T = sub_b * N
    rows = block_b * N
    assert rows % 8 == 0 or rows == B * N, "grid-step rows must be 8-aligned"

    # ---- wrapper-side parameter prep (trace-time glue on tiny parameters) ----
    # torch's qkv.reshape(B,N,3,h,hd) means the 3C columns are already [Q | K | V]
    # with contiguous per-head hd slabs -> no re-layout; just fold the scale into Q.
    w_qkv_s = w_qkv.astype(jnp.float32).at[:, :C].multiply(scale).astype(compute_dtype)
    b_qkv_s = b_qkv.reshape(1, 3 * C).astype(jnp.float32).at[:, :C].multiply(scale)
    # Output projection split into per-head row slabs: (h, hd, C).
    w_proj_h = w_proj.reshape(num_heads, hd, C).astype(compute_dtype)
    b_proj_r = b_proj.reshape(1, C).astype(jnp.float32)

    # Block-diagonal relative-position bias over the flattened T = sub_b*N tokens:
    # rel_bias on the diagonal (intra-window) blocks, large finite negative elsewhere.
    tok = jnp.arange(T)
    same_window = (tok[:, None] // N) == (tok[None, :] // N)                 # (T, T)
    bias_tiled = jnp.tile(rel_bias.astype(jnp.float32), (1, sub_b, sub_b))   # (h, T, T)
    bias_block = jnp.where(same_window[None], bias_tiled, jnp.float32(-1e9))

    # x keeps its native dtype (cast happens in-kernel; no extra HBM cast pass).
    x2 = x.reshape(B * N, C)

    kernel = functools.partial(_window_attention_kernel, num_heads=num_heads,
                               sub_b=sub_b, n_sub=n_sub, seq=N, dim=C,
                               compute_dtype=compute_dtype)

    out = pl.pallas_call(
        kernel,
        out_shape=jax.ShapeDtypeStruct((B * N, C), out_dtype),
        grid_spec=pltpu.PrefetchScalarGridSpec(
            num_scalar_prefetch=0,
            grid=(B // block_b,),
            in_specs=[
                pl.BlockSpec((rows, C), lambda i: (i, 0)),             # x token rows
                pl.BlockSpec((C, 3 * C), lambda i: (0, 0)),            # fused qkv weight
                pl.BlockSpec((1, 3 * C), lambda i: (0, 0)),            # fused qkv bias
                pl.BlockSpec((num_heads, T, T), lambda i: (0, 0, 0)),  # block-diag bias
                pl.BlockSpec((num_heads, hd, C), lambda i: (0, 0, 0)), # per-head proj W
                pl.BlockSpec((1, C), lambda i: (0, 0)),                # proj bias
            ],
            out_specs=pl.BlockSpec((rows, C), lambda i: (i, 0)),
        ),
        compiler_params=pltpu.CompilerParams(
            dimension_semantics=("parallel",),
            vmem_limit_bytes=32 * 1024 * 1024,   # far above the ~1 MiB actually used
        ),
    )(x2, w_qkv_s, b_qkv_s, bias_block, w_proj_h, b_proj_r)
    return out.reshape(B, N, C)


def make_relative_position_index(window_size):
    """Glue: reproduces WindowAttention._init_relative_positions (pure indexing)."""
    w = window_size
    coords = jnp.stack(
        jnp.meshgrid(jnp.arange(w), jnp.arange(w), indexing="ij"), axis=0
    ).reshape(2, -1)                                           # (2, N)
    rel = coords[:, :, None] - coords[:, None, :]              # (2, N, N)
    rel = jnp.transpose(rel, (1, 2, 0))                        # (N, N, 2)
    rel = rel.at[:, :, 0].add(w - 1)
    rel = rel.at[:, :, 1].add(w - 1)
    rel = rel.at[:, :, 0].multiply(2 * w - 1)
    return rel.sum(-1)                                         # (N, N) int32


def reference_window_attention(x, w_qkv, b_qkv, rel_bias, w_proj, b_proj, num_heads):
    """Pure-JAX f32 reference mirroring the PyTorch forward."""
    B, N, C = x.shape
    hd = C // num_heads
    qkv = x @ w_qkv + b_qkv                                    # (B, N, 3C)
    qkv = qkv.reshape(B, N, 3, num_heads, hd).transpose(2, 0, 3, 1, 4)
    q, k, v = qkv[0], qkv[1], qkv[2]                           # (B, h, N, hd)
    attn = jnp.einsum("bhnd,bhmd->bhnm", q, k) * C ** (-0.5)
    attn = attn + rel_bias[None]                               # (B, h, N, N)
    attn = jax.nn.softmax(attn, axis=-1)
    out = jnp.einsum("bhnm,bhmd->bhnd", attn, v)               # (B, h, N, hd)
    out = out.transpose(0, 2, 1, 3).reshape(B, N, C)
    return out @ w_proj + b_proj


if __name__ == "__main__":
    # Small but TPU-friendly shapes: dim=128 (lane-dense C), 4 heads (hd=32),
    # window_size=4 -> N=16, B=16 windows.  Heuristic picks block_b=8 (128 rows/step)
    # and sub_b=8 (one 128-token flattened attention chunk), grid of 2 (even for v7x).
    B, dim, num_heads, window_size = 16, 128, 4, 4
    N = window_size * window_size

    key = jax.random.PRNGKey(0)
    k_x, k_wqkv, k_bqkv, k_tbl, k_wp, k_bp = jax.random.split(key, 6)

    x = jax.random.normal(k_x, (B, N, dim), dtype=jnp.float32)

    # Deterministic synthetic parameters (shapes from nn.Module __init__, stored
    # transposed, i.e. (in_features, out_features)).
    w_qkv = jax.random.normal(k_wqkv, (dim, 3 * dim), dtype=jnp.float32) * 0.05
    b_qkv = jax.random.normal(k_bqkv, (3 * dim,), dtype=jnp.float32) * 0.05
    w_proj = jax.random.normal(k_wp, (dim, dim), dtype=jnp.float32) * 0.05
    b_proj = jax.random.normal(k_bp, (dim,), dtype=jnp.float32) * 0.05
    # torch init is zeros; use small random values so the bias path is exercised.
    rel_pos_table = jax.random.normal(
        k_tbl, ((2 * window_size - 1) ** 2, num_heads), dtype=jnp.float32) * 0.05

    # Gather relative bias into dense (num_heads, N, N) — indexing glue outside kernel.
    rpi = make_relative_position_index(window_size)            # (N, N)
    rel_bias = rel_pos_table[rpi.reshape(-1)].reshape(N, N, num_heads)
    rel_bias = jnp.transpose(rel_bias, (2, 0, 1))              # (h, N, N)

    out = window_attention(x, w_qkv, b_qkv, rel_bias, w_proj, b_proj,
                           num_heads=num_heads)
    out = jax.block_until_ready(out)

    ref = reference_window_attention(x, w_qkv, b_qkv, rel_bias, w_proj, b_proj,
                                     num_heads)
    # bf16 MXU operands + bf16 output + approx-reciprocal softmax vs f32 reference.
    np.testing.assert_allclose(np.asarray(out.astype(jnp.float32)), np.asarray(ref),
                               rtol=2e-2, atol=2e-2)
    print("KERNEL_OK")
</pallas_src>

<mosaic_0001>
module attributes {stable_mosaic.version = 11 : i64} {
  func.func @_window_attention_kernel(%arg0: i32, %arg1: memref<128x128xf32, #tpu.memory_space<vmem>>, %arg2: memref<128x384xbf16, #tpu.memory_space<vmem>>, %arg3: memref<1x384xf32, #tpu.memory_space<vmem>>, %arg4: memref<4x128x128xf32, #tpu.memory_space<vmem>>, %arg5: memref<4x32x128xbf16, #tpu.memory_space<vmem>>, %arg6: memref<1x128xf32, #tpu.memory_space<vmem>>, %arg7: memref<128x128xbf16, #tpu.memory_space<vmem>>) attributes {dimension_semantics = [#tpu.dimension_semantics<parallel>], iteration_bounds = array<i64: 2>, scalar_prefetch = 0 : i64, scratch_operands = 0 : i64, tpu.core_type = #tpu.core_type<tc>, window_params = [{transform_indices = @transform_0, window_bounds = array<i64: 128, 128>}, {pipeline_mode = #tpu.pipeline_mode<synchronous>, transform_indices = @transform_1, window_bounds = array<i64: 128, 384>}, {pipeline_mode = #tpu.pipeline_mode<synchronous>, transform_indices = @transform_2, window_bounds = array<i64: 1, 384>}, {pipeline_mode = #tpu.pipeline_mode<synchronous>, transform_indices = @transform_3, window_bounds = array<i64: 4, 128, 128>}, {pipeline_mode = #tpu.pipeline_mode<synchronous>, transform_indices = @transform_4, window_bounds = array<i64: 4, 32, 128>}, {pipeline_mode = #tpu.pipeline_mode<synchronous>, transform_indices = @transform_5, window_bounds = array<i64: 1, 128>}, {transform_indices = @transform_6, window_bounds = array<i64: 128, 128>}]} {
    %c0 = arith.constant 0 : index
    %c0_0 = arith.constant 0 : index
    %0 = vector.load %arg1[%c0, %c0_0] : memref<128x128xf32, #tpu.memory_space<vmem>>, vector<128x128xf32>
    %1 = arith.truncf %0 : vector<128x128xf32> to vector<128x128xbf16>
    %c0_1 = arith.constant 0 : index
    %c0_2 = arith.constant 0 : index
    %2 = vector.load %arg2[%c0_1, %c0_2] : memref<128x384xbf16, #tpu.memory_space<vmem>>, vector<128x384xbf16>
    %cst = arith.constant dense<0.000000e+00> : vector<128x384xf32>
    %3 = tpu.matmul %1, %2, %cst {dimension_numbers = #tpu.dot_dimension_numbers<[1], [0], [0], [1], [0, 0, 1, 1], [], []>} : vector<128x128xbf16>, vector<128x384xbf16>, vector<128x384xf32> -> vector<128x384xf32>
    %c0_3 = arith.constant 0 : index
    %c0_4 = arith.constant 0 : index
    %4 = vector.load %arg3[%c0_3, %c0_4] : memref<1x384xf32, #tpu.memory_space<vmem>>, vector<1x384xf32>
    %5 = vector.broadcast %4 : vector<1x384xf32> to vector<128x384xf32>
    %6 = arith.addf %3, %5 : vector<128x384xf32>
    %7 = arith.truncf %6 : vector<128x384xf32> to vector<128x384xbf16>
    %cst_5 = arith.constant 0.000000e+00 : f32
    %8 = vector.broadcast %cst_5 : f32 to vector<128x128xf32>
    %9 = vector.extract_strided_slice %7 {offsets = [0, 0], sizes = [128, 32], strides = [1, 1]} : vector<128x384xbf16> to vector<128x32xbf16>
    %10 = vector.extract_strided_slice %7 {offsets = [0, 128], sizes = [128, 32], strides = [1, 1]} : vector<128x384xbf16> to vector<128x32xbf16>
    %11 = vector.extract_strided_slice %7 {offsets = [0, 256], sizes = [128, 32], strides = [1, 1]} : vector<128x384xbf16> to vector<128x32xbf16>
    "tpu.trace_start"() <{level = 10 : i32, message = "nd,md->nm"}> : () -> ()
    %cst_6 = arith.constant dense<0.000000e+00> : vector<128x128xf32>
    %12 = tpu.matmul %9, %10, %cst_6 {dimension_numbers = #tpu.dot_dimension_numbers<[1], [1], [0], [0], [0, 0, 1, 0], [], []>} : vector<128x32xbf16>, vector<128x32xbf16>, vector<128x128xf32> -> vector<128x128xf32>
    "tpu.trace_stop"() : () -> ()
    %c0_7 = arith.constant 0 : index
    %c0_8 = arith.constant 0 : index
    %c0_9 = arith.constant 0 : index
    %13 = vector.load %arg4[%c0_7, %c0_8, %c0_9] : memref<4x128x128xf32, #tpu.memory_space<vmem>>, vector<1x128x128xf32>
    %14 = vector.shape_cast %13 : vector<1x128x128xf32> to vector<128x128xf32>
    %15 = arith.addf %12, %14 : vector<128x128xf32>
    %cst_10 = arith.constant dense<0xFF800000> : vector<128xf32>
    %16 = vector.multi_reduction <maximumf>, %15, %cst_10 [1] : vector<128x128xf32> to vector<128xf32>
    %17 = vector.shape_cast %16 : vector<128xf32> to vector<128x1xf32>
    %18 = vector.broadcast %17 : vector<128x1xf32> to vector<128x128xf32>
    %19 = arith.subf %15, %18 : vector<128x128xf32>
    %20 = math.exp %19 : vector<128x128xf32>
    %cst_11 = arith.constant dense<0.000000e+00> : vector<128xf32>
    %21 = vector.multi_reduction <add>, %20, %cst_11 [1] : vector<128x128xf32> to vector<128xf32>
    %22 = vector.shape_cast %21 : vector<128xf32> to vector<128x1xf32>
    %23 = tpu.reciprocal %22 {approx = true} : vector<128x1xf32> -> vector<128x1xf32>
    %24 = vector.broadcast %23 : vector<128x1xf32> to vector<128x128xf32>
    %25 = arith.mulf %20, %24 : vector<128x128xf32>
    %26 = arith.truncf %25 : vector<128x128xf32> to vector<128x128xbf16>
    %cst_12 = arith.constant dense<0.000000e+00> : vector<128x32xf32>
    %27 = tpu.matmul %26, %11, %cst_12 {dimension_numbers = #tpu.dot_dimension_numbers<[1], [0], [0], [1], [0, 0, 1, 1], [], []>} : vector<128x128xbf16>, vector<128x32xbf16>, vector<128x32xf32> -> vector<128x32xf32>
    %28 = arith.truncf %27 : vector<128x32xf32> to vector<128x32xbf16>
    %c0_13 = arith.constant 0 : index
    %c0_14 = arith.constant 0 : index
    %c0_15 = arith.constant 0 : index
    %29 = vector.load %arg5[%c0_13, %c0_14, %c0_15] : memref<4x32x128xbf16, #tpu.memory_space<vmem>>, vector<1x32x128xbf16>
    %30 = vector.shape_cast %29 : vector<1x32x128xbf16> to vector<32x128xbf16>
    %cst_16 = arith.constant dense<0.000000e+00> : vector<128x128xf32>
    %31 = tpu.matmul %28, %30, %cst_16 {dimension_numbers = #tpu.dot_dimension_numbers<[1], [0], [0], [1], [0, 0, 1, 1], [], []>} : vector<128x32xbf16>, vector<32x128xbf16>, vector<128x128xf32> -> vector<128x128xf32>
    %32 = arith.addf %8, %31 : vector<128x128xf32>
    %33 = vector.extract_strided_slice %7 {offsets = [0, 32], sizes = [128, 32], strides = [1, 1]} : vector<128x384xbf16> to vector<128x32xbf16>
    %34 = vector.extract_strided_slice %7 {offsets = [0, 160], sizes = [128, 32], strides = [1, 1]} : vector<128x384xbf16> to vector<128x32xbf16>
    %35 = vector.extract_strided_slice %7 {offsets = [0, 288], sizes = [128, 32], strides = [1, 1]} : vector<128x384xbf16> to vector<128x32xbf16>
    "tpu.trace_start"() <{level = 10 : i32, message = "nd,md->nm"}> : () -> ()
    %cst_17 = arith.constant dense<0.000000e+00> : vector<128x128xf32>
    %36 = tpu.matmul %33, %34, %cst_17 {dimension_numbers = #tpu.dot_dimension_numbers<[1], [1], [0], [0], [0, 0, 1, 0], [], []>} : vector<128x32xbf16>, vector<128x32xbf16>, vector<128x128xf32> -> vector<128x128xf32>
    "tpu.trace_stop"() : () -> ()
    %c1 = arith.constant 1 : index
    %c0_18 = arith.constant 0 : index
    %c0_19 = arith.constant 0 : index
    %37 = vector.load %arg4[%c1, %c0_18, %c0_19] : memref<4x128x128xf32, #tpu.memory_space<vmem>>, vector<1x128x128xf32>
    %38 = vector.shape_cast %37 : vector<1x128x128xf32> to vector<128x128xf32>
    %39 = arith.addf %36, %38 : vector<128x128xf32>
    %cst_20 = arith.constant dense<0xFF800000> : vector<128xf32>
    %40 = vector.multi_reduction <maximumf>, %39, %cst_20 [1] : vector<128x128xf32> to vector<128xf32>
    %41 = vector.shape_cast %40 : vector<128xf32> to vector<128x1xf32>
    %42 = vector.broadcast %41 : vector<128x1xf32> to vector<128x128xf32>
    %43 = arith.subf %39, %42 : vector<128x128xf32>
    %44 = math.exp %43 : vector<128x128xf32>
    %cst_21 = arith.constant dense<0.000000e+00> : vector<128xf32>
    %45 = vector.multi_reduction <add>, %44, %cst_21 [1] : vector<128x128xf32> to vector<128xf32>
    %46 = vector.shape_cast %45 : vector<128xf32> to vector<128x1xf32>
    %47 = tpu.reciprocal %46 {approx = true} : vector<128x1xf32> -> vector<128x1xf32>
    %48 = vector.broadcast %47 : vector<128x1xf32> to vector<128x128xf32>
    %49 = arith.mulf %44, %48 : vector<128x128xf32>
    %50 = arith.truncf %49 : vector<128x128xf32> to vector<128x128xbf16>
    %cst_22 = arith.constant dense<0.000000e+00> : vector<128x32xf32>
    %51 = tpu.matmul %50, %35, %cst_22 {dimension_numbers = #tpu.dot_dimension_numbers<[1], [0], [0], [1], [0, 0, 1, 1], [], []>} : vector<128x128xbf16>, vector<128x32xbf16>, vector<128x32xf32> -> vector<128x32xf32>
    %52 = arith.truncf %51 : vector<128x32xf32> to vector<128x32xbf16>
    %c1_23 = arith.constant 1 : index
    %c0_24 = arith.constant 0 : index
    %c0_25 = arith.constant 0 : index
    %53 = vector.load %arg5[%c1_23, %c0_24, %c0_25] : memref<4x32x128xbf16, #tpu.memory_space<vmem>>, vector<1x32x128xbf16>
    %54 = vector.shape_cast %53 : vector<1x32x128xbf16> to vector<32x128xbf16>
    %cst_26 = arith.constant dense<0.000000e+00> : vector<128x128xf32>
    %55 = tpu.matmul %52, %54, %cst_26 {dimension_numbers = #tpu.dot_dimension_numbers<[1], [0], [0], [1], [0, 0, 1, 1], [], []>} : vector<128x32xbf16>, vector<32x128xbf16>, vector<128x128xf32> -> vector<128x128xf32>
    %56 = arith.addf %32, %55 : vector<128x128xf32>
    %57 = vector.extract_strided_slice %7 {offsets = [0, 64], sizes = [128, 32], strides = [1, 1]} : vector<128x384xbf16> to vector<128x32xbf16>
    %58 = vector.extract_strided_slice %7 {offsets = [0, 192], sizes = [128, 32], strides = [1, 1]} : vector<128x384xbf16> to vector<128x32xbf16>
    %59 = vector.extract_strided_slice %7 {offsets = [0, 320], sizes = [128, 32], strides = [1, 1]} : vector<128x384xbf16> to vector<128x32xbf16>
    "tpu.trace_start"() <{level = 10 : i32, message = "nd,md->nm"}> : () -> ()
    %cst_27 = arith.constant dense<0.000000e+00> : vector<128x128xf32>
    %60 = tpu.matmul %57, %58, %cst_27 {dimension_numbers = #tpu.dot_dimension_numbers<[1], [1], [0], [0], [0, 0, 1, 0], [], []>} : vector<128x32xbf16>, vector<128x32xbf16>, vector<128x128xf32> -> vector<128x128xf32>
    "tpu.trace_stop"() : () -> ()
    %c2 = arith.constant 2 : index
    %c0_28 = arith.constant 0 : index
    %c0_29 = arith.constant 0 : index
    %61 = vector.load %arg4[%c2, %c0_28, %c0_29] : memref<4x128x128xf32, #tpu.memory_space<vmem>>, vector<1x128x128xf32>
    %62 = vector.shape_cast %61 : vector<1x128x128xf32> to vector<128x128xf32>
    %63 = arith.addf %60, %62 : vector<128x128xf32>
    %cst_30 = arith.constant dense<0xFF800000> : vector<128xf32>
    %64 = vector.multi_reduction <maximumf>, %63, %cst_30 [1] : vector<128x128xf32> to vector<128xf32>
    %65 = vector.shape_cast %64 : vector<128xf32> to vector<128x1xf32>
    %66 = vector.broadcast %65 : vector<128x1xf32> to vector<128x128xf32>
    %67 = arith.subf %63, %66 : vector<128x128xf32>
    %68 = math.exp %67 : vector<128x128xf32>
    %cst_31 = arith.constant dense<0.000000e+00> : vector<128xf32>
    %69 = vector.multi_reduction <add>, %68, %cst_31 [1] : vector<128x128xf32> to vector<128xf32>
    %70 = vector.shape_cast %69 : vector<128xf32> to vector<128x1xf32>
    %71 = tpu.reciprocal %70 {approx = true} : vector<128x1xf32> -> vector<128x1xf32>
    %72 = vector.broadcast %71 : vector<128x1xf32> to vector<128x128xf32>
    %73 = arith.mulf %68, %72 : vector<128x128xf32>
    %74 = arith.truncf %73 : vector<128x128xf32> to vector<128x128xbf16>
    %cst_32 = arith.constant dense<0.000000e+00> : vector<128x32xf32>
    %75 = tpu.matmul %74, %59, %cst_32 {dimension_numbers = #tpu.dot_dimension_numbers<[1], [0], [0], [1], [0, 0, 1, 1], [], []>} : vector<128x128xbf16>, vector<128x32xbf16>, vector<128x32xf32> -> vector<128x32xf32>
    %76 = arith.truncf %75 : vector<128x32xf32> to vector<128x32xbf16>
    %c2_33 = arith.constant 2 : index
    %c0_34 = arith.constant 0 : index
    %c0_35 = arith.constant 0 : index
    %77 = vector.load %arg5[%c2_33, %c0_34, %c0_35] : memref<4x32x128xbf16, #tpu.memory_space<vmem>>, vector<1x32x128xbf16>
    %78 = vector.shape_cast %77 : vector<1x32x128xbf16> to vector<32x128xbf16>
    %cst_36 = arith.constant dense<0.000000e+00> : vector<128x128xf32>
    %79 = tpu.matmul %76, %78, %cst_36 {dimension_numbers = #tpu.dot_dimension_numbers<[1], [0], [0], [1], [0, 0, 1, 1], [], []>} : vector<128x32xbf16>, vector<32x128xbf16>, vector<128x128xf32> -> vector<128x128xf32>
    %80 = arith.addf %56, %79 : vector<128x128xf32>
    %81 = vector.extract_strided_slice %7 {offsets = [0, 96], sizes = [128, 32], strides = [1, 1]} : vector<128x384xbf16> to vector<128x32xbf16>
    %82 = vector.extract_strided_slice %7 {offsets = [0, 224], sizes = [128, 32], strides = [1, 1]} : vector<128x384xbf16> to vector<128x32xbf16>
    %83 = vector.extract_strided_slice %7 {offsets = [0, 352], sizes = [128, 32], strides = [1, 1]} : vector<128x384xbf16> to vector<128x32xbf16>
    "tpu.trace_start"() <{level = 10 : i32, message = "nd,md->nm"}> : () -> ()
    %cst_37 = arith.constant dense<0.000000e+00> : vector<128x128xf32>
    %84 = tpu.matmul %81, %82, %cst_37 {dimension_numbers = #tpu.dot_dimension_numbers<[1], [1], [0], [0], [0, 0, 1, 0], [], []>} : vector<128x32xbf16>, vector<128x32xbf16>, vector<128x128xf32> -> vector<128x128xf32>
    "tpu.trace_stop"() : () -> ()
    %c3 = arith.constant 3 : index
    %c0_38 = arith.constant 0 : index
    %c0_39 = arith.constant 0 : index
    %85 = vector.load %arg4[%c3, %c0_38, %c0_39] : memref<4x128x128xf32, #tpu.memory_space<vmem>>, vector<1x128x128xf32>
    %86 = vector.shape_cast %85 : vector<1x128x128xf32> to vector<128x128xf32>
    %87 = arith.addf %84, %86 : vector<128x128xf32>
    %cst_40 = arith.constant dense<0xFF800000> : vector<128xf32>
    %88 = vector.multi_reduction <maximumf>, %87, %cst_40 [1] : vector<128x128xf32> to vector<128xf32>
    %89 = vector.shape_cast %88 : vector<128xf32> to vector<128x1xf32>
    %90 = vector.broadcast %89 : vector<128x1xf32> to vector<128x128xf32>
    %91 = arith.subf %87, %90 : vector<128x128xf32>
    %92 = math.exp %91 : vector<128x128xf32>
    %cst_41 = arith.constant dense<0.000000e+00> : vector<128xf32>
    %93 = vector.multi_reduction <add>, %92, %cst_41 [1] : vector<128x128xf32> to vector<128xf32>
    %94 = vector.shape_cast %93 : vector<128xf32> to vector<128x1xf32>
    %95 = tpu.reciprocal %94 {approx = true} : vector<128x1xf32> -> vector<128x1xf32>
    %96 = vector.broadcast %95 : vector<128x1xf32> to vector<128x128xf32>
    %97 = arith.mulf %92, %96 : vector<128x128xf32>
    %98 = arith.truncf %97 : vector<128x128xf32> to vector<128x128xbf16>
    %cst_42 = arith.constant dense<0.000000e+00> : vector<128x32xf32>
    %99 = tpu.matmul %98, %83, %cst_42 {dimension_numbers = #tpu.dot_dimension_numbers<[1], [0], [0], [1], [0, 0, 1, 1], [], []>} : vector<128x128xbf16>, vector<128x32xbf16>, vector<128x32xf32> -> vector<128x32xf32>
    %100 = arith.truncf %99 : vector<128x32xf32> to vector<128x32xbf16>
    %c3_43 = arith.constant 3 : index
    %c0_44 = arith.constant 0 : index
    %c0_45 = arith.constant 0 : index
    %101 = vector.load %arg5[%c3_43, %c0_44, %c0_45] : memref<4x32x128xbf16, #tpu.memory_space<vmem>>, vector<1x32x128xbf16>
    %102 = vector.shape_cast %101 : vector<1x32x128xbf16> to vector<32x128xbf16>
    %cst_46 = arith.constant dense<0.000000e+00> : vector<128x128xf32>
    %103 = tpu.matmul %100, %102, %cst_46 {dimension_numbers = #tpu.dot_dimension_numbers<[1], [0], [0], [1], [0, 0, 1, 1], [], []>} : vector<128x32xbf16>, vector<32x128xbf16>, vector<128x128xf32> -> vector<128x128xf32>
    %104 = arith.addf %80, %103 : vector<128x128xf32>
    %c0_47 = arith.constant 0 : index
    %c0_48 = arith.constant 0 : index
    %105 = vector.load %arg6[%c0_47, %c0_48] : memref<1x128xf32, #tpu.memory_space<vmem>>, vector<1x128xf32>
    %106 = vector.broadcast %105 : vector<1x128xf32> to vector<128x128xf32>
    %107 = arith.addf %104, %106 : vector<128x128xf32>
    %108 = arith.truncf %107 : vector<128x128xf32> to vector<128x128xbf16>
    %c0_49 = arith.constant 0 : index
    %c0_50 = arith.constant 0 : index
    %109 = vector.load %arg7[%c0_49, %c0_50] : memref<128x128xbf16, #tpu.memory_space<vmem>>, vector<128x128xbf16>
    tpu.vector_store %arg7[%c0_49, %c0_50], %108 {strides = array<i32>} : memref<128x128xbf16, #tpu.memory_space<vmem>>, vector<128x128xbf16>,
    return
  }
  func.func @transform_0(%arg0: i32) -> (i32, i32) {
    %c0_i32 = arith.constant 0 : i32
    %c0_i32_0 = arith.constant 0 : i32
    return %arg0, %c0_i32 : i32, i32
  }
  func.func @transform_1(%arg0: i32) -> (i32, i32) {
    %c0_i32 = arith.constant 0 : i32
    %c0_i32_0 = arith.constant 0 : i32
    %c0_i32_1 = arith.constant 0 : i32
    return %c0_i32, %c0_i32_0 : i32, i32
  }
  func.func @transform_2(%arg0: i32) -> (i32, i32) {
    %c0_i32 = arith.constant 0 : i32
    %c0_i32_0 = arith.constant 0 : i32
    %c0_i32_1 = arith.constant 0 : i32
    return %c0_i32, %c0_i32_0 : i32, i32
  }
  func.func @transform_3(%arg0: i32) -> (i32, i32, i32) {
    %c0_i32 = arith.constant 0 : i32
    %c0_i32_0 = arith.constant 0 : i32
    %c0_i32_1 = arith.constant 0 : i32
    %c0_i32_2 = arith.constant 0 : i32
    return %c0_i32, %c0_i32_0, %c0_i32_1 : i32, i32, i32
  }
  func.func @transform_4(%arg0: i32) -> (i32, i32, i32) {
    %c0_i32 = arith.constant 0 : i32
    %c0_i32_0 = arith.constant 0 : i32
    %c0_i32_1 = arith.constant 0 : i32
    %c0_i32_2 = arith.constant 0 : i32
    return %c0_i32, %c0_i32_0, %c0_i32_1 : i32, i32, i32
  }
  func.func @transform_5(%arg0: i32) -> (i32, i32) {
    %c0_i32 = arith.constant 0 : i32
    %c0_i32_0 = arith.constant 0 : i32
    %c0_i32_1 = arith.constant 0 : i32
    return %c0_i32, %c0_i32_0 : i32, i32
  }
  func.func @transform_6(%arg0: i32) -> (i32, i32) {
    %c0_i32 = arith.constant 0 : i32
    %c0_i32_0 = arith.constant 0 : i32
    return %arg0, %c0_i32 : i32, i32
  }
}

</mosaic_0001>

<bundles_post_ra>
// kernel: tpu_custom_call.1
= control target key start
LH: loop header
LB: loop body
LE: loop exit
PB: predicated region body
PF: predicated region fallthrough
CT: control target
= control target key end

     0   :  { %11 = vsyncpa [#allocation3], 0  ;;  %s6308_s0 = inlined_call_operand.hbm [shape: f32[256,128], index: 0, kind: input, shape index: {}]   ;;  %s6309_s1 = inlined_call_operand.hbm [shape: bf16[128,384], index: 1, kind: input, shape index: {}]   ;;  %s6310_s2 = inlined_call_operand.vmem [shape: f32[1,384], index: 2, kind: input, shape index: {}]   ;;  %s6311_s3 = inlined_call_operand.hbm [shape: f32[4,128,128], index: 3, kind: input, shape index: {}]   ;;  %s6312_s4 = inlined_call_operand.hbm [shape: bf16[4,32,128], index: 4, kind: input, shape index: {}]   ;;  %s6313_s5 = inlined_call_operand.vmem [shape: f32[1,128], index: 5, kind: input, shape index: {}]   ;;  %s6314_s6 = inlined_call_operand.hbm [shape: bf16[256,128], index: 6, kind: output, shape index: {}]  }
   0x1   :  { %13 = vsyncpa [#allocation3 + $0x1], 0 }
   0x2   :  { %14 = vsyncpa [#allocation6], 0 }
   0x3   :  { %15 = vsyncpa [#allocation9], 0 }
   0x4   :  { %16 = vsyncpa [#allocation4], 0 }
   0x5   :  { %18 = vsyncpa [#allocation4 + $0x1], 0  ;;  %s4819_s21 = smov 0   ;;  %s4821_s22 = smov 0  }
   0x6   :  { %s4823_s23 = smov 0   ;;  %s4825_s24 = smov 0  }
   0x7 LB: > { %s4840_s25 = sadd.s32 4294967295, %s4766_s24   ;;  %s3422_s26 = sadd.s32 4294967294, %s4766_s24   ;;  %s4766_s24 = sphi %s4825_s24, %s6356_s24   ;;  %s4762_s23 = sphi %s4823_s23, %s6355_s23   ;;  %s4758_s22 = sphi %s4821_s22, %s6354_s22   ;;  %s4754_s21 = sphi %s4819_s21, %s6353_s21  }
   0x8   : > { %p44_p0 = scmp.ne.s32.totalorder %s4758_s22, %s4754_s21  ;;  %p6315_p1 = scmp.eq.s32.totalorder %s4840_s25, 0 }
   0x9   : > { %p179_p3 = scmp.eq.s32.totalorder %s3422_s26, 1  ;;  %p3423_p5 = scmp.ge.s32.totalorder %s4766_s24, 1 }
   0xa   : > { %p4849_p4 = por %p6315_p1, %p44_p0  ;;  %p186_p7 = scmp.lt.s32.totalorder %s4766_s24, 3 }
   0xb   : > { %p4854_p6 = por %p179_p3, %p44_p0  ;;  %s4768_s30 = smov [#allocation5]  }
   0xc   : > { %s6321_s27 = scalar_select %p4849_p4, 1, 0 }
   0xd   : > { %s6322_s28 = scalar_select %p4854_p6, 1, 0 }
   0xe   : > { %p4859_p8 = pnand %p3423_p5, %p186_p7  ;;  %s198_s7 = sshll.u32 %s4768_s30, 4  ;;  %s199_s7 = int_to_ptr.vmem [resolvable:$true] %s198_s7 }
   0xf   : > { %s4769_s9 = smov [#allocation7]   ;;  %s4599_s11 = scalar_lea.vmem %s199_s7, 3072 }
  0x10   : > { %s6323_s29 = scalar_select %p4859_p8, 1, 0 }
  0x11   : > { %p4220_p9 = pneg %p4859_p8  ;;  %s214_s10 = sshll.u32 %s4769_s9, 4  ;;  %s215_s10 = int_to_ptr.vmem [resolvable:$true] %s214_s10 }
  0x12   : > { %p4600_p13 = scmp.ne.s32.totalorder %s199_s7, %s4599_s11  ;;  %p4607_p5 = scmp.lt.s32.totalorder %s199_s7, %s199_s7 }
  0x13   : > { %p4868_p11 = pnand %p4220_p9, %p6315_p1  ;;  %p4608_p7 = scmp.lt.s32.totalorder %s4599_s11, %s4599_s11 }
  0x15   : > { %p4590_p12 = pneg %p4868_p11  ;;  %p4609_p10 = por %p4608_p7, %p4607_p5 }
  0x17   : > { %p4602_p0 = pnand %p4600_p13, %p4590_p12 }
  0x19   : > { %p4603_p3 = pneg %p4602_p0 }
  0x1b   : > { %p4610_p9 = pnand %p4609_p10, %p4603_p3 }
  0x1d   : > { %4613 = shalt.err (!%p4610_p9)
}
  0x1e   : > { %s4770_s12 = smov 192   ;;  %s4771_s13 = smov 12  }
  0x1f   : > { %4223 = dma.hbm_to_vmem [thread:$0]  (!%p4868_p11), %s6309_s1, 3072, %s199_s7, [#allocation6], %s4770_s12, %s4770_s12, %s4771_s13  }
  0x20   : > { %s4625_s16 = scalar_lea.vmem %s215_s10, 8192  ;;  %p4633_p2 = scmp.lt.s32.totalorder %s215_s10, %s215_s10 }
  0x21   : > { %p4626_p1 = scmp.ne.s32.totalorder %s215_s10, %s4625_s16  ;;  %p4634_p6 = scmp.lt.s32.totalorder %s4625_s16, %s4625_s16 }
  0x23   : > { %p4628_p13 = pnand %p4626_p1, %p4590_p12  ;;  %p4635_p5 = por %p4634_p6, %p4633_p2 }
  0x25   : > { %p4629_p0 = pneg %p4628_p13 }
  0x27   : > { %p4636_p10 = pnand %p4635_p5, %p4629_p0 }
  0x29   : > { %4639 = shalt.err (!%p4636_p10)
}
  0x2a   : > { %s6316_s17 = smov 128   ;;  %s6317_s18 = smov 8  }
  0x2b   : > { %4226 = dma.hbm_to_vmem [thread:$0]  (!%p4868_p11), %s6311_s3, 8192, %s215_s10, [#allocation6], %s6316_s17, %s6316_s17, %s6317_s18  }
  0x2c   : > { %s4774_s26 = smov [#allocation8]  }
  0x2d   : > { %s227_s30 = sshll.u32 %s4774_s26, 4  ;;  %s228_s30 = int_to_ptr.vmem [resolvable:$true] %s227_s30 }
  0x2e   : > { %s4651_s7 = scalar_lea.vmem %s228_s30, 1024  ;;  %p4659_p3 = scmp.lt.s32.totalorder %s228_s30, %s228_s30 }
  0x2f   : > { %p4652_p1 = scmp.ne.s32.totalorder %s228_s30, %s4651_s7  ;;  %p4660_p7 = scmp.lt.s32.totalorder %s4651_s7, %s4651_s7 }
  0x31   : > { %p4654_p2 = pnand %p4652_p1, %p4590_p12  ;;  %p4661_p9 = por %p4660_p7, %p4659_p3 }
  0x33   : > { %p4655_p6 = pneg %p4654_p2 }
  0x35   : > { %p4662_p13 = pnand %p4661_p9, %p4655_p6 }
  0x37   : > { %4665 = shalt.err (!%p4662_p13)
}
  0x38   : > { %s4775_s9 = smov 64   ;;  %s4776_s10 = smov 4  }
  0x39   : > { %4229 = dma.hbm_to_vmem [thread:$0]  (!%p4868_p11), %s6312_s4, 1024, %s228_s30, [#allocation9], %s4775_s9, %s4775_s9, %s4776_s10  }
  0x3a   : > { %s4902_s13 = sadd.s32 1, %s4766_s24   ;;  %s31_s15 = sadd.s32 1, %s4762_s23 }
  0x3b   : > { %s28_s14 = ssub.s32 %s4766_s24, %s4902_s13  ;;  %p38_p0 = scmp.ne.s32.totalorder %s4762_s23, %s4758_s22 }
  0x3c   : > { %p29_p12 = scmp.eq.s32.totalorder %s28_s14, 0  ;;  %p39_p5 = scmp.eq.s32.totalorder %s4766_s24, 0 }
  0x3d   : > { %p4241_p10 = scmp.lt.s32.totalorder %s4766_s24, 2  ;;  %p6325_p2 = scmp.eq.s32.totalorder %s4840_s25, 1 }
  0x3e   : > { %s4912_s16 = scalar_select %p29_p12, %s4762_s23, %s31_s15  }
  0x3f   : > { %p40_p1 = por %p39_p5, %p38_p0  ;;  %p4916_p6 = por %p6325_p2, %p38_p0 }
  0x40   : > { %s244_s8 = sand.u32 1, %s4762_s23   ;;  %s3555_s20 = sshll.u32 %s4766_s24, 11 }
  0x41   : > { %s6326_s19 = scalar_select %p4916_p6, 1, 0 }
  0x42   : > { %s3428_s26 = sshll.u32 %s244_s8, 7  ;;  %s4925_s9 = scalar_lea.hbm %s6308_s0, %s3555_s20 }
  0x43   : > { %s248_s10 = scalar_lea.vmem [#allocation2], %s3428_s26  ;;  %p4927_p11 = pnand %p4241_p10, %p40_p1 }
  0x44   : > { %s255_s11 = sshll.u32 %s248_s10, 4  ;;  %s4933_s14 = scalar_lea.sflag [#allocation3], %s244_s8  ;;  %s4931_s11 = int_to_ptr.vmem [resolvable:$true] %s255_s11 }
  0x45   : > { %s4666_s15 = scalar_lea.hbm %s4925_s9, 2048  ;;  %p4668_p7 = pneg %p4927_p11 }
  0x46   : > { %p4667_p3 = scmp.ne.s32.totalorder %s4925_s9, %s4666_s15  ;;  %s4671_s26 = scalar_lea.hbm %s6308_s0, 4096 }
  0x47   : > { %p4672_p12 = scmp.lt.s32.totalorder %s4925_s9, %s6308_s0  ;;  %p4673_p0 = scmp.lt.s32.totalorder %s4671_s26, %s4666_s15 }
  0x48   : > { %p4669_p9 = pnand %p4668_p7, %p4667_p3 }
  0x49   : > { %p4674_p5 = por %p4673_p0, %p4672_p12 }
  0x4a   : > { %p4670_p13 = pneg %p4669_p9 }
  0x4c   : > { %p4675_p10 = pnand %p4674_p5, %p4670_p13 }
  0x4e   : > { %4678 = shalt.err (!%p4675_p10)
}
  0x4f   : > { %s4679_s8 = scalar_lea.vmem %s4931_s11, 2048  ;;  %s4777_s17 = smov [#allocation2]  }
  0x50   : > { %p4680_p1 = scmp.ne.s32.totalorder %s4931_s11, %s4679_s8  ;;  %s4684_s18 = sshll.u32 %s4777_s17, 4  ;;  %s4685_s18 = int_to_ptr.vmem [resolvable:$false] %s4684_s18 }
  0x51   : > { %s4686_s20 = scalar_lea.vmem %s4685_s18, 4096  ;;  %p4687_p9 = scmp.lt.s32.totalorder %s4931_s11, %s4685_s18 }
  0x52   : > { %p4682_p2 = pnand %p4680_p1, %p4668_p7  ;;  %p4688_p6 = scmp.lt.s32.totalorder %s4686_s20, %s4679_s8 }
  0x54   : > { %p4683_p3 = pneg %p4682_p2  ;;  %p4689_p4 = por %p4688_p6, %p4687_p9 }
  0x56   : > { %p4690_p8 = pnand %p4689_p4, %p4683_p3 }
  0x58   : > { %4693 = shalt.err (!%p4690_p8)
}
  0x59   : > { %s6328_s15 = smov 8   ;;  %s6329_s30 = smov 128  }
  0x5a   : > { %4233 = dma.hbm_to_vmem [thread:$0]  (!%p4927_p11), %s4925_s9, 2048, %s4931_s11, %s4933_s14, %s6329_s30, %s6329_s30, %s6328_s15  }
  0x5b   : > { %p6330_p7 = scmp.ne.s32.totalorder %s6323_s29, 0 }
  0x5d   : > { %267 = sbr.rel (%p6330_p7) target bundleno = 3128 (0xc38), region = 44 }
  0x62   : > { %s4960_s17 = sand.u32 1, %s4758_s22   ;;  %p6331_p4 = scmp.ne.s32.totalorder %s6321_s27, 0 }
  0x63   : > { %s3432_s18 = sshll.u32 %s4960_s17, 7  ;;  %s270_s26 = scalar_lea.sflag [#allocation3], %s4960_s17 }
  0x64   : > { %s4964_s7 = scalar_lea.vmem [#allocation2], %s3432_s18 }
  0x65   : > { %4737 = dma.done.wait (%p6331_p4), %s270_s26, 2048  }
  0x66   : > { %4739 = vsyncadd (%p6331_p4), %s270_s26, 4294965248  ;;  %p6332_p8 = scmp.eq.s32.totalorder %s4840_s25, 0 }
  0x68   : > { %4741 = dma.done.wait (%p6332_p8), [#allocation6], 11264   ;;  %p6333_p6 = pmov %p6332_p8 }
  0x6a   : > { %4743 = vsyncadd (%p6333_p6), [#allocation6], 4294956032  ;;  %p6334_p11 = pmov %p6333_p6 }
  0x6b   : > { %p6335_p13 = pmov %p6333_p6 }
  0x6c   : > { %4745 = dma.done.wait (%p6334_p11), [#allocation9], 1024  }
  0x6d   : > { %4747 = vsyncadd (%p6335_p13), [#allocation9], 4294966272  ;;  %v4778_v0 = vmov 0   ;;  %v4292_v1 = vld [vmem:[#allocation5 + $0xac] ss:$12 sps:$4 sm:$0xff]   ;;  %v317_v8 = vld [vmem:[%s4964_s7] sm:$0xff]  ;;  %v375_v49 = vlaneseq }
  0x6e   : > { %550 = vmatprep.mubr.bf16.mxu0 %v4778_v0  ;;  %v4294_v2 = vld [vmem:[#allocation5 + $0xa8] ss:$12 sps:$4 sm:$0xff]   ;;  %518 = vmatprep.subr.bf16.mxu0 %v4292_v1  ;;  %v4297_v4 = vld [vmem:[#allocation5 + $0x90] ss:$12 sps:$4 sm:$0xff]   ;;  %v4300_v6 = vld [vmem:[#allocation5 + $0x78] ss:$12 sps:$4 sm:$0xff]  }
  0x6f   : > { %v4295_v3 = vld [vmem:[#allocation5 + $0x94] ss:$12 sps:$4 sm:$0xff]   ;;  %519 = vmatpush1.bf16.msra.mxu0 %v4294_v2  ;;  %v4298_v5 = vld [vmem:[#allocation5 + $0x7c] ss:$12 sps:$4 sm:$0xff]   ;;  %v4301_v7 = vld [vmem:[#allocation5 + $0x64] ss:$12 sps:$4 sm:$0xff]  }
  0x70   : > { %520 = vmatprep.subr.bf16.mxu0 %v4295_v3  ;;  %v4303_v9 = vld [vmem:[#allocation5 + $0x60] ss:$12 sps:$4 sm:$0xff]   ;;  %v4306_v13 = vld [vmem:[#allocation5 + $0x48] ss:$12 sps:$4 sm:$0xff]   ;;  %v4316_v15 = vld [vmem:[#allocation5 + $0xb0] ss:$12 sps:$4 sm:$0xff]  }
  0x71   : > { %v318_v10 = vld [vmem:[%s4964_s7 + $0x8] sm:$0xff]  ;;  %v4307_v14 = vld [vmem:[#allocation5 + $0x34] ss:$12 sps:$4 sm:$0xff]   ;;  %v4317_v16 = vld [vmem:[#allocation5 + $0x98] ss:$12 sps:$4 sm:$0xff]   ;;  %3804 = vmatprep.subr.bf16.mxu1 %v4316_v15  ;;  %v5002_v50 = vshrl.u32 %v375_v49, 7 }
  0x72   : > { %v4304_v11 = vld [vmem:[#allocation5 + $0x4c] ss:$12 sps:$4 sm:$0xff]   ;;  %v333_v12 = vpack.c.bf16 %v318_v10, %v317_v8  ;;  %v4309_v17 = vld [vmem:[#allocation5 + $0x30] ss:$12 sps:$4 sm:$0xff]   ;;  %3805 = vmatpush3.bf16.msra.mxu1 %v4316_v15  ;;  %v4319_v22 = vld [vmem:[#allocation5 + $0x68] ss:$12 sps:$4 sm:$0xff]  }
  0x73   : > { %521 = vmatpush1.bf16.msra.mxu0 %v4297_v4  ;;  %v4310_v18 = vld [vmem:[#allocation5 + $0x1c] ss:$12 sps:$4 sm:$0xff]   ;;  %3806 = vmatprep.subr.bf16.mxu1 %v4317_v16  ;;  %v4318_v19 = vld [vmem:[#allocation5 + $0x80] ss:$12 sps:$4 sm:$0xff]   ;;  %v4312_v20 = vld [vmem:[#allocation5 + $0x18] ss:$12 sps:$4 sm:$0xff]  }
  0x74   : > { %522 = vmatprep.subr.bf16.mxu0 %v4298_v5  ;;  %3820 = vmatprep.mubr.bf16.mxu1 %v333_v12  ;;  %v4313_v21 = vld [vmem:[#allocation5 + $0x4] ss:$12 sps:$4 sm:$0xff]   ;;  %v4315_v23 = vld [vmem:[#allocation5] ss:$12 sps:$4 sm:$0xff]   ;;  %v320_v27 = vld [vmem:[%s4964_s7 + $0x18] sm:$0xff]  ;;  %v377_v51 = vsub.s32 0, %v5002_v50 }
  0x75   : > { %v4320_v24 = vld [vmem:[#allocation5 + $0x50] ss:$12 sps:$4 sm:$0xff]   ;;  %v4321_v25 = vld [vmem:[#allocation5 + $0x38] ss:$12 sps:$4 sm:$0xff]   ;;  %v4322_v28 = vld [vmem:[#allocation5 + $0x20] ss:$12 sps:$4 sm:$0xff]  }
  0x76   : > { %3807 = vmatpush3.bf16.msra.mxu1 %v4317_v16  ;;  %v319_v26 = vld [vmem:[%s4964_s7 + $0x10] sm:$0xff]  ;;  %v321_v31 = vld [vmem:[%s4964_s7 + $0x20] sm:$0xff]  ;;  %v322_v32 = vld [vmem:[%s4964_s7 + $0x28] sm:$0xff]  ;;  %v381_v53 = vsub.s32 1, %v5002_v50  ;;  %vm768_vm0 = vcmask 261120   ;;  %s4779_s9 = smov 96  }
  0x77   : > { %523 = vmatpush1.bf16.msra.mxu0 %v4300_v6  ;;  %3808 = vmatprep.subr.bf16.mxu1 %v4318_v19  ;;  %v334_v29 = vpack.c.bf16 %v320_v27, %v319_v26  ;;  %v4323_v30 = vld [vmem:[#allocation5 + $0x8] ss:$12 sps:$4 sm:$0xff]   ;;  %v335_v33 = vpack.c.bf16 %v322_v32, %v321_v31  ;;  %v324_v35 = vld [vmem:[%s4964_s7 + $0x38] sm:$0xff]  ;;  %v325_v37 = vld [vmem:[%s4964_s7 + $0x40] sm:$0xff]  ;;  %s4780_s11 = smov 64   ;;  %s4781_s12 = smov 32  }
  0x78   : > { %524 = vmatprep.subr.bf16.mxu0 %v4301_v7  ;;  %v323_v34 = vld [vmem:[%s4964_s7 + $0x30] sm:$0xff]  ;;  %v326_v38 = vld [vmem:[%s4964_s7 + $0x48] sm:$0xff]  ;;  %v328_v41 = vld [vmem:[%s4964_s7 + $0x58] sm:$0xff]  ;;  %s3436_s8 = sshll.u32 %s4960_s17, 6  ;;  %s3572_s15 = sshll.u32 %s4840_s25, 10 }
  0x79   : > { %v336_v36 = vpack.c.bf16 %v324_v35, %v323_v34  ;;  %v337_v39 = vpack.c.bf16 %v326_v38, %v325_v37  ;;  %v327_v40 = vld [vmem:[%s4964_s7 + $0x50] sm:$0xff]  ;;  %v329_v42 = vld [vmem:[%s4964_s7 + $0x60] sm:$0xff]  ;;  %v330_v43 = vld [vmem:[%s4964_s7 + $0x68] sm:$0xff]  ;;  %s6234_s20 = scalar_lea.vmem [#allocation10], %s3436_s8  ;;  %s3307_s27 = scalar_lea.sflag [#allocation4], %s4960_s17 }
  0x7a   : > { %3809 = vmatpush3.bf16.msra.mxu1 %v4318_v19  ;;  %v338_v44 = vpack.c.bf16 %v328_v41, %v327_v40  ;;  %v339_v45 = vpack.c.bf16 %v330_v43, %v329_v42  ;;  %v331_v46 = vld [vmem:[%s4964_s7 + $0x70] sm:$0xff]  ;;  %v332_v47 = vld [vmem:[%s4964_s7 + $0x78] sm:$0xff]  ;;  %v5008_v52 = vld [vmem:[%s6310_s2] sm:$0x7]  ;;  %v385_v42 = vsub.s32 2, %v5002_v50  ;;  %s3320_s30 = sshll.u32 %s6234_s20, 4  ;;  %s6259_s7 = scalar_lea.hbm %s6314_s6, %s3572_s15  ;;  %s6262_s30 = int_to_ptr.vmem [resolvable:$true] %s3320_s30 }
  0x7b   : > { %525 = vmatpush1.bf16.msra.mxu0 %v4303_v9  ;;  %3810 = vmatprep.subr.bf16.mxu1 %v4319_v22  ;;  %v340_v48 = vpack.c.bf16 %v332_v47, %v331_v46  ;;  %v5012_v55 = vrot.slane %v5008_v52, %v377_v51  ;;  %v5015_v57 = vrot.slane %v5008_v52, %v381_v53  ;;  %s4694_s29 = scalar_lea.vmem %s6262_s30, 1024  ;;  %p6350_p0 = scmp.ne.s32.totalorder %s6326_s19, 0 }
  0x7c   : > { %526 = vmatprep.subr.bf16.mxu0 %v4304_v11  ;;  %v5073_v49 = vrot.slane %v5008_v52, %v385_v42  ;;  %p4695_p12 = scmp.ne.s32.totalorder %s6262_s30, %s4694_s29  ;;  %s4782_s25 = smov [#allocation10]  }
  0x7e   : > { %3811 = vmatpush3.bf16.msra.mxu1 %v4319_v22  ;;  %p4696_p5 = pnand %p4695_p12, %p6350_p0 }
  0x7f   : > { %527 = vmatpush1.bf16.msra.mxu0 %v4306_v13  ;;  %3812 = vmatprep.subr.bf16.mxu1 %v4320_v24 }
  0x80   : > { %528 = vmatprep.subr.bf16.mxu0 %v4307_v14  ;;  %p4697_p10 = pneg %p4696_p5 }
  0x82   : > { %3813 = vmatpush3.bf16.msra.mxu1 %v4320_v24 }
  0x83   : > { %529 = vmatpush1.bf16.msra.mxu0 %v4309_v17  ;;  %3814 = vmatprep.subr.bf16.mxu1 %v4321_v25 }
  0x84   : > { %530 = vmatprep.subr.bf16.mxu0 %v4310_v18 }
  0x86   : > { %3815 = vmatpush3.bf16.msra.mxu1 %v4321_v25 }
  0x87   : > { %531 = vmatpush1.bf16.msra.mxu0 %v4312_v20  ;;  %3816 = vmatprep.subr.bf16.mxu1 %v4322_v28 }
  0x88   : > { %532 = vmatprep.subr.bf16.mxu0 %v4313_v21 }
  0x8a   : > { %3817 = vmatpush3.bf16.msra.mxu1 %v4322_v28 }
  0x8b   : > { %533 = vmatpush1.bf16.msra.mxu0 %v4315_v23  ;;  %3818 = vmatprep.subr.bf16.mxu1 %v4323_v30 }
  0x8e   : > { %551 = vmatmul.mubr.bf16.vlgmr.msra.gmra.mxu0 %v333_v12  ;;  %3819 = vmatpush3.bf16.msra.mxu1 %v4323_v30 }
  0x8f   : > { %560 = vmatprep.mubr.bf16.mxu0 %v4778_v0 }
  0x91   : > { %3821 = vmatmul.mubr.bf16.vlgmr.msra.gmra.mxu1 %v334_v29 }
  0x92   : > { %3824 = vmatprep.mubr.bf16.mxu1 %v335_v33 }
  0x96   : > { %561 = vmatmul.mubr.bf16.gmra.mxu0 %v334_v29 }
  0x97   : > { %570 = vmatprep.mubr.bf16.mxu0 %v4778_v0 }
  0x99   : > { %3825 = vmatmul.mubr.bf16.gmra.mxu1 %v336_v36 }
  0x9a   : > { %3828 = vmatprep.mubr.bf16.mxu1 %v337_v39 }
  0x9e   : > { %571 = vmatmul.mubr.bf16.gmra.mxu0 %v335_v33 }
  0x9f   : > { %580 = vmatprep.mubr.bf16.mxu0 %v4778_v0 }
  0xa1   : > { %3829 = vmatmul.mubr.bf16.gmra.mxu1 %v338_v44 }
  0xa2   : > { %3832 = vmatprep.mubr.bf16.mxu1 %v339_v45 }
  0xa6   : > { %581 = vmatmul.mubr.bf16.gmra.mxu0 %v336_v36 }
  0xa7   : > { %590 = vmatprep.mubr.bf16.mxu0 %v4778_v0 }
  0xa9   : > { %3833 = vmatmul.mubr.bf16.gmra.mxu1 %v340_v48 }
  0xae   : > { %591 = vmatmul.mubr.bf16.gmra.mxu0 %v337_v39 }
  0xaf   : > { %600 = vmatprep.mubr.bf16.mxu0 %v4778_v0 }
  0xb6   : > { %601 = vmatmul.mubr.bf16.gmra.mxu0 %v338_v44 }
  0xb7   : > { %610 = vmatprep.mubr.bf16.mxu0 %v4778_v0 }
  0xbe   : > { %611 = vmatmul.mubr.bf16.gmra.mxu0 %v339_v45 }
  0xbf   : > { %620 = vmatprep.mubr.bf16.mxu0 %v4778_v0 }
  0xc6   : > { %621 = vmatmul.mubr.bf16.gmra.mxu0 %v340_v48 }
 0x14e   : > { %v552_v54 = vpop.f32.mrf.mxu0 }
 0x14f   : > { %v553_v59 = vadd.f32 %v552_v54, %v5012_v55 }
 0x150   : > { %v554_v56 = vpop.f32.mrf.mxu0 }
 0x151   : > { %v555_v62 = vadd.f32 %v554_v56, %v5015_v57  ;;  %v5033_v12 = vpop.f32.mrf.mxu1 }
 0x152   : > { %v556_v58 = vpop.f32.mrf.mxu0 }
 0x153   : > { %v557_v60 = vadd.f32 %v556_v58, %v5012_v55  ;;  %v5038_v16 = vpop.f32.mrf.mxu1 }
 0x154   : > { %v558_v61 = vpop.f32.mrf.mxu0 }
 0x155   : > { %v5020_v63 = vpack.c.bf16 %v557_v60, %v553_v59  ;;  %v559_v0 = vadd.f32 %v558_v61, %v5015_v57  ;;  %v5040_v18 = vpop.f32.mrf.mxu1 }
 0x156   : > { %v562_v1 = vpop.f32.mrf.mxu0 }
 0x157   : > { %v5023_v2 = vpack.c.bf16 %v559_v0, %v555_v62  ;;  %v563_v3 = vadd.f32 %v562_v1, %v5012_v55  ;;  %3852 = vmatprep.mubr.msk.bf16.mxu0 %vm768_vm0, %v5020_v63  ;;  %v5043_v21 = vpop.f32.mrf.mxu1 }
 0x158   : > { %v564_v4 = vpop.f32.mrf.mxu0 }
 0x159   : > { %v565_v8 = vadd.f32 %v564_v4, %v5015_v57  ;;  %v3826_v26 = vpop.f32.mrf.mxu1 }
 0x15a   : > { %v566_v5 = vpop.f32.mrf.mxu0 }
 0x15b   : > { %v567_v6 = vadd.f32 %v566_v5, %v5012_v55  ;;  %v5054_v30 = vpop.f32.mrf.mxu1 }
 0x15c   : > { %v568_v7 = vpop.f32.mrf.mxu0 }
 0x15d   : > { %v5030_v9 = vpack.c.bf16 %v567_v6, %v563_v3  ;;  %v569_v10 = vadd.f32 %v568_v7, %v5015_v57  ;;  %v3827_v32 = vpop.f32.mrf.mxu1 }
 0x15e   : > { %v572_v11 = vpop.f32.mrf.mxu0 }
 0x15f   : > { %v5035_v13 = vpack.c.bf16 %v569_v10, %v565_v8  ;;  %v573_v14 = vadd.f32 %v572_v11, %v5012_v55  ;;  %v5059_v35 = vpop.f32.mrf.mxu1 }
 0x160   : > { %v574_v15 = vpop.f32.mrf.mxu0 }
 0x161   : > { %v575_v22 = vadd.f32 %v574_v15, %v5015_v57  ;;  %v3830_v38 = vpop.f32.mrf.mxu1 }
 0x162   : > { %v576_v17 = vpop.f32.mrf.mxu0  ;;  %v706_v52 = vadd.f32 %v3830_v38, %v5073_v49 }
 0x163   : > { %v577_v19 = vadd.f32 %v576_v17, %v5012_v55  ;;  %v697_v41 = vpop.f32.mrf.mxu1 }
 0x164   : > { %v578_v20 = vpop.f32.mrf.mxu0  ;;  %v698_v15 = vadd.f32 %v697_v41, %v5073_v49 }
 0x165   : > { %v5046_v23 = vpack.c.bf16 %v577_v19, %v573_v14  ;;  %v579_v24 = vadd.f32 %v578_v20, %v5015_v57  ;;  %v3831_v44 = vpop.f32.mrf.mxu1 }
 0x166   : > { %v582_v25 = vpop.f32.mrf.mxu0  ;;  %v709_v5 = vadd.f32 %v3831_v44, %v5073_v49  ;;  %v682_v44 = vadd.f32 %v5054_v30, %v5073_v49  ;;  %v677_v30 = vadd.f32 %v5040_v18, %v5073_v49  ;;  %v666_v18 = vadd.f32 %v5038_v16, %v5073_v49 }
 0x167   : > { %v5049_v27 = vpack.c.bf16 %v579_v24, %v575_v22  ;;  %v583_v28 = vadd.f32 %v582_v25, %v5012_v55  ;;  %v700_v47 = vpop.f32.mrf.mxu1  ;;  %v690_v25 = vadd.f32 %v3826_v26, %v5073_v49 }
 0x168   : > { %v5052_v29 = vpop.f32.mrf.mxu0  ;;  %v5095_v17 = vpack.c.bf16 %v709_v5, %v706_v52  ;;  %v701_v19 = vadd.f32 %v700_v47, %v5073_v49 }
 0x169   : > { %v3834_v53 = vpop.f32.mrf.mxu1  ;;  %v585_v5 = vadd.f32 %v5052_v29, %v5015_v57  ;;  %v794_v29 = vsel %vm768_vm0, %v5023_v2, 0 }
 0x16a   : > { %v586_v31 = vpop.f32.mrf.mxu0  ;;  %v722_v50 = vadd.f32 %v3834_v53, %v5073_v49  ;;  %v5107_v38 = vpack.c.bf16 %v701_v19, %v698_v15  ;;  %v674_v53 = vadd.f32 %v5033_v12, %v5073_v49  ;;  %v752_v15 = vld [vmem:[#allocation7] sm:$0xff] }
 0x16b   : > { %v587_v33 = vadd.f32 %v586_v31, %v5012_v55  ;;  %v713_v58 = vpop.f32.mrf.mxu1 }
 0x16c   : > { %v5057_v34 = vpop.f32.mrf.mxu0  ;;  %v714_v62 = vadd.f32 %v713_v58, %v5073_v49 }
 0x16d   : > { %v5061_v36 = vpack.c.bf16 %v587_v33, %v583_v28  ;;  %v3835_v60 = vpop.f32.mrf.mxu1  ;;  %v693_v28 = vadd.f32 %v3827_v32, %v5073_v49 }
 0x16e   : > { %v592_v37 = vpop.f32.mrf.mxu0  ;;  %v725_v0 = vadd.f32 %v3835_v60, %v5073_v49  ;;  %v669_v60 = vadd.f32 %v5043_v21, %v5073_v49 }
 0x16f   : > { %v593_v39 = vadd.f32 %v592_v37, %v5012_v55  ;;  %v716_v3 = vpop.f32.mrf.mxu1  ;;  %v5116_v32 = vpack.c.bf16 %v693_v28, %v690_v25  ;;  %v753_v28 = vld [vmem:[#allocation7 + $0x8] sm:$0xff] }
 0x170   : > { %v5064_v40 = vpop.f32.mrf.mxu0  ;;  %v5086_v6 = vpack.c.bf16 %v725_v0, %v722_v50  ;;  %v717_v7 = vadd.f32 %v716_v3, %v5073_v49  ;;  %v589_v3 = vadd.f32 %v5057_v34, %v5015_v57  ;;  %v800_v34 = vsel %vm768_vm0, %v5049_v27, 0 }
 0x172   : > { %v596_v43 = vpop.f32.mrf.mxu0  ;;  %v5090_v11 = vpack.c.bf16 %v717_v7, %v714_v62  ;;  %3868 = vmatprep.subr.bf16.mxu1 %v5086_v6  ;;  %v5156_v62 = vpack.c.bf16 %v669_v60, %v666_v18  ;;  %v5184_v7 = vpack.c.bf16 %v589_v3, %v585_v5  ;;  %v761_v5 = vld [vmem:[#allocation7 + $0x48] sm:$0xff] }
 0x173   : > { %v597_v45 = vadd.f32 %v596_v43, %v5012_v55  ;;  %3869 = vmatpush3.bf16.msra.mxu1 %v5086_v6 }
 0x174   : > { %v5068_v46 = vpop.f32.mrf.mxu0  ;;  %3870 = vmatprep.subr.bf16.mxu1 %v5090_v11 }
 0x175   : > { %v5070_v48 = vpack.c.bf16 %v597_v45, %v593_v39  ;;  %v685_v45 = vadd.f32 %v5059_v35, %v5073_v49  ;;  %v599_v0 = vadd.f32 %v5068_v46, %v5015_v57  ;;  %v803_v46 = vsel %vm768_vm0, %v5184_v7, 0 }
 0x176   : > { %v602_v51 = vpop.f32.mrf.mxu0 }
 0x177   : > { %v603_v54 = vadd.f32 %v602_v51, %v5012_v55  ;;  %3871 = vmatpush3.bf16.msra.mxu1 %v5090_v11  ;;  %v5134_v35 = vpack.c.bf16 %v685_v45, %v682_v44  ;;  %v759_v44 = vld [vmem:[#allocation7 + $0x38] sm:$0xff] }
 0x178   : > { %v5076_v56 = vpop.f32.mrf.mxu0  ;;  %3872 = vmatprep.subr.bf16.mxu1 %v5095_v17 }
 0x179   : > { %v605_v16 = vadd.f32 %v5076_v56, %v5015_v57  ;;  %v595_v56 = vadd.f32 %v5064_v40, %v5015_v57 }
 0x17a   : > { %v606_v59 = vpop.f32.mrf.mxu0 }
 0x17b   : > { %v607_v61 = vadd.f32 %v606_v59, %v5012_v55  ;;  %3873 = vmatpush3.bf16.msra.mxu1 %v5095_v17  ;;  %v5147_v59 = vpack.c.bf16 %v677_v30, %v674_v53 }
 0x17c   : > { %v608_v1 = vpop.f32.mrf.mxu0  ;;  %3874 = vmatprep.subr.bf16.mxu1 %v5107_v38 }
 0x17d   : > { %v5083_v4 = vpack.c.bf16 %v607_v61, %v603_v54  ;;  %v609_v61 = vadd.f32 %v608_v1, %v5015_v57  ;;  %v5174_v1 = vpack.c.bf16 %v599_v0, %v595_v56  ;;  %v760_v0 = vld [vmem:[#allocation7 + $0x40] sm:$0xff] }
 0x17e   : > { %v612_v8 = vpop.f32.mrf.mxu0 }
 0x17f   : > { %v613_v10 = vadd.f32 %v612_v8, %v5012_v55  ;;  %3875 = vmatpush3.bf16.msra.mxu1 %v5107_v38  ;;  %v5162_v21 = vpack.c.bf16 %v609_v61, %v605_v16  ;;  %v806_v40 = vsel %vm768_vm0, %v5174_v1, 0  ;;  %v763_v16 = vld [vmem:[#allocation7 + $0x58] sm:$0xff] }
 0x180   : > { %v614_v14 = vpop.f32.mrf.mxu0  ;;  %3876 = vmatprep.subr.bf16.mxu1 %v5116_v32 }
 0x181   : > { %v615_v31 = vadd.f32 %v614_v14, %v5015_v57  ;;  %v809_v52 = vsel %vm768_vm0, %v5162_v21, 0 }
 0x182   : > { %v616_v20 = vpop.f32.mrf.mxu0 }
 0x183   : > { %v617_v22 = vadd.f32 %v616_v20, %v5012_v55  ;;  %3877 = vmatpush3.bf16.msra.mxu1 %v5116_v32 }
 0x184   : > { %v618_v24 = vpop.f32.mrf.mxu0  ;;  %3878 = vmatprep.subr.bf16.mxu1 %v5134_v35 }
 0x185   : > { %v5104_v33 = vpack.c.bf16 %v617_v22, %v613_v10  ;;  %v619_v37 = vadd.f32 %v618_v24, %v5015_v57  ;;  %v754_v10 = vld [vmem:[#allocation7 + $0x10] sm:$0xff]  ;;  %v755_v22 = vld [vmem:[#allocation7 + $0x18] sm:$0xff] }
 0x186   : > { %v622_v39 = vpop.f32.mrf.mxu0 }
 0x187   : > { %v5110_v41 = vpack.c.bf16 %v619_v37, %v615_v31  ;;  %v623_v42 = vadd.f32 %v622_v39, %v5012_v55  ;;  %3879 = vmatpush3.bf16.msra.mxu1 %v5134_v35 }
 0x188   : > { %v624_v26 = vpop.f32.mrf.mxu0  ;;  %3880 = vmatprep.subr.bf16.mxu1 %v5147_v59 }
 0x189   : > { %1236 = vrot.lane.b32.xlu1 %v5110_v41, %s4779_s9  ;;  %v625_v54 = vadd.f32 %v624_v26, %v5015_v57  ;;  %v812_v49 = vsel %vm768_vm0, %v5110_v41, 0 }
 0x18a   : > { %v626_v43 = vpop.f32.mrf.mxu0 }
 0x18b   : > { %v627_v47 = vadd.f32 %v626_v43, %v5012_v55  ;;  %3881 = vmatpush3.bf16.msra.mxu1 %v5147_v59 }
 0x18c   : > { %v628_v51 = vpop.f32.mrf.mxu0  ;;  %3882 = vmatprep.subr.bf16.mxu1 %v5156_v62 }
 0x18d   : > { %v5128_v58 = vpack.c.bf16 %v627_v47, %v623_v42  ;;  %v629_v50 = vadd.f32 %v628_v51, %v5015_v57  ;;  %v797_v57 = vsel %vm768_vm0, %v5035_v13, 0  ;;  %v758_v42 = vld [vmem:[#allocation7 + $0x30] sm:$0xff]  ;;  %v756_v47 = vld [vmem:[#allocation7 + $0x20] sm:$0xff] }
 0x18f   : > { %v5136_v55 = vpack.c.bf16 %v629_v50, %v625_v54  ;;  %3883 = vmatpush3.bf16.msra.mxu1 %v5156_v62  ;;  %v757_v50 = vld [vmem:[#allocation7 + $0x28] sm:$0xff] }
 0x191   : > { %1238 = vrot.lane.b32.xlu0 %v5136_v55, %s4779_s9  ;;  %4172 = vmatprep.subr.msk.bf16.mxu0 %vm768_vm0, %v5136_v55  ;;  %v815_v12 = vsel %vm768_vm0, %v5136_v55, 0 }
 0x192   : > { %3837 = vmatpush3.bf16.xpose.msra.mxu0 %v815_v12  ;;  %v762_v12 = vld [vmem:[#allocation7 + $0x50] sm:$0xff] }
 0x193   : > { %4173 = vmatprep.subr.msk.bf16.mxu0 %vm768_vm0, %v5110_v41 }
 0x19a   : > { %3839 = vmatpush3.bf16.xpose.msra.mxu0 %v812_v49 }
 0x19b   : > { %4174 = vmatprep.subr.msk.bf16.mxu0 %vm768_vm0, %v5162_v21 }
 0x1a2   : > { %3841 = vmatpush3.bf16.xpose.msra.mxu0 %v809_v52 }
 0x1a3   : > { %4175 = vmatprep.subr.msk.bf16.mxu0 %vm768_vm0, %v5174_v1 }
 0x1aa   : > { %3843 = vmatpush3.bf16.xpose.msra.mxu0 %v806_v40 }
 0x1ab   : > { %4176 = vmatprep.subr.msk.bf16.mxu0 %vm768_vm0, %v5184_v7 }
 0x1b2   : > { %3845 = vmatpush3.bf16.xpose.msra.mxu0 %v803_v46  ;;  %v766_v46 = vld [vmem:[#allocation7 + $0x70] sm:$0xff] }
 0x1b3   : > { %4177 = vmatprep.subr.msk.bf16.mxu0 %vm768_vm0, %v5049_v27 }
 0x1ba   : > { %3847 = vmatpush3.bf16.xpose.msra.mxu0 %v800_v34 }
 0x1bb   : > { %4178 = vmatprep.subr.msk.bf16.mxu0 %vm768_vm0, %v5035_v13 }
 0x1c2   : > { %3849 = vmatpush3.bf16.xpose.msra.mxu0 %v797_v57 }
 0x1c3   : > { %4179 = vmatprep.subr.msk.bf16.mxu0 %vm768_vm0, %v5023_v2 }
 0x1ca   : > { %3851 = vmatpush3.bf16.xpose.msra.mxu0 %v794_v29 }
 0x1d1   : > { %3853 = vmatmul.mubr.msk.bf16.vlgmr.msra.gmra.mxu0 %vm768_vm0, %v5030_v9 }
 0x1d2   : > { %3856 = vmatprep.mubr.msk.bf16.mxu0 %vm768_vm0, %v5046_v23 }
 0x1d9   : > { %3857 = vmatmul.mubr.msk.bf16.gmra.mxu0 %vm768_vm0, %v5061_v36 }
 0x1da   : > { %3860 = vmatprep.mubr.msk.bf16.mxu0 %vm768_vm0, %v5070_v48 }
 0x1e1   : > { %3861 = vmatmul.mubr.msk.bf16.gmra.mxu0 %vm768_vm0, %v5083_v4 }
 0x1e2   : > { %3864 = vmatprep.mubr.msk.bf16.mxu0 %vm768_vm0, %v5104_v33 }
 0x1e9   : > { %3865 = vmatmul.mubr.msk.bf16.gmra.mxu0 %vm768_vm0, %v5128_v58 }
 0x203   : > { %v5218_v8 = vpop.permute.xlu0 %1238 }
 0x204   : > { %4180 = vmatprep.subr.msk.bf16.mxu1 %vm768_vm0, %v5218_v8 }
 0x291   : > { %v3854_v14 = vpop.f32.mrf.mxu0 }
 0x292   : > { %v5222_v19 = vadd.f32 %v3854_v14, %v754_v10  ;;  %v764_v14 = vld [vmem:[#allocation7 + $0x60] sm:$0xff] }
 0x293   : > { %v851_v20 = vpop.f32.mrf.mxu0 }
 0x294   : > { %v5224_v24 = vadd.f32 %v851_v20, %v752_v15  ;;  %918 = vmax.xlane.f32.xlu1 %v5222_v19  ;;  %v767_v20 = vld [vmem:[#allocation7 + $0x78] sm:$0xff] }
 0x295   : > { %v3855_v25 = vpop.f32.mrf.mxu0 }
 0x296   : > { %v5227_v31 = vadd.f32 %v3855_v25, %v755_v22  ;;  %914 = vmax.xlane.f32.xlu0 %v5224_v24 }
 0x297   : > { %v854_v37 = vpop.f32.mrf.mxu0 }
 0x298   : > { %v5230_v39 = vadd.f32 %v854_v37, %v753_v28  ;;  %920 = vmax.xlane.f32.xlu1 %v5227_v31  ;;  %v765_v37 = vld [vmem:[#allocation7 + $0x68] sm:$0xff] }
 0x299   : > { %v3858_v26 = vpop.f32.mrf.mxu0 }
 0x29a   : > { %916 = vmax.xlane.f32.xlu0 %v5230_v39  ;;  %v5234_v45 = vadd.f32 %v3858_v26, %v758_v42  ;;  %v5274_v26 = vpop.permute.xlu1 %1236 }
 0x29b   : > { %v867_v43 = vpop.f32.mrf.mxu0 }
 0x29c   : > { %v5239_v30 = vadd.f32 %v867_v43, %v756_v47 }
 0x29d   : > { %v3859_v51 = vpop.f32.mrf.mxu0 }
 0x29e   : > { %v5236_v53 = vadd.f32 %v3859_v51, %v759_v44  ;;  %926 = vmax.xlane.f32.xlu0 %v5234_v45 }
 0x29f   : > { %v870_v54 = vpop.f32.mrf.mxu0 }
 0x2a0   : > { %928 = vmax.xlane.f32.xlu1 %v5236_v53  ;;  %v5242_v60 = vadd.f32 %v870_v54, %v757_v50 }
 0x2a1   : > { %v3862_v18 = vpop.f32.mrf.mxu0 }
 0x2a2   : > { %922 = vmax.xlane.f32.xlu0 %v5239_v30  ;;  %v5245_v49 = vadd.f32 %v3862_v18, %v762_v12 }
 0x2a3   : > { %v883_v61 = vpop.f32.mrf.mxu0 }
 0x2a4   : > { %924 = vmax.xlane.f32.xlu1 %v5242_v60  ;;  %v5251_v40 = vadd.f32 %v883_v61, %v760_v0 }
 0x2a5   : > { %v3863_v56 = vpop.f32.mrf.mxu0 }
 0x2a6   : > { %v5248_v52 = vadd.f32 %v3863_v56, %v763_v16  ;;  %934 = vmax.xlane.f32.xlu0 %v5245_v49 }
 0x2a7   : > { %v886_v3 = vpop.f32.mrf.mxu0 }
 0x2a8   : > { %936 = vmax.xlane.f32.xlu1 %v5248_v52  ;;  %v5254_v57 = vadd.f32 %v886_v3, %v761_v5 }
 0x2a9   : > { %v3866_v34 = vpop.f32.mrf.mxu0 }
 0x2aa   : > { %930 = vmax.xlane.f32.xlu0 %v5251_v40  ;;  %v5257_v29 = vadd.f32 %v3866_v34, %v766_v46 }
 0x2ab   : > { %v899_v10 = vpop.f32.mrf.mxu0 }
 0x2ac   : > { %932 = vmax.xlane.f32.xlu1 %v5254_v57  ;;  %v5261_v15 = vadd.f32 %v899_v10, %v764_v14 }
 0x2ad   : > { %v3867_v22 = vpop.f32.mrf.mxu0 }
 0x2ae   : > { %942 = vmax.xlane.f32.xlu0 %v5257_v29  ;;  %v5268_v25 = vadd.f32 %v3867_v22, %v767_v20 }
 0x2af   : > { %v902_v28 = vpop.f32.mrf.mxu0 }
 0x2b0   : > { %v5271_v42 = vadd.f32 %v902_v28, %v765_v37 }
 0x2b2   : > { %938 = vmax.xlane.f32.xlu0 %v5261_v15 }
 0x2bd   : > { %1232 = vrot.lane.b32.xlu1 %v5174_v1, %s4779_s9 }
 0x2c8   : > { %1234 = vrot.lane.b32.xlu0 %v5162_v21, %s4779_s9 }
 0x2e1   : > { %944 = vmax.xlane.f32.xlu1 %v5268_v25 }
 0x2e5   : > { %940 = vmax.xlane.f32.xlu1 %v5271_v42 }
 0x31d   : > { %v919_v43 = vpop.xlane.xlu1 %918 }
 0x31e   : > { %v948_v44 = vsub.f32 %v5222_v19, %v919_v43 }
 0x31f   : > { %v915_v47 = vpop.xlane.xlu0 %914 }
 0x320   : > { %v966_v51 = vmul.f32 1.442695, %v948_v44  ;;  %v946_v54 = vsub.f32 %v5224_v24, %v915_v47 }
 0x321   : > { %v921_v50 = vpop.xlane.xlu1 %920 }
 0x322   : > { %4332 = vpow2.f32 %v966_v51  ;;  %v962_v12 = vmul.f32 1.442695, %v946_v54  ;;  %v949_v18 = vsub.f32 %v5227_v31, %v921_v50 }
 0x323   : > { %v917_v61 = vpop.xlane.xlu0 %916 }
 0x324   : > { %v968_v16 = vmul.f32 1.442695, %v949_v18  ;;  %v947_v0 = vsub.f32 %v5230_v39, %v917_v61  ;;  %4334 = vpow2.f32 %v962_v12 }
 0x326   : > { %4336 = vpow2.f32 %v968_v16  ;;  %v964_v56 = vmul.f32 1.442695, %v947_v0 }
 0x327   : > { %v927_v39 = vpop.xlane.xlu0 %926 }
 0x328   : > { %4338 = vpow2.f32 %v964_v56  ;;  %v952_v14 = vsub.f32 %v5234_v45, %v927_v39 }
 0x329   : > { %v929_v34 = vpop.xlane.xlu1 %928 }
 0x32a   : > { %v974_v37 = vmul.f32 1.442695, %v952_v14  ;;  %v953_v44 = vsub.f32 %v5236_v53, %v929_v34 }
 0x32b   : > { %v923_v5 = vpop.xlane.xlu0 %922 }
 0x32c   : > { %v950_v22 = vsub.f32 %v5239_v30, %v923_v5  ;;  %4340 = vpow2.f32 %v974_v37  ;;  %v976_v18 = vmul.f32 1.442695, %v953_v44 }
 0x32d   : > { %v925_v20 = vpop.xlane.xlu1 %924 }
 0x32e   : > { %v951_v43 = vsub.f32 %v5242_v60, %v925_v20  ;;  %v970_v47 = vmul.f32 1.442695, %v950_v22 }
 0x32f   : > { %v5280_v3 = vpop.eup %4332  ;;  %v935_v46 = vpop.xlane.xlu0 %934 }
 0x330   : > { %998 = vadd.xlane.f32.xlu0 %v5280_v3  ;;  %v972_v54 = vmul.f32 1.442695, %v951_v43  ;;  %4342 = vpow2.f32 %v970_v47  ;;  %v956_v45 = vsub.f32 %v5245_v49, %v935_v46 }
 0x331   : > { %v5283_v19 = vpop.eup %4334  ;;  %v937_v51 = vpop.xlane.xlu1 %936 }
 0x332   : > { %4344 = vpow2.f32 %v972_v54  ;;  %v982_v60 = vmul.f32 1.442695, %v956_v45  ;;  %v957_v56 = vsub.f32 %v5248_v52, %v937_v51 }
 0x333   : > { %v5285_v24 = vpop.eup %4336  ;;  %v931_v10 = vpop.xlane.xlu0 %930  ;;  %4346 = vpow2.f32 %v976_v18 }
 0x334   : > { %1000 = vadd.xlane.f32.xlu1 %v5285_v24  ;;  %994 = vadd.xlane.f32.xlu0 %v5283_v19  ;;  %v954_v53 = vsub.f32 %v5251_v40, %v931_v10  ;;  %v984_v49 = vmul.f32 1.442695, %v957_v56 }
 0x335   : > { %v5289_v31 = vpop.eup %4338  ;;  %v933_v16 = vpop.xlane.xlu1 %932 }
 0x336   : > { %v978_v39 = vmul.f32 1.442695, %v954_v53  ;;  %v955_v40 = vsub.f32 %v5254_v57, %v933_v16 }
 0x337   : > { %v943_v28 = vpop.xlane.xlu0 %942 }
 0x338   : > { %996 = vadd.xlane.f32.xlu1 %v5289_v31  ;;  %v960_v50 = vsub.f32 %v5257_v29, %v943_v28  ;;  %v980_v22 = vmul.f32 1.442695, %v955_v40 }
 0x339   : > { %v5305_v29 = vpop.permute.xlu1 %1232  ;;  %v5307_v5 = vpop.eup %4340 }
 0x33a   : > { %v990_v61 = vmul.f32 1.442695, %v960_v50 }
 0x33b   : > { %v939_v12 = vpop.xlane.xlu0 %938 }
 0x33c   : > { %v958_v30 = vsub.f32 %v5261_v15, %v939_v12  ;;  %4348 = vpow2.f32 %v990_v61 }
 0x33d   : > { %4350 = vpow2.f32 %v982_v60  ;;  %v5310_v46 = vpop.eup %4342 }
 0x33e   : > { %v986_v0 = vmul.f32 1.442695, %v958_v30 }
 0x33f   : > { %v5314_v10 = vpop.eup %4344  ;;  %v1235_v50 = vpop.permute.xlu0 %1234 }
 0x340   : > { %4352 = vpow2.f32 %v986_v0  ;;  %v5318_v20 = vpop.eup %4346 }
 0x341   : > { %4354 = vpow2.f32 %v978_v39 }
 0x342   : > { %4356 = vpow2.f32 %v984_v49 }
 0x349   : > { %1228 = vrot.lane.b32.xlu1 %v5049_v27, %s4779_s9  ;;  %v5321_v37 = vpop.eup %4348 }
 0x34a   : > { %1230 = vrot.lane.b32.xlu0 %v5184_v7, %s4779_s9  ;;  %v5325_v57 = vpop.eup %4350 }
 0x34d   : > { %v5327_v43 = vpop.eup %4352 }
 0x34e   : > { %v5331_v44 = vpop.eup %4354 }
 0x369   : > { %1006 = vadd.xlane.f32.xlu0 %v5307_v5 }
 0x36a   : > { %v945_v15 = vpop.xlane.xlu1 %944 }
 0x36b   : > { %v961_v34 = vsub.f32 %v5268_v25, %v945_v15 }
 0x36d   : > { %v992_v52 = vmul.f32 1.442695, %v961_v34  ;;  %1004 = vadd.xlane.f32.xlu0 %v5314_v10  ;;  %1002 = vadd.xlane.f32.xlu1 %v5310_v46  ;;  %v1286_v34 = vsel %vm768_vm0, %v5218_v8, 0 }
 0x36e   : > { %v941_v14 = vpop.xlane.xlu1 %940 }
 0x36f   : > { %4358 = vpow2.f32 %v992_v52  ;;  %v959_v28 = vsub.f32 %v5271_v42, %v941_v14  ;;  %v5334_v42 = vpop.eup %4356 }
 0x370   : > { %4360 = vpow2.f32 %v980_v22 }
 0x371   : > { %1008 = vadd.xlane.f32.xlu1 %v5318_v20  ;;  %1022 = vadd.xlane.f32.xlu0 %v5321_v37  ;;  %v988_v25 = vmul.f32 1.442695, %v959_v28 }
 0x373   : > { %4362 = vpow2.f32 %v988_v25 }
 0x375   : > { %1014 = vadd.xlane.f32.xlu1 %v5325_v57  ;;  %1018 = vadd.xlane.f32.xlu0 %v5327_v43 }
 0x379   : > { %1010 = vadd.xlane.f32.xlu1 %v5331_v44 }
 0x37c   : > { %v5336_v47 = vpop.eup %4358 }
 0x37d   : > { %1016 = vadd.xlane.f32.xlu1 %v5334_v42  ;;  %1024 = vadd.xlane.f32.xlu0 %v5336_v47  ;;  %v5340_v51 = vpop.eup %4360 }
 0x380   : > { %v5343_v54 = vpop.eup %4362 }
 0x381   : > { %1012 = vadd.xlane.f32.xlu1 %v5340_v51 }
 0x385   : > { %1020 = vadd.xlane.f32.xlu1 %v5343_v54 }
 0x393   : > { %1226 = vrot.lane.b32.xlu0 %v5035_v13, %s4779_s9 }
 0x396   : > { %1224 = vrot.lane.b32.xlu1 %v5023_v2, %s4779_s9 }
 0x397   : > { %1200 = vrot.lane.b32.xlu0 %v5020_v63, %s4779_s9 }
 0x39a   : > { %1202 = vrot.lane.b32.xlu1 %v5030_v9, %s4779_s9 }
 0x39b   : > { %1204 = vrot.lane.b32.xlu0 %v5046_v23, %s4779_s9 }
 0x39e   : > { %1206 = vrot.lane.b32.xlu1 %v5061_v36, %s4779_s9 }
 0x39f   : > { %1208 = vrot.lane.b32.xlu0 %v5070_v48, %s4779_s9 }
 0x3a2   : > { %1210 = vrot.lane.b32.xlu1 %v5083_v4, %s4779_s9 }
 0x3a3   : > { %1212 = vrot.lane.b32.xlu0 %v5104_v33, %s4779_s9 }
 0x3a6   : > { %1214 = vrot.lane.b32.xlu1 %v5128_v58, %s4779_s9 }
 0x3aa   : > { %1557 = vrot.lane.b32.xlu1 %v5090_v11, %s4779_s9 }
 0x3b9   : > { %v999_v12 = vpop.xlane.xlu0 %998 }
 0x3bd   : > { %v1001_v18 = vpop.xlane.xlu1 %1000  ;;  %v995_v45 = vpop.xlane.xlu0 %994 }
 0x3be   : > { %4364 = vrcp.f32 %v1001_v18 }
 0x3bf   : > { %4366 = vrcp.f32 %v995_v45 }
 0x3c0   : > { %4368 = vrcp.f32 %v999_v12 }
 0x3c1   : > { %v997_v61 = vpop.xlane.xlu1 %996  ;;  %v1231_v8 = vpop.permute.xlu0 %1230 }
 0x3c2   : > { %4370 = vrcp.f32 %v997_v61 }
 0x3cb   : > { %v4365_v30 = vpop.eup %4364 }
 0x3cc   : > { %v4367_v16 = vpop.eup %4366  ;;  %v1045_v0 = vmul.f32 %v4365_v30, %v5285_v24  ;;  %v1283_v24 = vsel %vm768_vm0, %v5274_v26, 0 }
 0x3cd   : > { %v4369_v60 = vpop.eup %4368  ;;  %v1042_v56 = vmul.f32 %v4367_v16, %v5283_v19  ;;  %v1280_v19 = vsel %vm768_vm0, %v1235_v50, 0 }
 0x3ce   : > { %v1044_v49 = vmul.f32 %v4369_v60, %v5280_v3  ;;  %v1277_v3 = vsel %vm768_vm0, %v5305_v29, 0 }
 0x3cf   : > { %v4371_v53 = vpop.eup %4370 }
 0x3d0   : > { %v1043_v39 = vmul.f32 %v4371_v53, %v5289_v31  ;;  %v1059_v40 = vpack.c.bf16 %v1045_v0, %v1044_v49  ;;  %v1229_v31 = vpop.permute.xlu1 %1228 }
 0x3d2   : > { %v1058_v15 = vpack.c.bf16 %v1043_v39, %v1042_v56 }
 0x3d4   : > { %3884 = vmatprep.mubr.bf16.mxu1 %v1058_v15 }
 0x3d5   : > { %3885 = vmatmul.mubr.bf16.vlgmr.msra.gmra.mxu1 %v1059_v40 }
 0x3d6   : > { %3901 = vmatpush3.bf16.xpose.msra.mxu1 %v1286_v34 }
 0x3d7   : > { %4181 = vmatprep.subr.msk.bf16.mxu1 %vm768_vm0, %v5274_v26  ;;  %v1274_v26 = vsel %vm768_vm0, %v1231_v8, 0 }
 0x3de   : > { %3903 = vmatpush3.bf16.xpose.msra.mxu1 %v1283_v24 }
 0x3df   : > { %4182 = vmatprep.subr.msk.bf16.mxu1 %vm768_vm0, %v1235_v50 }
 0x3e6   : > { %3905 = vmatpush3.bf16.xpose.msra.mxu1 %v1280_v19 }
 0x3e7   : > { %4183 = vmatprep.subr.msk.bf16.mxu1 %vm768_vm0, %v5305_v29  ;;  %v1271_v29 = vsel %vm768_vm0, %v1229_v31, 0 }
 0x3ee   : > { %3907 = vmatpush3.bf16.xpose.msra.mxu1 %v1277_v3 }
 0x3ef   : > { %4184 = vmatprep.subr.msk.bf16.mxu1 %vm768_vm0, %v1231_v8  ;;  %v4324_v8 = vld [vmem:[#allocation8 + $0x8] sm:$0xff]  }
 0x3f2   : > { %v1007_v52 = vpop.xlane.xlu0 %1006 }
 0x3f6   : > { %3909 = vmatpush3.bf16.xpose.msra.mxu1 %v1274_v26  ;;  %v1003_v14 = vpop.xlane.xlu1 %1002  ;;  %v1005_v22 = vpop.xlane.xlu0 %1004 }
 0x3f7   : > { %4372 = vrcp.f32 %v1003_v14  ;;  %4185 = vmatprep.subr.msk.bf16.mxu1 %vm768_vm0, %v1229_v31 }
 0x3f8   : > { %4374 = vrcp.f32 %v1005_v22 }
 0x3f9   : > { %4376 = vrcp.f32 %v1007_v52 }
 0x3fa   : > { %v1009_v28 = vpop.xlane.xlu1 %1008  ;;  %v1023_v25 = vpop.xlane.xlu0 %1022 }
 0x3fb   : > { %4378 = vrcp.f32 %v1009_v28 }
 0x3fe   : > { %3911 = vmatpush3.bf16.xpose.msra.mxu1 %v1271_v29  ;;  %v1015_v50 = vpop.xlane.xlu1 %1014  ;;  %v1019_v12 = vpop.xlane.xlu0 %1018 }
 0x402   : > { %v1011_v18 = vpop.xlane.xlu1 %1010 }
 0x404   : > { %v4373_v45 = vpop.eup %4372 }
 0x405   : > { %v4375_v61 = vpop.eup %4374  ;;  %v1046_v30 = vmul.f32 %v4373_v45, %v5310_v46 }
 0x406   : > { %v4377_v16 = vpop.eup %4376  ;;  %v1017_v60 = vpop.xlane.xlu1 %1016  ;;  %v1047_v0 = vmul.f32 %v4375_v61, %v5314_v10 }
 0x407   : > { %v1025_v53 = vpop.xlane.xlu0 %1024  ;;  %4380 = vrcp.f32 %v1017_v60  ;;  %v1048_v49 = vmul.f32 %v4377_v16, %v5307_v5 }
 0x408   : > { %v4379_v56 = vpop.eup %4378  ;;  %v1060_v39 = vpack.c.bf16 %v1047_v0, %v1046_v30  ;;  %4382 = vrcp.f32 %v1011_v18 }
 0x409   : > { %v1049_v15 = vmul.f32 %v4379_v56, %v5318_v20  ;;  %4384 = vrcp.f32 %v1015_v50 }
 0x40a   : > { %3888 = vmatprep.mubr.bf16.mxu1 %v1060_v39  ;;  %v1013_v40 = vpop.xlane.xlu1 %1012 }
 0x40b   : > { %v1227_v34 = vpop.permute.xlu0 %1226  ;;  %4386 = vrcp.f32 %v1013_v40  ;;  %v1061_v24 = vpack.c.bf16 %v1049_v15, %v1048_v49 }
 0x40c   : > { %4186 = vmatprep.subr.msk.bf16.mxu1 %vm768_vm0, %v1227_v34  ;;  %v1268_v46 = vsel %vm768_vm0, %v1227_v34, 0  ;;  %4388 = vrcp.f32 %v1019_v12 }
 0x40d   : > { %3913 = vmatpush3.bf16.xpose.msra.mxu1 %v1268_v46 }
 0x40e   : > { %3889 = vmatmul.mubr.bf16.gmra.mxu1 %v1061_v24  ;;  %v1021_v10 = vpop.xlane.xlu1 %1020 }
 0x40f   : > { %4390 = vrcp.f32 %v1021_v10  ;;  %v1201_v60 = vpop.permute.xlu0 %1200 }
 0x410   : > { %4392 = vrcp.f32 %v1025_v53 }
 0x411   : > { %4394 = vrcp.f32 %v1023_v25 }
 0x412   : > { %v1225_v5 = vpop.permute.xlu1 %1224 }
 0x413   : > { %4187 = vmatprep.subr.msk.bf16.mxu1 %vm768_vm0, %v1225_v5  ;;  %v1265_v20 = vsel %vm768_vm0, %v1225_v5, 0  ;;  %v1205_v0 = vpop.permute.xlu0 %1204 }
 0x414   : > { %v4381_v19 = vpop.eup %4380 }
 0x415   : > { %3915 = vmatpush3.bf16.xpose.msra.mxu1 %v1265_v20  ;;  %v4383_v3 = vpop.eup %4382  ;;  %v1053_v26 = vmul.f32 %v4381_v19, %v5334_v42 }
 0x416   : > { %v4385_v31 = vpop.eup %4384  ;;  %3984 = vmatprep.subr.bf16.mxu1 %v4324_v8  ;;  %v1050_v14 = vmul.f32 %v4383_v3, %v5331_v44  ;;  %v1203_v53 = vpop.permute.xlu1 %1202 }
 0x417   : > { %v1052_v25 = vmul.f32 %v4385_v31, %v5325_v57  ;;  %v4325_v57 = vld [vmem:[#allocation8] sm:$0xff]  }
 0x418   : > { %v4387_v52 = vpop.eup %4386 }
 0x419   : > { %v1051_v22 = vmul.f32 %v4387_v52, %v5340_v51  ;;  %v4389_v28 = vpop.eup %4388  ;;  %v1063_v12 = vpack.c.bf16 %v1053_v26, %v1052_v25 }
 0x41a   : > { %v1054_v45 = vmul.f32 %v4389_v28, %v5327_v43  ;;  %v1207_v43 = vpop.permute.xlu1 %1206 }
 0x41b   : > { %v1062_v29 = vpack.c.bf16 %v1051_v22, %v1050_v14 }
 0x41c   : > { %v4391_v50 = vpop.eup %4390 }
 0x41d   : > { %v4393_v18 = vpop.eup %4392  ;;  %3892 = vmatprep.mubr.bf16.mxu1 %v1062_v29  ;;  %v1055_v61 = vmul.f32 %v4391_v50, %v5343_v54 }
 0x41e   : > { %3893 = vmatmul.mubr.bf16.gmra.mxu1 %v1063_v12  ;;  %v4395_v30 = vpop.eup %4394  ;;  %v1057_v16 = vmul.f32 %v4393_v18, %v5336_v47  ;;  %v1209_v47 = vpop.permute.xlu0 %1208  ;;  %v1178_v12 = vld [vmem:[#allocation7 + $0x90] sm:$0xff] }
 0x41f   : > { %v1064_v42 = vpack.c.bf16 %v1055_v61, %v1054_v45  ;;  %v1056_v44 = vmul.f32 %v4395_v30, %v5321_v37  ;;  %v1211_v37 = vpop.permute.xlu1 %1210 }
 0x421   : > { %3896 = vmatprep.mubr.bf16.mxu1 %v1064_v42  ;;  %v1065_v51 = vpack.c.bf16 %v1057_v16, %v1056_v44  ;;  %v1176_v16 = vld [vmem:[#allocation7 + $0x80] sm:$0xff] }
 0x422   : > { %v1213_v54 = vpop.permute.xlu0 %1212 }
 0x423   : > { %v1215_v56 = vpop.permute.xlu1 %1214 }
 0x426   : > { %3897 = vmatmul.mubr.bf16.gmra.mxu1 %v1065_v51  ;;  %v1177_v51 = vld [vmem:[#allocation7 + $0x88] sm:$0xff] }
 0x427   : > { %3916 = vmatprep.mubr.msk.bf16.mxu1 %vm768_vm0, %v1201_v60 }
 0x42e   : > { %3917 = vmatmul.mubr.msk.bf16.vlgmr.msra.gmra.mxu1 %vm768_vm0, %v1203_v53 }
 0x42f   : > { %3920 = vmatprep.mubr.msk.bf16.mxu1 %vm768_vm0, %v1205_v0  ;;  %3985 = vmatpush3.bf16.msra.mxu1 %v4324_v8 }
 0x430   : > { %3986 = vmatprep.subr.bf16.mxu1 %v4325_v57 }
 0x433   : > { %3987 = vmatpush3.bf16.msra.mxu1 %v4325_v57  ;;  %v1179_v57 = vld [vmem:[#allocation7 + $0x98] sm:$0xff] }
 0x436   : > { %3921 = vmatmul.mubr.msk.bf16.gmra.mxu1 %vm768_vm0, %v1207_v43 }
 0x437   : > { %3924 = vmatprep.mubr.msk.bf16.mxu1 %vm768_vm0, %v1209_v47 }
 0x43e   : > { %3925 = vmatmul.mubr.msk.bf16.gmra.mxu1 %vm768_vm0, %v1211_v37 }
 0x43f   : > { %3928 = vmatprep.mubr.msk.bf16.mxu1 %vm768_vm0, %v1213_v54  ;;  %v1183_v54 = vld [vmem:[#allocation7 + $0xb8] sm:$0xff] }
 0x446   : > { %3929 = vmatmul.mubr.msk.bf16.gmra.mxu1 %vm768_vm0, %v1215_v56 }
 0x495   : > { %v3886_v39 = vpop.f32.mrf.mxu1 }
 0x497   : > { %v1100_v49 = vpop.f32.mrf.mxu1 }
 0x499   : > { %v3887_v15 = vpop.f32.mrf.mxu1 }
 0x49a   : > { %v1164_v46 = vpack.c.bf16 %v3887_v15, %v3886_v39  ;;  %v1181_v15 = vld [vmem:[#allocation7 + $0xa8] sm:$0xff] }
 0x49b   : > { %v1103_v40 = vpop.f32.mrf.mxu1 }
 0x49c   : > { %v1163_v34 = vpack.c.bf16 %v1103_v40, %v1100_v49 }
 0x49e   : > { %3988 = vmatprep.mubr.msk.bf16.mxu1 %vm768_vm0, %v1163_v34 }
 0x49f   : > { %3989 = vmatmul.mubr.msk.bf16.vlgmr.msra.gmra.mxu1 %vm768_vm0, %v1164_v46 }
 0x4ce   : > { %v3890_v24 = vpop.f32.mrf.mxu1 }
 0x4d0   : > { %v1116_v10 = vpop.f32.mrf.mxu1 }
 0x4d2   : > { %v3891_v5 = vpop.f32.mrf.mxu1 }
 0x4d3   : > { %v1166_v3 = vpack.c.bf16 %v3891_v5, %v3890_v24  ;;  %v1187_v24 = vld [vmem:[#allocation7 + $0xd8] sm:$0xff] }
 0x4d4   : > { %v1119_v20 = vpop.f32.mrf.mxu1 }
 0x4d5   : > { %v1165_v19 = vpack.c.bf16 %v1119_v20, %v1116_v10 }
 0x4d7   : > { %3992 = vmatprep.mubr.msk.bf16.mxu1 %vm768_vm0, %v1165_v19  ;;  %v1185_v19 = vld [vmem:[#allocation7 + $0xc8] sm:$0xff] }
 0x4d8   : > { %3993 = vmatmul.mubr.msk.bf16.gmra.mxu1 %vm768_vm0, %v1166_v3 }
 0x4de   : > { %v3894_v8 = vpop.f32.mrf.mxu1 }
 0x4e0   : > { %v1132_v31 = vpop.f32.mrf.mxu1 }
 0x4e2   : > { %v3895_v52 = vpop.f32.mrf.mxu1 }
 0x4e3   : > { %v1168_v22 = vpack.c.bf16 %v3895_v52, %v3894_v8  ;;  %v1191_v52 = vld [vmem:[#allocation7 + $0xf8] sm:$0xff] }
 0x4e4   : > { %v1135_v26 = vpop.f32.mrf.mxu1 }
 0x4e5   : > { %v1167_v14 = vpack.c.bf16 %v1135_v26, %v1132_v31 }
 0x4e6   : > { %v3898_v28 = vpop.f32.mrf.mxu1 }
 0x4e7   : > { %3996 = vmatprep.mubr.msk.bf16.mxu1 %vm768_vm0, %v1167_v14 }
 0x4e8   : > { %v1148_v25 = vpop.f32.mrf.mxu1  ;;  %3997 = vmatmul.mubr.msk.bf16.gmra.mxu1 %vm768_vm0, %v1168_v22 }
 0x4ea   : > { %v3899_v29 = vpop.f32.mrf.mxu1 }
 0x4eb   : > { %v1170_v45 = vpack.c.bf16 %v3899_v29, %v3898_v28  ;;  %v1189_v28 = vld [vmem:[#allocation7 + $0xe8] sm:$0xff]  ;;  %v1182_v29 = vld [vmem:[#allocation7 + $0xb0] sm:$0xff] }
 0x4ec   : > { %v1151_v50 = vpop.f32.mrf.mxu1 }
 0x4ed   : > { %v1169_v18 = vpack.c.bf16 %v1151_v50, %v1148_v25 }
 0x4ee   : > { %v3918_v61 = vpop.f32.mrf.mxu1 }
 0x4ef   : > { %v5418_v30 = vadd.f32 %v3918_v61, %v1178_v12  ;;  %4000 = vmatprep.mubr.msk.bf16.mxu1 %vm768_vm0, %v1169_v18  ;;  %v1180_v12 = vld [vmem:[#allocation7 + $0xa0] sm:$0xff] }
 0x4f0   : > { %v1322_v42 = vpop.f32.mrf.mxu1  ;;  %4001 = vmatmul.mubr.msk.bf16.gmra.mxu1 %vm768_vm0, %v1170_v45  ;;  %v1186_v45 = vld [vmem:[#allocation7 + $0xd0] sm:$0xff] }
 0x4f1   : > { %1389 = vmax.xlane.f32.xlu0 %v5418_v30  ;;  %v5423_v60 = vadd.f32 %v1322_v42, %v1176_v16  ;;  %v1184_v42 = vld [vmem:[#allocation7 + $0xc0] sm:$0xff] }
 0x4f2   : > { %v3919_v44 = vpop.f32.mrf.mxu1 }
 0x4f3   : > { %v5428_v47 = vadd.f32 %v3919_v44, %v1179_v57  ;;  %v1190_v44 = vld [vmem:[#allocation7 + $0xf0] sm:$0xff]  ;;  %v1188_v57 = vld [vmem:[#allocation7 + $0xe0] sm:$0xff] }
 0x4f4   : > { %v1325_v53 = vpop.f32.mrf.mxu1 }
 0x4f5   : > { %v5425_v0 = vadd.f32 %v1325_v53, %v1177_v51  ;;  %1385 = vmax.xlane.f32.xlu0 %v5423_v60 }
 0x4f6   : > { %v3922_v43 = vpop.f32.mrf.mxu1 }
 0x4f7   : > { %1387 = vmax.xlane.f32.xlu1 %v5425_v0  ;;  %v5454_v50 = vadd.f32 %v3922_v43, %v1182_v29 }
 0x4f8   : > { %v1338_v37 = vpop.f32.mrf.mxu1 }
 0x4f9   : > { %1391 = vmax.xlane.f32.xlu0 %v5428_v47  ;;  %v1339_v18 = vadd.f32 %v1338_v37, %v1180_v12 }
 0x4fa   : > { %v3923_v56 = vpop.f32.mrf.mxu1 }
 0x4fb   : > { %v5432_v39 = vadd.f32 %v3923_v56, %v1183_v54  ;;  %v1558_v54 = vpop.permute.xlu1 %1557 }
 0x4fc   : > { %v1341_v49 = vpop.f32.mrf.mxu1 }
 0x4fd   : > { %1399 = vmax.xlane.f32.xlu1 %v5432_v39  ;;  %v5435_v34 = vadd.f32 %v1341_v49, %v1181_v15 }
 0x4fe   : > { %v3926_v40 = vpop.f32.mrf.mxu1 }
 0x4ff   : > { %v5457_v61 = vadd.f32 %v3926_v40, %v1186_v45 }
 0x500   : > { %v1354_v46 = vpop.f32.mrf.mxu1 }
 0x501   : > { %1395 = vmax.xlane.f32.xlu1 %v5435_v34  ;;  %v5460_v16 = vadd.f32 %v1354_v46, %v1184_v42 }
 0x502   : > { %v3927_v10 = vpop.f32.mrf.mxu1 }
 0x503   : > { %v5438_v5 = vadd.f32 %v3927_v10, %v1187_v24 }
 0x504   : > { %v1357_v20 = vpop.f32.mrf.mxu1 }
 0x505   : > { %1407 = vmax.xlane.f32.xlu1 %v5438_v5  ;;  %v5441_v8 = vadd.f32 %v1357_v20, %v1185_v19 }
 0x506   : > { %v3930_v3 = vpop.f32.mrf.mxu1 }
 0x507   : > { %v5463_v51 = vadd.f32 %v3930_v3, %v1190_v44 }
 0x508   : > { %v1370_v31 = vpop.f32.mrf.mxu1 }
 0x509   : > { %1403 = vmax.xlane.f32.xlu1 %v5441_v8  ;;  %v5466_v53 = vadd.f32 %v1370_v31, %v1188_v57 }
 0x50a   : > { %v3931_v26 = vpop.f32.mrf.mxu1 }
 0x50b   : > { %v5444_v14 = vadd.f32 %v3931_v26, %v1191_v52 }
 0x50c   : > { %v1373_v22 = vpop.f32.mrf.mxu1 }
 0x50d   : > { %1415 = vmax.xlane.f32.xlu1 %v5444_v14  ;;  %v5447_v25 = vadd.f32 %v1373_v22, %v1189_v28 }
 0x50f   : > { %1559 = vrot.lane.b32.xlu0 %v5086_v6, %s4779_s9 }
 0x511   : > { %1411 = vmax.xlane.f32.xlu1 %v5447_v25 }
 0x522   : > { %1549 = vrot.lane.b32.xlu1 %v5134_v35, %s4779_s9 }
 0x52e   : > { %1397 = vmax.xlane.f32.xlu0 %v5454_v50 }
 0x532   : > { %1393 = vmax.xlane.f32.xlu0 %v1339_v18 }
 0x536   : > { %1405 = vmax.xlane.f32.xlu0 %v5457_v61 }
 0x53a   : > { %1401 = vmax.xlane.f32.xlu0 %v5460_v16 }
 0x53e   : > { %1413 = vmax.xlane.f32.xlu0 %v5463_v51 }
 0x542   : > { %1409 = vmax.xlane.f32.xlu0 %v5466_v53 }
 0x558   : > { %1555 = vrot.lane.b32.xlu0 %v5095_v17, %s4779_s9 }
 0x55c   : > { %1553 = vrot.lane.b32.xlu0 %v5107_v38, %s4779_s9 }
 0x560   : > { %1551 = vrot.lane.b32.xlu0 %v5116_v32, %s4779_s9 }
 0x564   : > { %1547 = vrot.lane.b32.xlu0 %v5147_v59, %s4779_s9 }
 0x57a   : > { %v1390_v43 = vpop.xlane.xlu0 %1389 }
 0x57b   : > { %v1419_v37 = vsub.f32 %v5418_v30, %v1390_v43 }
 0x57d   : > { %v1437_v56 = vmul.f32 1.442695, %v1419_v37 }
 0x57e   : > { %v1386_v49 = vpop.xlane.xlu0 %1385 }
 0x57f   : > { %4396 = vpow2.f32 %v1437_v56  ;;  %v1417_v15 = vsub.f32 %v5423_v60, %v1386_v49 }
 0x580   : > { %v1388_v40 = vpop.xlane.xlu1 %1387 }
 0x581   : > { %v1433_v46 = vmul.f32 1.442695, %v1417_v15  ;;  %v1418_v10 = vsub.f32 %v5425_v0, %v1388_v40 }
 0x582   : > { %v1392_v24 = vpop.xlane.xlu0 %1391 }
 0x583   : > { %4398 = vpow2.f32 %v1433_v46  ;;  %v1420_v20 = vsub.f32 %v5428_v47, %v1392_v24  ;;  %v1435_v31 = vmul.f32 1.442695, %v1418_v10 }
 0x585   : > { %v1439_v19 = vmul.f32 1.442695, %v1420_v20 }
 0x586   : > { %v1560_v3 = vpop.permute.xlu0 %1559  ;;  %v1400_v52 = vpop.xlane.xlu1 %1399 }
 0x587   : > { %4400 = vpow2.f32 %v1439_v19  ;;  %3932 = vmatprep.subr.bf16.mxu0 %v1560_v3  ;;  %v1424_v56 = vsub.f32 %v5432_v39, %v1400_v52 }
 0x588   : > { %3933 = vmatpush3.bf16.msra.mxu0 %v1560_v3  ;;  %4402 = vpow2.f32 %v1435_v31 }
 0x589   : > { %3934 = vmatprep.subr.bf16.mxu0 %v1558_v54 }
 0x58a   : > { %v1396_v26 = vpop.xlane.xlu1 %1395 }
 0x58b   : > { %v1422_v29 = vsub.f32 %v5435_v34, %v1396_v26  ;;  %v1447_v34 = vmul.f32 1.442695, %v1424_v56 }
 0x58c   : > { %v5481_v30 = vpop.eup %4396  ;;  %3935 = vmatpush3.bf16.msra.mxu0 %v1558_v54 }
 0x58d   : > { %1469 = vadd.xlane.f32.xlu1 %v5481_v30  ;;  %v1443_v42 = vmul.f32 1.442695, %v1422_v29 }
 0x58e   : > { %v1408_v22 = vpop.xlane.xlu1 %1407 }
 0x58f   : > { %4404 = vpow2.f32 %v1443_v42  ;;  %v1428_v40 = vsub.f32 %v5438_v5, %v1408_v22 }
 0x590   : > { %v5484_v60 = vpop.eup %4398 }
 0x591   : > { %1465 = vadd.xlane.f32.xlu1 %v5484_v60  ;;  %v1455_v20 = vmul.f32 1.442695, %v1428_v40 }
 0x592   : > { %v1404_v28 = vpop.xlane.xlu1 %1403 }
 0x593   : > { %v1426_v44 = vsub.f32 %v5441_v8, %v1404_v28 }
 0x594   : > { %v5487_v0 = vpop.eup %4400 }
 0x595   : > { %1471 = vadd.xlane.f32.xlu1 %v5487_v0  ;;  %v5490_v47 = vpop.eup %4402  ;;  %v1451_v49 = vmul.f32 1.442695, %v1426_v44 }
 0x596   : > { %v1416_v45 = vpop.xlane.xlu1 %1415 }
 0x597   : > { %v1432_v39 = vsub.f32 %v5444_v14, %v1416_v45 }
 0x599   : > { %1467 = vadd.xlane.f32.xlu1 %v5490_v47  ;;  %v1463_v31 = vmul.f32 1.442695, %v1432_v39 }
 0x59a   : > { %v1412_v46 = vpop.xlane.xlu1 %1411 }
 0x59b   : > { %v1430_v10 = vsub.f32 %v5447_v25, %v1412_v46 }
 0x59c   : > { %v5504_v26 = vpop.eup %4404 }
 0x5aa   : > { %1545 = vrot.lane.b32.xlu1 %v5156_v62, %s4779_s9  ;;  %s4698_s9 = sshll.u32 %s4782_s25, 4  ;;  %s4699_s9 = int_to_ptr.vmem [resolvable:$false] %s4698_s9 }
 0x5ab   : > { %p4701_p1 = scmp.lt.s32.totalorder %s6262_s30, %s4699_s9 }
 0x5b7   : > { %v1398_v12 = vpop.xlane.xlu0 %1397 }
 0x5b8   : > { %v1423_v43 = vsub.f32 %v5454_v50, %v1398_v12 }
 0x5ba   : > { %v1445_v24 = vmul.f32 1.442695, %v1423_v43 }
 0x5bb   : > { %v1394_v57 = vpop.xlane.xlu0 %1393 }
 0x5bc   : > { %v1421_v37 = vsub.f32 %v1339_v18, %v1394_v57  ;;  %v1459_v18 = vmul.f32 1.442695, %v1430_v10 }
 0x5be   : > { %v1441_v54 = vmul.f32 1.442695, %v1421_v37  ;;  %v1550_v37 = vpop.permute.xlu1 %1549 }
 0x5bf   : > { %v1406_v15 = vpop.xlane.xlu0 %1405 }
 0x5c0   : > { %4406 = vpow2.f32 %v1441_v54  ;;  %v1427_v5 = vsub.f32 %v5457_v61, %v1406_v15 }
 0x5c1   : > { %4408 = vpow2.f32 %v1451_v49 }
 0x5c2   : > { %4410 = vpow2.f32 %v1445_v24  ;;  %v1453_v25 = vmul.f32 1.442695, %v1427_v5 }
 0x5c3   : > { %v1402_v8 = vpop.xlane.xlu0 %1401  ;;  %4412 = vpow2.f32 %v1447_v34 }
 0x5c4   : > { %v1425_v50 = vsub.f32 %v5460_v16, %v1402_v8  ;;  %4414 = vpow2.f32 %v1455_v20 }
 0x5c5   : > { %4416 = vpow2.f32 %v1459_v18 }
 0x5c6   : > { %v1449_v3 = vmul.f32 1.442695, %v1425_v50 }
 0x5c7   : > { %v1414_v19 = vpop.xlane.xlu0 %1413 }
 0x5c8   : > { %4418 = vpow2.f32 %v1449_v3  ;;  %v1431_v61 = vsub.f32 %v5463_v51, %v1414_v19 }
 0x5c9   : > { %4420 = vpow2.f32 %v1463_v31 }
 0x5ca   : > { %4422 = vpow2.f32 %v1453_v25  ;;  %v1461_v42 = vmul.f32 1.442695, %v1431_v61 }
 0x5cb   : > { %v1410_v52 = vpop.xlane.xlu0 %1409 }
 0x5cc   : > { %v1429_v22 = vsub.f32 %v5466_v53, %v1410_v52 }
 0x5cd   : > { %v5507_v28 = vpop.eup %4406 }
 0x5ce   : > { %1475 = vadd.xlane.f32.xlu1 %v5504_v26  ;;  %1473 = vadd.xlane.f32.xlu0 %v5507_v28  ;;  %v5511_v16 = vpop.eup %4408  ;;  %v1457_v29 = vmul.f32 1.442695, %v1429_v22 }
 0x5cf   : > { %v1556_v14 = vpop.permute.xlu0 %1555  ;;  %v5514_v12 = vpop.eup %4410 }
 0x5d0   : > { %3936 = vmatprep.subr.bf16.mxu0 %v1556_v14  ;;  %v5518_v45 = vpop.eup %4412  ;;  %4424 = vpow2.f32 %v1457_v29 }
 0x5d1   : > { %3937 = vmatpush3.bf16.msra.mxu0 %v1556_v14  ;;  %v5520_v44 = vpop.eup %4414  ;;  %4426 = vpow2.f32 %v1461_v42 }
 0x5d2   : > { %1483 = vadd.xlane.f32.xlu1 %v5511_v16  ;;  %1477 = vadd.xlane.f32.xlu0 %v5514_v12  ;;  %v5524_v57 = vpop.eup %4416 }
 0x5d3   : > { %v1554_v53 = vpop.permute.xlu0 %1553 }
 0x5d4   : > { %3938 = vmatprep.subr.bf16.mxu0 %v1554_v53 }
 0x5d5   : > { %3939 = vmatpush3.bf16.msra.mxu0 %v1554_v53  ;;  %v5526_v43 = vpop.eup %4418 }
 0x5d6   : > { %1487 = vadd.xlane.f32.xlu1 %v5520_v44  ;;  %1479 = vadd.xlane.f32.xlu0 %v5518_v45  ;;  %v5530_v54 = vpop.eup %4420 }
 0x5d7   : > { %v1552_v51 = vpop.permute.xlu0 %1551  ;;  %v5532_v56 = vpop.eup %4422 }
 0x5d8   : > { %3940 = vmatprep.subr.bf16.mxu0 %v1552_v51 }
 0x5d9   : > { %3941 = vmatpush3.bf16.msra.mxu0 %v1552_v51 }
 0x5da   : > { %1491 = vadd.xlane.f32.xlu1 %v5524_v57  ;;  %1481 = vadd.xlane.f32.xlu0 %v5526_v43 }
 0x5db   : > { %3942 = vmatprep.subr.bf16.mxu0 %v1550_v37  ;;  %v1548_v49 = vpop.permute.xlu0 %1547 }
 0x5dd   : > { %3943 = vmatpush3.bf16.msra.mxu0 %v1550_v37  ;;  %v5536_v15 = vpop.eup %4424 }
 0x5de   : > { %1495 = vadd.xlane.f32.xlu1 %v5530_v54  ;;  %1485 = vadd.xlane.f32.xlu0 %v5532_v56  ;;  %v5539_v40 = vpop.eup %4426 }
 0x5df   : > { %3944 = vmatprep.subr.bf16.mxu0 %v1548_v49 }
 0x5e1   : > { %3945 = vmatpush3.bf16.msra.mxu0 %v1548_v49 }
 0x5e2   : > { %1489 = vadd.xlane.f32.xlu0 %v5536_v15 }
 0x5e6   : > { %1493 = vadd.xlane.f32.xlu0 %v5539_v40 }
 0x5ef   : > { %1990 = vrot.lane.b32.xlu1 %v5110_v41, %s4780_s11 }
 0x5f3   : > { %1988 = vrot.lane.b32.xlu1 %v5162_v21, %s4780_s11 }
 0x5f7   : > { %1986 = vrot.lane.b32.xlu1 %v5174_v1, %s4780_s11 }
 0x5fb   : > { %1982 = vrot.lane.b32.xlu1 %v5049_v27, %s4780_s11 }
 0x5fc   : > { %1992 = vrot.lane.b32.xlu0 %v5136_v55, %s4780_s11 }
 0x5ff   : > { %1978 = vrot.lane.b32.xlu1 %v5023_v2, %s4780_s11 }
 0x600   : > { %1984 = vrot.lane.b32.xlu0 %v5184_v7, %s4780_s11 }
 0x603   : > { %1964 = vrot.lane.b32.xlu1 %v5030_v9, %s4780_s11 }
 0x604   : > { %1980 = vrot.lane.b32.xlu0 %v5035_v13, %s4780_s11 }
 0x607   : > { %1968 = vrot.lane.b32.xlu1 %v5061_v36, %s4780_s11 }
 0x608   : > { %1962 = vrot.lane.b32.xlu0 %v5020_v63, %s4780_s11 }
 0x60b   : > { %1972 = vrot.lane.b32.xlu1 %v5083_v4, %s4780_s11 }
 0x60c   : > { %1966 = vrot.lane.b32.xlu0 %v5046_v23, %s4780_s11 }
 0x60f   : > { %1976 = vrot.lane.b32.xlu1 %v5128_v58, %s4780_s11 }
 0x610   : > { %1970 = vrot.lane.b32.xlu0 %v5070_v48, %s4780_s11 }
 0x613   : > { %2619 = vrot.lane.b32.xlu1 %v5110_v41, %s4781_s12 }
 0x614   : > { %1974 = vrot.lane.b32.xlu0 %v5104_v33, %s4780_s11 }
 0x616   : > { %v1470_v46 = vpop.xlane.xlu1 %1469 }
 0x617   : > { %2615 = vrot.lane.b32.xlu1 %v5174_v1, %s4781_s12 }
 0x618   : > { %2621 = vrot.lane.b32.xlu0 %v5136_v55, %s4781_s12 }
 0x61a   : > { %v1466_v24 = vpop.xlane.xlu1 %1465 }
 0x61b   : > { %2611 = vrot.lane.b32.xlu1 %v5049_v27, %s4781_s12  ;;  %v4326_v27 = vld [vmem:[#allocation8 + $0x18] sm:$0xff]  }
 0x61c   : > { %2617 = vrot.lane.b32.xlu0 %v5162_v21, %s4781_s12 }
 0x61e   : > { %v1472_v34 = vpop.xlane.xlu1 %1471 }
 0x61f   : > { %2607 = vrot.lane.b32.xlu1 %v5023_v2, %s4781_s12  ;;  %4428 = vrcp.f32 %v1472_v34 }
 0x620   : > { %2613 = vrot.lane.b32.xlu0 %v5184_v7, %s4781_s12  ;;  %4430 = vrcp.f32 %v1466_v24  ;;  %v4327_v7 = vld [vmem:[#allocation8 + $0x10] sm:$0xff]  }
 0x621   : > { %4432 = vrcp.f32 %v1470_v46 }
 0x622   : > { %v1468_v41 = vpop.xlane.xlu1 %1467 }
 0x623   : > { %4434 = vrcp.f32 %v1468_v41  ;;  %2593 = vrot.lane.b32.xlu1 %v5030_v9, %s4781_s12 }
 0x624   : > { %2609 = vrot.lane.b32.xlu0 %v5035_v13, %s4781_s12 }
 0x626   : > { %v1546_v55 = vpop.permute.xlu1 %1545 }
 0x627   : > { %2597 = vrot.lane.b32.xlu1 %v5061_v36, %s4781_s12  ;;  %3946 = vmatprep.subr.bf16.mxu0 %v1546_v55 }
 0x628   : > { %2591 = vrot.lane.b32.xlu0 %v5020_v63, %s4781_s12  ;;  %3947 = vmatpush3.bf16.msra.mxu0 %v1546_v55 }
 0x629   : > { %3964 = vmatprep.subr.bf16.mxu0 %v4326_v27 }
 0x62b   : > { %2601 = vrot.lane.b32.xlu1 %v5083_v4, %s4781_s12 }
 0x62c   : > { %2595 = vrot.lane.b32.xlu0 %v5046_v23, %s4781_s12  ;;  %v4429_v2 = vpop.eup %4428 }
 0x62d   : > { %v4431_v9 = vpop.eup %4430  ;;  %v1516_v63 = vmul.f32 %v4429_v2, %v5487_v0 }
 0x62e   : > { %v4433_v13 = vpop.eup %4432  ;;  %v1513_v36 = vmul.f32 %v4431_v9, %v5484_v60 }
 0x62f   : > { %2605 = vrot.lane.b32.xlu1 %v5128_v58, %s4781_s12  ;;  %v1515_v4 = vmul.f32 %v4433_v13, %v5481_v30 }
 0x630   : > { %v4435_v21 = vpop.eup %4434  ;;  %2599 = vrot.lane.b32.xlu0 %v5070_v48, %s4781_s12 }
 0x631   : > { %v1514_v1 = vmul.f32 %v4435_v21, %v5490_v47  ;;  %v1530_v58 = vpack.c.bf16 %v1516_v63, %v1515_v4 }
 0x633   : > { %2303 = vrot.lane.b32.xlu1 %v5090_v11, %s4780_s11  ;;  %v1529_v23 = vpack.c.bf16 %v1514_v1, %v1513_v36 }
 0x634   : > { %2603 = vrot.lane.b32.xlu0 %v5104_v33, %s4781_s12 }
 0x635   : > { %3948 = vmatprep.mubr.bf16.mxu0 %v1529_v23 }
 0x636   : > { %3949 = vmatmul.mubr.bf16.vlgmr.msra.gmra.mxu0 %v1530_v58 }
 0x637   : > { %3965 = vmatpush3.bf16.msra.mxu0 %v4326_v27 }
 0x638   : > { %2305 = vrot.lane.b32.xlu0 %v5086_v6, %s4780_s11  ;;  %3966 = vmatprep.subr.bf16.mxu0 %v4327_v7 }
 0x63b   : > { %3967 = vmatpush3.bf16.msra.mxu0 %v4327_v7 }
 0x63c   : > { %2301 = vrot.lane.b32.xlu0 %v5095_v17, %s4780_s11 }
 0x657   : > { %v1476_v48 = vpop.xlane.xlu1 %1475  ;;  %v1474_v30 = vpop.xlane.xlu0 %1473 }
 0x658   : > { %4436 = vrcp.f32 %v1476_v48 }
 0x659   : > { %4438 = vrcp.f32 %v1474_v30 }
 0x65b   : > { %v1484_v60 = vpop.xlane.xlu1 %1483  ;;  %v1478_v0 = vpop.xlane.xlu0 %1477 }
 0x65c   : > { %4440 = vrcp.f32 %v1478_v0 }
 0x65f   : > { %v1488_v33 = vpop.xlane.xlu1 %1487  ;;  %v1480_v47 = vpop.xlane.xlu0 %1479 }
 0x660   : > { %4442 = vrcp.f32 %v1480_v47 }
 0x661   : > { %4444 = vrcp.f32 %v1484_v60 }
 0x663   : > { %v1492_v10 = vpop.xlane.xlu1 %1491  ;;  %v1482_v8 = vpop.xlane.xlu0 %1481 }
 0x664   : > { %4446 = vrcp.f32 %v1482_v8 }
 0x665   : > { %v4437_v20 = vpop.eup %4436  ;;  %4448 = vrcp.f32 %v1488_v33 }
 0x666   : > { %v4439_v50 = vpop.eup %4438  ;;  %v1518_v39 = vmul.f32 %v4437_v20, %v5504_v26 }
 0x667   : > { %v1496_v18 = vpop.xlane.xlu1 %1495  ;;  %v1486_v19 = vpop.xlane.xlu0 %1485  ;;  %v1517_v5 = vmul.f32 %v4439_v50, %v5507_v28 }
 0x668   : > { %4450 = vrcp.f32 %v1486_v19 }
 0x669   : > { %v1531_v3 = vpack.c.bf16 %v1518_v39, %v1517_v5  ;;  %4452 = vrcp.f32 %v1492_v10  ;;  %v4441_v25 = vpop.eup %4440 }
 0x66a   : > { %v1519_v26 = vmul.f32 %v4441_v25, %v5514_v12 }
 0x66b   : > { %3952 = vmatprep.mubr.bf16.mxu0 %v1531_v3  ;;  %v5618_v31 = vpop.permute.xlu1 %1990  ;;  %v1490_v52 = vpop.xlane.xlu0 %1489 }
 0x66c   : > { %4454 = vrcp.f32 %v1490_v52 }
 0x66d   : > { %v4443_v22 = vpop.eup %4442  ;;  %4456 = vrcp.f32 %v1496_v18 }
 0x66e   : > { %v1520_v29 = vmul.f32 %v4443_v22, %v5518_v45  ;;  %v4445_v53 = vpop.eup %4444 }
 0x66f   : > { %v5620_v14 = vpop.permute.xlu1 %1988  ;;  %v1494_v61 = vpop.xlane.xlu0 %1493  ;;  %v1522_v46 = vmul.f32 %v4445_v53, %v5511_v16 }
 0x670   : > { %4458 = vrcp.f32 %v1494_v61  ;;  %v1532_v28 = vpack.c.bf16 %v1520_v29, %v1519_v26 }
 0x671   : > { %v4447_v42 = vpop.eup %4446 }
 0x672   : > { %3953 = vmatmul.mubr.bf16.gmra.mxu0 %v1532_v28  ;;  %v1521_v49 = vmul.f32 %v4447_v42, %v5526_v43  ;;  %v4449_v24 = vpop.eup %4448 }
 0x673   : > { %v5624_v51 = vpop.permute.xlu1 %1986  ;;  %v5626_v37 = vpop.permute.xlu0 %1992  ;;  %v1524_v2 = vmul.f32 %v4449_v24, %v5520_v44 }
 0x674   : > { %4188 = vmatprep.subr.msk.bf16.mxu0 %vm768_vm0, %v5626_v37  ;;  %v1533_v12 = vpack.c.bf16 %v1522_v46, %v1521_v49 }
 0x675   : > { %v4451_v34 = vpop.eup %4450 }
 0x676   : > { %v4453_v45 = vpop.eup %4452  ;;  %3956 = vmatprep.mubr.bf16.mxu0 %v1533_v12  ;;  %v1523_v55 = vmul.f32 %v4451_v34, %v5532_v56  ;;  %v2040_v12 = vsel %vm768_vm0, %v5626_v37, 0  ;;  %v2037_v34 = vsel %vm768_vm0, %v5618_v31, 0  ;;  %v2031_v37 = vsel %vm768_vm0, %v5624_v51, 0 }
 0x677   : > { %v5632_v41 = vpop.permute.xlu1 %1982  ;;  %v5634_v27 = vpop.permute.xlu0 %1984  ;;  %v1526_v13 = vmul.f32 %v4453_v45, %v5524_v57  ;;  %v2034_v45 = vsel %vm768_vm0, %v5620_v14, 0 }
 0x678   : > { %v1534_v43 = vpack.c.bf16 %v1524_v2, %v1523_v55 }
 0x679   : > { %v4455_v9 = vpop.eup %4454 }
 0x67a   : > { %v1525_v16 = vmul.f32 %v4455_v9, %v5536_v15  ;;  %v4457_v21 = vpop.eup %4456  ;;  %3957 = vmatmul.mubr.bf16.gmra.mxu0 %v1534_v43 }
 0x67b   : > { %v5640_v63 = vpop.permute.xlu1 %1978  ;;  %v5642_v36 = vpop.permute.xlu0 %1980  ;;  %v1528_v56 = vmul.f32 %v4457_v21, %v5530_v54 }
 0x67c   : > { %v1535_v1 = vpack.c.bf16 %v1526_v13, %v1525_v16  ;;  %v2019_v9 = vsel %vm768_vm0, %v5640_v63, 0 }
 0x67d   : > { %v4459_v4 = vpop.eup %4458 }
 0x67e   : > { %3960 = vmatprep.mubr.bf16.mxu0 %v1535_v1  ;;  %v1527_v23 = vmul.f32 %v4459_v4, %v5539_v40 }
 0x67f   : > { %v5646_v44 = vpop.permute.xlu1 %1964  ;;  %v5648_v58 = vpop.permute.xlu0 %1962 }
 0x680   : > { %v1536_v15 = vpack.c.bf16 %v1528_v56, %v1527_v23 }
 0x682   : > { %3961 = vmatmul.mubr.bf16.gmra.mxu0 %v1536_v15 }
 0x683   : > { %v5650_v57 = vpop.permute.xlu1 %1968  ;;  %v5652_v7 = vpop.permute.xlu0 %1966 }
 0x687   : > { %v5654_v48 = vpop.permute.xlu1 %1972  ;;  %v5656_v30 = vpop.permute.xlu0 %1970 }
 0x68b   : > { %v5658_v60 = vpop.permute.xlu1 %1976  ;;  %v5660_v0 = vpop.permute.xlu0 %1974 }
 0x68f   : > { %v5662_v40 = vpop.permute.xlu1 %2619  ;;  %v5664_v54 = vpop.permute.xlu0 %2621 }
 0x693   : > { %v5666_v33 = vpop.permute.xlu1 %2615  ;;  %v5668_v47 = vpop.permute.xlu0 %2617 }
 0x697   : > { %v5670_v10 = vpop.permute.xlu1 %2611  ;;  %v5672_v8 = vpop.permute.xlu0 %2613 }
 0x69b   : > { %v5674_v20 = vpop.permute.xlu1 %2607  ;;  %v5676_v50 = vpop.permute.xlu0 %2609 }
 0x69f   : > { %v5678_v39 = vpop.permute.xlu1 %2593  ;;  %v5680_v18 = vpop.permute.xlu0 %2591 }
 0x6a3   : > { %v5682_v19 = vpop.permute.xlu1 %2597  ;;  %v5684_v5 = vpop.permute.xlu0 %2595 }
 0x6a7   : > { %v5686_v3 = vpop.permute.xlu1 %2601  ;;  %v5688_v52 = vpop.permute.xlu0 %2599 }
 0x6ab   : > { %v5690_v25 = vpop.permute.xlu1 %2605  ;;  %v5692_v22 = vpop.permute.xlu0 %2603 }
 0x6af   : > { %v2306_v61 = vpop.permute.xlu0 %2305  ;;  %v2304_v26 = vpop.permute.xlu1 %2303 }
 0x6b0   : > { %4036 = vmatprep.subr.bf16.mxu1 %v2306_v61 }
 0x6b1   : > { %4037 = vmatpush3.bf16.msra.mxu1 %v2306_v61 }
 0x6b2   : > { %4038 = vmatprep.subr.bf16.mxu1 %v2304_v26 }
 0x6b3   : > { %v2302_v29 = vpop.permute.xlu0 %2301 }
 0x6b5   : > { %4039 = vmatpush3.bf16.msra.mxu1 %v2304_v26 }
 0x6b6   : > { %4040 = vmatprep.subr.bf16.mxu1 %v2302_v29 }
 0x6b9   : > { %4041 = vmatpush3.bf16.msra.mxu1 %v2302_v29 }
 0x6f6   : > { %v3950_v53 = vpop.f32.mrf.mxu0 }
 0x6f8   : > { %v1603_v28 = vpop.f32.mrf.mxu0 }
 0x6fa   : > { %v3951_v42 = vpop.f32.mrf.mxu0 }
 0x6fb   : > { %v1667_v24 = vpack.c.bf16 %v3951_v42, %v3950_v53  ;;  %v2669_v53 = vsel %vm768_vm0, %v5664_v54, 0 }
 0x6fc   : > { %v1606_v49 = vpop.f32.mrf.mxu0 }
 0x6fd   : > { %v1666_v46 = vpack.c.bf16 %v1606_v49, %v1603_v28  ;;  %v2666_v28 = vsel %vm768_vm0, %v5662_v40, 0 }
 0x6ff   : > { %3968 = vmatprep.mubr.msk.bf16.mxu0 %vm768_vm0, %v1666_v46  ;;  %v1946_v46 = vld [vmem:[#allocation7 + $0x100] sm:$0xff] }
 0x700   : > { %3969 = vmatmul.mubr.msk.bf16.vlgmr.msra.gmra.mxu0 %vm768_vm0, %v1667_v24 }
 0x701   : > { %4005 = vmatpush3.bf16.xpose.msra.mxu0 %v2040_v12  ;;  %v1947_v12 = vld [vmem:[#allocation7 + $0x108] sm:$0xff] }
 0x702   : > { %4189 = vmatprep.subr.msk.bf16.mxu0 %vm768_vm0, %v5618_v31  ;;  %v2028_v31 = vsel %vm768_vm0, %v5634_v27, 0 }
 0x709   : > { %4007 = vmatpush3.bf16.xpose.msra.mxu0 %v2037_v34 }
 0x70a   : > { %4190 = vmatprep.subr.msk.bf16.mxu0 %vm768_vm0, %v5620_v14  ;;  %v2025_v14 = vsel %vm768_vm0, %v5632_v41, 0 }
 0x711   : > { %4009 = vmatpush3.bf16.xpose.msra.mxu0 %v2034_v45  ;;  %v1949_v45 = vld [vmem:[#allocation7 + $0x118] sm:$0xff] }
 0x712   : > { %4191 = vmatprep.subr.msk.bf16.mxu0 %vm768_vm0, %v5624_v51  ;;  %v2022_v51 = vsel %vm768_vm0, %v5642_v36, 0 }
 0x719   : > { %4011 = vmatpush3.bf16.xpose.msra.mxu0 %v2031_v37 }
 0x71a   : > { %4192 = vmatprep.subr.msk.bf16.mxu0 %vm768_vm0, %v5634_v27 }
 0x721   : > { %4013 = vmatpush3.bf16.xpose.msra.mxu0 %v2028_v31 }
 0x722   : > { %4193 = vmatprep.subr.msk.bf16.mxu0 %vm768_vm0, %v5632_v41 }
 0x729   : > { %4015 = vmatpush3.bf16.xpose.msra.mxu0 %v2025_v14 }
 0x72a   : > { %4194 = vmatprep.subr.msk.bf16.mxu0 %vm768_vm0, %v5642_v36 }
 0x731   : > { %4017 = vmatpush3.bf16.xpose.msra.mxu0 %v2022_v51 }
 0x732   : > { %4195 = vmatprep.subr.msk.bf16.mxu0 %vm768_vm0, %v5640_v63  ;;  %v3954_v55 = vpop.f32.mrf.mxu0 }
 0x734   : > { %v1619_v27 = vpop.f32.mrf.mxu0 }
 0x736   : > { %v3955_v2 = vpop.f32.mrf.mxu0 }
 0x737   : > { %v1669_v16 = vpack.c.bf16 %v3955_v2, %v3954_v55  ;;  %v1952_v55 = vld [vmem:[#allocation7 + $0x130] sm:$0xff]  ;;  %v1953_v2 = vld [vmem:[#allocation7 + $0x138] sm:$0xff] }
 0x738   : > { %v1622_v43 = vpop.f32.mrf.mxu0 }
 0x739   : > { %4019 = vmatpush3.bf16.xpose.msra.mxu0 %v2019_v9  ;;  %v1668_v41 = vpack.c.bf16 %v1622_v43, %v1619_v27 }
 0x73a   : > { %4196 = vmatprep.subr.msk.bf16.mxu0 %vm768_vm0, %v5664_v54  ;;  %v3958_v13 = vpop.f32.mrf.mxu0 }
 0x73b   : > { %3972 = vmatprep.mubr.msk.bf16.mxu0 %vm768_vm0, %v1668_v41 }
 0x73c   : > { %v1635_v21 = vpop.f32.mrf.mxu0  ;;  %3973 = vmatmul.mubr.msk.bf16.gmra.mxu0 %vm768_vm0, %v1669_v16  ;;  %v1950_v16 = vld [vmem:[#allocation7 + $0x120] sm:$0xff] }
 0x73e   : > { %v3959_v36 = vpop.f32.mrf.mxu0 }
 0x73f   : > { %v1671_v23 = vpack.c.bf16 %v3959_v36, %v3958_v13 }
 0x740   : > { %v1638_v1 = vpop.f32.mrf.mxu0 }
 0x741   : > { %v1670_v4 = vpack.c.bf16 %v1638_v1, %v1635_v21  ;;  %v1951_v21 = vld [vmem:[#allocation7 + $0x128] sm:$0xff] }
 0x742   : > { %v3962_v56 = vpop.f32.mrf.mxu0 }
 0x743   : > { %3976 = vmatprep.mubr.msk.bf16.mxu0 %vm768_vm0, %v1670_v4 }
 0x744   : > { %v1651_v63 = vpop.f32.mrf.mxu0  ;;  %3977 = vmatmul.mubr.msk.bf16.gmra.mxu0 %vm768_vm0, %v1671_v23  ;;  %v1956_v23 = vld [vmem:[#allocation7 + $0x150] sm:$0xff] }
 0x746   : > { %v3963_v15 = vpop.f32.mrf.mxu0 }
 0x747   : > { %v1673_v29 = vpack.c.bf16 %v3963_v15, %v3962_v56 }
 0x748   : > { %v1654_v61 = vpop.f32.mrf.mxu0 }
 0x749   : > { %v1672_v26 = vpack.c.bf16 %v1654_v61, %v1651_v63  ;;  %v1957_v63 = vld [vmem:[#allocation7 + $0x158] sm:$0xff] }
 0x74b   : > { %3980 = vmatprep.mubr.msk.bf16.mxu0 %vm768_vm0, %v1672_v26 }
 0x74c   : > { %3981 = vmatmul.mubr.msk.bf16.gmra.mxu0 %vm768_vm0, %v1673_v29  ;;  %v1954_v29 = vld [vmem:[#allocation7 + $0x140] sm:$0xff] }
 0x74d   : > { %4020 = vmatprep.mubr.msk.bf16.mxu0 %vm768_vm0, %v5648_v58  ;;  %v2660_v58 = vsel %vm768_vm0, %v5666_v33, 0 }
 0x754   : > { %4021 = vmatmul.mubr.msk.bf16.vlgmr.msra.gmra.mxu0 %vm768_vm0, %v5646_v44  ;;  %v2663_v44 = vsel %vm768_vm0, %v5668_v47, 0 }
 0x755   : > { %4089 = vmatpush3.bf16.xpose.msra.mxu0 %v2669_v53  ;;  %4024 = vmatprep.mubr.msk.bf16.mxu0 %vm768_vm0, %v5652_v7  ;;  %v2654_v7 = vsel %vm768_vm0, %v5670_v10, 0 }
 0x756   : > { %4197 = vmatprep.subr.msk.bf16.mxu0 %vm768_vm0, %v5662_v40 }
 0x75c   : > { %4025 = vmatmul.mubr.msk.bf16.gmra.mxu0 %vm768_vm0, %v5650_v57  ;;  %v2657_v57 = vsel %vm768_vm0, %v5672_v8, 0 }
 0x75d   : > { %4091 = vmatpush3.bf16.xpose.msra.mxu0 %v2666_v28  ;;  %4028 = vmatprep.mubr.msk.bf16.mxu0 %vm768_vm0, %v5656_v30  ;;  %v2648_v30 = vsel %vm768_vm0, %v5674_v20, 0  ;;  %v1955_v28 = vld [vmem:[#allocation7 + $0x148] sm:$0xff] }
 0x75e   : > { %4198 = vmatprep.subr.msk.bf16.mxu0 %vm768_vm0, %v5668_v47 }
 0x764   : > { %4029 = vmatmul.mubr.msk.bf16.gmra.mxu0 %vm768_vm0, %v5654_v48  ;;  %v2651_v48 = vsel %vm768_vm0, %v5676_v50, 0 }
 0x765   : > { %4093 = vmatpush3.bf16.xpose.msra.mxu0 %v2663_v44  ;;  %4032 = vmatprep.mubr.msk.bf16.mxu0 %vm768_vm0, %v5660_v0 }
 0x766   : > { %4199 = vmatprep.subr.msk.bf16.mxu0 %vm768_vm0, %v5666_v33 }
 0x76c   : > { %4033 = vmatmul.mubr.msk.bf16.gmra.mxu0 %vm768_vm0, %v5658_v60 }
 0x76d   : > { %4095 = vmatpush3.bf16.xpose.msra.mxu0 %v2660_v58  ;;  %4104 = vmatprep.mubr.msk.bf16.mxu0 %vm768_vm0, %v5680_v18 }
 0x76e   : > { %4200 = vmatprep.subr.msk.bf16.mxu0 %vm768_vm0, %v5672_v8 }
 0x775   : > { %4097 = vmatpush3.bf16.xpose.msra.mxu0 %v2657_v57  ;;  %v1960_v57 = vld [vmem:[#allocation7 + $0x170] sm:$0xff] }
 0x776   : > { %4201 = vmatprep.subr.msk.bf16.mxu0 %vm768_vm0, %v5670_v10 }
 0x77d   : > { %4099 = vmatpush3.bf16.xpose.msra.mxu0 %v2654_v7 }
 0x77e   : > { %4202 = vmatprep.subr.msk.bf16.mxu0 %vm768_vm0, %v5676_v50 }
 0x785   : > { %4101 = vmatpush3.bf16.xpose.msra.mxu0 %v2651_v48 }
 0x786   : > { %4203 = vmatprep.subr.msk.bf16.mxu0 %vm768_vm0, %v5674_v20 }
 0x78d   : > { %4103 = vmatpush3.bf16.xpose.msra.mxu0 %v2648_v30 }
 0x794   : > { %4105 = vmatmul.mubr.msk.bf16.vlgmr.msra.gmra.mxu0 %vm768_vm0, %v5678_v39 }
 0x795   : > { %4108 = vmatprep.mubr.msk.bf16.mxu0 %vm768_vm0, %v5684_v5 }
 0x79c   : > { %4109 = vmatmul.mubr.msk.bf16.gmra.mxu0 %vm768_vm0, %v5682_v19 }
 0x79d   : > { %4112 = vmatprep.mubr.msk.bf16.mxu0 %vm768_vm0, %v5688_v52 }
 0x7a4   : > { %4113 = vmatmul.mubr.msk.bf16.gmra.mxu0 %vm768_vm0, %v5686_v3 }
 0x7a5   : > { %4116 = vmatprep.mubr.msk.bf16.mxu0 %vm768_vm0, %v5692_v22 }
 0x7ac   : > { %4117 = vmatmul.mubr.msk.bf16.gmra.mxu0 %vm768_vm0, %v5690_v25  ;;  %v1948_v25 = vld [vmem:[#allocation7 + $0x110] sm:$0xff] }
 0x7c0   : > { %v5796_v60 = vpop.f32.mrf.mxu0 }
 0x7c2   : > { %v5798_v0 = vpop.f32.mrf.mxu0 }
 0x7c4   : > { %v5800_v40 = vpop.f32.mrf.mxu0 }
 0x7c6   : > { %v5802_v54 = vpop.f32.mrf.mxu0 }
 0x7fc   : > { %v5804_v33 = vpop.f32.mrf.mxu0 }
 0x7fe   : > { %v5806_v47 = vpop.f32.mrf.mxu0 }
 0x800   : > { %v5808_v10 = vpop.f32.mrf.mxu0 }
 0x802   : > { %v5810_v8 = vpop.f32.mrf.mxu0 }
 0x804   : > { %v5812_v20 = vpop.f32.mrf.mxu0 }
 0x806   : > { %v5814_v50 = vpop.f32.mrf.mxu0 }
 0x808   : > { %v5816_v39 = vpop.f32.mrf.mxu0 }
 0x80a   : > { %v5818_v18 = vpop.f32.mrf.mxu0 }
 0x80c   : > { %v5820_v19 = vpop.f32.mrf.mxu0 }
 0x80d   : > { %6336 = vst [vmem:[#allocation15_spill] sm:$0xff] %v5820_v19 }
 0x80e   : > { %v5822_v5 = vpop.f32.mrf.mxu0 }
 0x80f   : > { %6337 = vst [vmem:[#allocation16_spill] sm:$0xff] %v5822_v5 }
 0x810   : > { %v5824_v3 = vpop.f32.mrf.mxu0 }
 0x811   : > { %6338 = vst [vmem:[#allocation17_spill] sm:$0xff] %v5824_v3 }
 0x812   : > { %v5826_v52 = vpop.f32.mrf.mxu0 }
 0x813   : > { %6339 = vst [vmem:[#allocation18_spill] sm:$0xff] %v5826_v52 }
 0x814   : > { %v4022_v22 = vpop.f32.mrf.mxu0 }
 0x815   : > { %v5828_v42 = vadd.f32 %v4022_v22, %v1948_v25  ;;  %v1958_v25 = vld [vmem:[#allocation7 + $0x160] sm:$0xff] }
 0x816   : > { %v2076_v49 = vpop.f32.mrf.mxu0 }
 0x817   : > { %2143 = vmax.xlane.f32.xlu0 %v5828_v42  ;;  %v5831_v34 = vadd.f32 %v2076_v49, %v1946_v46  ;;  %v1961_v49 = vld [vmem:[#allocation7 + $0x178] sm:$0xff] }
 0x818   : > { %v4023_v24 = vpop.f32.mrf.mxu0 }
 0x819   : > { %v5836_v51 = vadd.f32 %v4023_v24, %v1949_v45  ;;  %v1959_v45 = vld [vmem:[#allocation7 + $0x168] sm:$0xff] }
 0x81a   : > { %v2079_v37 = vpop.f32.mrf.mxu0 }
 0x81b   : > { %v5833_v31 = vadd.f32 %v2079_v37, %v1947_v12  ;;  %2139 = vmax.xlane.f32.xlu0 %v5831_v34 }
 0x81c   : > { %v4026_v14 = vpop.f32.mrf.mxu0 }
 0x81d   : > { %2141 = vmax.xlane.f32.xlu1 %v5833_v31  ;;  %v5840_v43 = vadd.f32 %v4026_v14, %v1952_v55 }
 0x81e   : > { %v2092_v27 = vpop.f32.mrf.mxu0 }
 0x81f   : > { %2145 = vmax.xlane.f32.xlu0 %v5836_v51  ;;  %v5846_v1 = vadd.f32 %v2092_v27, %v1950_v16 }
 0x820   : > { %v4027_v9 = vpop.f32.mrf.mxu0 }
 0x821   : > { %v5842_v41 = vadd.f32 %v4027_v9, %v1953_v2 }
 0x822   : > { %v2095_v13 = vpop.f32.mrf.mxu0 }
 0x823   : > { %2151 = vmax.xlane.f32.xlu0 %v5840_v43  ;;  %2153 = vmax.xlane.f32.xlu1 %v5842_v41  ;;  %v5848_v4 = vadd.f32 %v2095_v13, %v1951_v21 }
 0x824   : > { %v4030_v36 = vpop.f32.mrf.mxu0 }
 0x825   : > { %v5852_v61 = vadd.f32 %v4030_v36, %v1956_v23 }
 0x826   : > { %v2108_v56 = vpop.f32.mrf.mxu0 }
 0x827   : > { %2149 = vmax.xlane.f32.xlu1 %v5848_v4  ;;  %2147 = vmax.xlane.f32.xlu0 %v5846_v1  ;;  %v5858_v44 = vadd.f32 %v2108_v56, %v1954_v29 }
 0x828   : > { %v4031_v15 = vpop.f32.mrf.mxu0 }
 0x829   : > { %v5854_v26 = vadd.f32 %v4031_v15, %v1957_v63 }
 0x82a   : > { %v2111_v53 = vpop.f32.mrf.mxu0 }
 0x82b   : > { %2159 = vmax.xlane.f32.xlu0 %v5852_v61  ;;  %2161 = vmax.xlane.f32.xlu1 %v5854_v26  ;;  %v5860_v58 = vadd.f32 %v2111_v53, %v1955_v28 }
 0x82c   : > { %v4034_v7 = vpop.f32.mrf.mxu0 }
 0x82d   : > { %v5864_v48 = vadd.f32 %v4034_v7, %v1960_v57 }
 0x82e   : > { %v2124_v30 = vpop.f32.mrf.mxu0 }
 0x82f   : > { %2157 = vmax.xlane.f32.xlu1 %v5860_v58  ;;  %2155 = vmax.xlane.f32.xlu0 %v5858_v44  ;;  %v5867_v22 = vadd.f32 %v2124_v30, %v1958_v25 }
 0x830   : > { %v4035_v46 = vpop.f32.mrf.mxu0 }
 0x831   : > { %v5874_v24 = vadd.f32 %v4035_v46, %v1961_v49 }
 0x832   : > { %v2127_v12 = vpop.f32.mrf.mxu0 }
 0x833   : > { %2167 = vmax.xlane.f32.xlu0 %v5864_v48  ;;  %v5877_v37 = vadd.f32 %v2127_v12, %v1959_v45 }
 0x837   : > { %2163 = vmax.xlane.f32.xlu0 %v5867_v22 }
 0x840   : > { %2297 = vrot.lane.b32.xlu1 %v5116_v32, %s4780_s11 }
 0x84d   : > { %2299 = vrot.lane.b32.xlu0 %v5107_v38, %s4780_s11 }
 0x864   : > { %2169 = vmax.xlane.f32.xlu1 %v5874_v24 }
 0x868   : > { %2165 = vmax.xlane.f32.xlu1 %v5877_v37 }
 0x879   : > { %2295 = vrot.lane.b32.xlu1 %v5134_v35, %s4780_s11 }
 0x8a0   : > { %v2144_v14 = vpop.xlane.xlu0 %2143 }
 0x8a1   : > { %v2173_v55 = vsub.f32 %v5828_v42, %v2144_v14 }
 0x8a3   : > { %v2191_v27 = vmul.f32 1.442695, %v2173_v55 }
 0x8a4   : > { %v2140_v2 = vpop.xlane.xlu0 %2139 }
 0x8a5   : > { %4460 = vpow2.f32 %v2191_v27  ;;  %v2171_v9 = vsub.f32 %v5831_v34, %v2140_v2 }
 0x8a6   : > { %v2142_v16 = vpop.xlane.xlu1 %2141 }
 0x8a7   : > { %v2187_v13 = vmul.f32 1.442695, %v2171_v9  ;;  %v2172_v36 = vsub.f32 %v5833_v31, %v2142_v16 }
 0x8a8   : > { %v2146_v21 = vpop.xlane.xlu0 %2145 }
 0x8a9   : > { %4462 = vpow2.f32 %v2187_v13  ;;  %v2174_v23 = vsub.f32 %v5836_v51, %v2146_v21  ;;  %v2189_v29 = vmul.f32 1.442695, %v2172_v36 }
 0x8ab   : > { %v2193_v56 = vmul.f32 1.442695, %v2174_v23 }
 0x8ac   : > { %v2154_v63 = vpop.xlane.xlu1 %2153  ;;  %v2152_v15 = vpop.xlane.xlu0 %2151 }
 0x8ad   : > { %4464 = vpow2.f32 %v2193_v56  ;;  %v2177_v42 = vsub.f32 %v5840_v43, %v2152_v15  ;;  %v2178_v31 = vsub.f32 %v5842_v41, %v2154_v63 }
 0x8ae   : > { %4466 = vpow2.f32 %v2189_v29 }
 0x8af   : > { %v2199_v53 = vmul.f32 1.442695, %v2177_v42  ;;  %v2201_v45 = vmul.f32 1.442695, %v2178_v31  ;;  %v4106_v31 = vpop.f32.mrf.mxu0 }
 0x8b0   : > { %v2150_v28 = vpop.xlane.xlu1 %2149  ;;  %v2148_v57 = vpop.xlane.xlu0 %2147 }
 0x8b1   : > { %v2176_v34 = vsub.f32 %v5848_v4, %v2150_v28  ;;  %v2175_v7 = vsub.f32 %v5846_v1, %v2148_v57  ;;  %4468 = vpow2.f32 %v2199_v53 }
 0x8b2   : > { %v5889_v30 = vpop.eup %4460 }
 0x8b3   : > { %v2197_v51 = vmul.f32 1.442695, %v2176_v34  ;;  %v2195_v25 = vmul.f32 1.442695, %v2175_v7  ;;  %2223 = vadd.xlane.f32.xlu1 %v5889_v30 }
 0x8b4   : > { %v2160_v49 = vpop.xlane.xlu0 %2159  ;;  %v2162_v43 = vpop.xlane.xlu1 %2161 }
 0x8b5   : > { %4470 = vpow2.f32 %v2197_v51  ;;  %v2181_v46 = vsub.f32 %v5852_v61, %v2160_v49  ;;  %v2182_v55 = vsub.f32 %v5854_v26, %v2162_v43  ;;  %v2705_v51 = vpop.f32.mrf.mxu0 }
 0x8b6   : > { %v5894_v12 = vpop.eup %4462  ;;  %4472 = vpow2.f32 %v2195_v25 }
 0x8b7   : > { %2219 = vadd.xlane.f32.xlu1 %v5894_v12  ;;  %v2207_v4 = vmul.f32 1.442695, %v2181_v46  ;;  %4474 = vpow2.f32 %v2201_v45  ;;  %v2209_v13 = vmul.f32 1.442695, %v2182_v55  ;;  %v4107_v25 = vpop.f32.mrf.mxu0 }
 0x8b8   : > { %v2156_v1 = vpop.xlane.xlu0 %2155  ;;  %v2158_v27 = vpop.xlane.xlu1 %2157 }
 0x8b9   : > { %v2179_v41 = vsub.f32 %v5858_v44, %v2156_v1  ;;  %4476 = vpow2.f32 %v2207_v4  ;;  %v2180_v21 = vsub.f32 %v5860_v58, %v2158_v27  ;;  %v2708_v49 = vpop.f32.mrf.mxu0 }
 0x8ba   : > { %v5898_v14 = vpop.eup %4464 }
 0x8bb   : > { %v2203_v2 = vmul.f32 1.442695, %v2179_v41  ;;  %2225 = vadd.xlane.f32.xlu1 %v5898_v14  ;;  %v5903_v16 = vpop.eup %4466  ;;  %v4110_v43 = vpop.f32.mrf.mxu0 }
 0x8bc   : > { %v2168_v61 = vpop.xlane.xlu0 %2167  ;;  %v2298_v29 = vpop.permute.xlu1 %2297 }
 0x8bd   : > { %v2185_v9 = vsub.f32 %v5864_v48, %v2168_v61  ;;  %4478 = vpow2.f32 %v2203_v2  ;;  %v2205_v48 = vmul.f32 1.442695, %v2180_v21  ;;  %v2721_v46 = vpop.f32.mrf.mxu0 }
 0x8be   : > { %v5906_v44 = vpop.eup %4468 }
 0x8bf   : > { %v2215_v36 = vmul.f32 1.442695, %v2185_v9  ;;  %2221 = vadd.xlane.f32.xlu1 %v5903_v16  ;;  %2231 = vadd.xlane.f32.xlu0 %v5906_v44  ;;  %v4111_v1 = vpop.f32.mrf.mxu0 }
 0x8c0   : > { %v2164_v26 = vpop.xlane.xlu0 %2163 }
 0x8c1   : > { %4480 = vpow2.f32 %v2215_v36  ;;  %v2183_v23 = vsub.f32 %v5867_v22, %v2164_v26  ;;  %v2724_v55 = vpop.f32.mrf.mxu0  ;;  %v2579_v26 = vld [vmem:[#allocation7 + $0x1a0] sm:$0xff] }
 0x8c2   : > { %v5911_v56 = vpop.eup %4470  ;;  %4482 = vpow2.f32 %v2209_v13 }
 0x8c3   : > { %v5913_v63 = vpop.eup %4472  ;;  %v2211_v15 = vmul.f32 1.442695, %v2183_v23  ;;  %2229 = vadd.xlane.f32.xlu1 %v5911_v56  ;;  %v4114_v9 = vpop.f32.mrf.mxu0 }
 0x8c4   : > { %2227 = vadd.xlane.f32.xlu0 %v5913_v63  ;;  %v2300_v58 = vpop.permute.xlu0 %2299  ;;  %v5917_v42 = vpop.eup %4474 }
 0x8c5   : > { %4484 = vpow2.f32 %v2211_v15  ;;  %4042 = vmatprep.subr.bf16.mxu1 %v2300_v58  ;;  %v2737_v21 = vpop.f32.mrf.mxu0 }
 0x8c6   : > { %4486 = vpow2.f32 %v2205_v48  ;;  %4043 = vmatpush3.bf16.msra.mxu1 %v2300_v58  ;;  %v5920_v22 = vpop.eup %4476  ;;  %v5944_v48 = vadd.f32 %v2721_v46, %v2579_v26  ;;  %v2576_v46 = vld [vmem:[#allocation7 + $0x188] sm:$0xff] }
 0x8c7   : > { %4044 = vmatprep.subr.bf16.mxu1 %v2298_v29  ;;  %v4115_v36 = vpop.f32.mrf.mxu0  ;;  %v2580_v26 = vld [vmem:[#allocation7 + $0x1a8] sm:$0xff] }
 0x8c8   : > { %2233 = vadd.xlane.f32.xlu0 %v5917_v42 }
 0x8c9   : > { %v2740_v23 = vpop.f32.mrf.mxu0 }
 0x8ca   : > { %4045 = vmatpush3.bf16.msra.mxu1 %v2298_v29  ;;  %v5922_v53 = vpop.eup %4478 }
 0x8cb   : > { %2235 = vadd.xlane.f32.xlu1 %v5922_v53  ;;  %v4118_v58 = vpop.f32.mrf.mxu0 }
 0x8cc   : > { %2239 = vadd.xlane.f32.xlu0 %v5920_v22 }
 0x8ce   : > { %v5926_v28 = vpop.eup %4480 }
 0x8cf   : > { %v5928_v57 = vpop.eup %4482  ;;  %2247 = vadd.xlane.f32.xlu1 %v5926_v28 }
 0x8d0   : > { %2241 = vadd.xlane.f32.xlu0 %v5928_v57 }
 0x8d2   : > { %v5932_v34 = vpop.eup %4484 }
 0x8d3   : > { %v5934_v7 = vpop.eup %4486  ;;  %2243 = vadd.xlane.f32.xlu1 %v5932_v34 }
 0x8d4   : > { %2237 = vadd.xlane.f32.xlu0 %v5934_v7 }
 0x8e4   : > { %2291 = vrot.lane.b32.xlu1 %v5156_v62, %s4780_s11 }
 0x8ea   : > { %2293 = vrot.lane.b32.xlu0 %v5147_v59, %s4780_s11 }
 0x8ed   : > { %v2170_v45 = vpop.xlane.xlu1 %2169 }
 0x8ee   : > { %v2186_v2 = vsub.f32 %v5874_v24, %v2170_v45  ;;  %v2575_v45 = vld [vmem:[#allocation7 + $0x180] sm:$0xff] }
 0x8f0   : > { %v2217_v13 = vmul.f32 1.442695, %v2186_v2 }
 0x8f1   : > { %v2166_v4 = vpop.xlane.xlu1 %2165 }
 0x8f2   : > { %v2184_v41 = vsub.f32 %v5877_v37, %v2166_v4  ;;  %v2589_v37 = vld [vmem:[#allocation7 + $0x1f0] sm:$0xff]  ;;  %v5956_v4 = vadd.f32 %v2705_v51, %v2575_v45  ;;  %v5970_v51 = vadd.f32 %v2724_v55, %v2580_v26  ;;  %v2584_v55 = vld [vmem:[#allocation7 + $0x1c8] sm:$0xff] }
 0x8f3   : > { %v5950_v24 = vadd.f32 %v4118_v58, %v2589_v37  ;;  %v2582_v37 = vld [vmem:[#allocation7 + $0x1b8] sm:$0xff]  ;;  %v2583_v58 = vld [vmem:[#allocation7 + $0x1c0] sm:$0xff] }
 0x8f4   : > { %v2213_v61 = vmul.f32 1.442695, %v2184_v41  ;;  %v5959_v41 = vadd.f32 %v2708_v49, %v2576_v46  ;;  %v2581_v49 = vld [vmem:[#allocation7 + $0x1b0] sm:$0xff] }
 0x8f5   : > { %v2296_v27 = vpop.permute.xlu1 %2295 }
 0x8f6   : > { %4046 = vmatprep.subr.bf16.mxu1 %v2296_v27  ;;  %4488 = vpow2.f32 %v2213_v61  ;;  %v2578_v61 = vld [vmem:[#allocation7 + $0x198] sm:$0xff] }
 0x8f7   : > { %4047 = vmatpush3.bf16.msra.mxu1 %v2296_v27  ;;  %4490 = vpow2.f32 %v2217_v13  ;;  %v2577_v27 = vld [vmem:[#allocation7 + $0x190] sm:$0xff]  ;;  %v5965_v13 = vadd.f32 %v4107_v25, %v2578_v61  ;;  %v5980_v25 = vadd.f32 %v4111_v1, %v2582_v37  ;;  %v2753_v1 = vpop.f32.mrf.mxu0 }
 0x8f8   : > { %v5962_v2 = vadd.f32 %v4106_v31, %v2577_v27  ;;  %v5975_v31 = vadd.f32 %v4110_v43, %v2581_v49  ;;  %v2585_v43 = vld [vmem:[#allocation7 + $0x1d0] sm:$0xff]  ;;  %v2587_v27 = vld [vmem:[#allocation7 + $0x1e0] sm:$0xff] }
 0x8f9   : > { %v5991_v45 = vadd.f32 %v4114_v9, %v2585_v43  ;;  %v2590_v9 = vld [vmem:[#allocation7 + $0x1f8] sm:$0xff] }
 0x903   : > { %v5946_v15 = vpop.eup %4488 }
 0x904   : > { %v5952_v29 = vpop.eup %4490 }
 0x908   : > { %2776 = vmax.xlane.f32.xlu1 %v5944_v48 }
 0x909   : > { %2245 = vadd.xlane.f32.xlu0 %v5946_v15 }
 0x90c   : > { %2796 = vmax.xlane.f32.xlu1 %v5950_v24 }
 0x90d   : > { %2249 = vadd.xlane.f32.xlu0 %v5952_v29 }
 0x911   : > { %2768 = vmax.xlane.f32.xlu0 %v5956_v4 }
 0x915   : > { %2770 = vmax.xlane.f32.xlu0 %v5959_v41 }
 0x919   : > { %2772 = vmax.xlane.f32.xlu0 %v5962_v2 }
 0x91d   : > { %2774 = vmax.xlane.f32.xlu0 %v5965_v13  ;;  %2934 = vrot.lane.b32.xlu1 %v5086_v6, %s4781_s12  ;;  %v5985_v6 = vadd.f32 %v2737_v21, %v2583_v58  ;;  %v5997_v21 = vadd.f32 %v2753_v1, %v2587_v27 }
 0x921   : > { %2778 = vmax.xlane.f32.xlu0 %v5970_v51  ;;  %2932 = vrot.lane.b32.xlu1 %v5090_v11, %s4781_s12  ;;  %v5988_v11 = vadd.f32 %v2740_v23, %v2584_v55  ;;  %v2588_v23 = vld [vmem:[#allocation7 + $0x1e8] sm:$0xff] }
 0x925   : > { %2780 = vmax.xlane.f32.xlu0 %v5975_v31  ;;  %2928 = vrot.lane.b32.xlu1 %v5107_v38, %s4781_s12  ;;  %v2586_v38 = vld [vmem:[#allocation7 + $0x1d8] sm:$0xff] }
 0x926   : > { %v5994_v46 = vadd.f32 %v4115_v36, %v2586_v38 }
 0x929   : > { %2782 = vmax.xlane.f32.xlu0 %v5980_v25  ;;  %2922 = vrot.lane.b32.xlu1 %v5147_v59, %s4781_s12  ;;  %v4119_v59 = vpop.f32.mrf.mxu0 }
 0x92a   : > { %v6003_v58 = vadd.f32 %v4119_v59, %v2590_v9 }
 0x92b   : > { %v2756_v61 = vpop.f32.mrf.mxu0 }
 0x92c   : > { %v6000_v49 = vadd.f32 %v2756_v61, %v2588_v23 }
 0x92d   : > { %2784 = vmax.xlane.f32.xlu0 %v5985_v6 }
 0x931   : > { %2786 = vmax.xlane.f32.xlu0 %v5988_v11 }
 0x935   : > { %2788 = vmax.xlane.f32.xlu0 %v5991_v45 }
 0x939   : > { %2790 = vmax.xlane.f32.xlu0 %v5994_v46 }
 0x93c   : > { %v2224_v26 = vpop.xlane.xlu1 %2223 }
 0x93d   : > { %2792 = vmax.xlane.f32.xlu0 %v5997_v21 }
 0x940   : > { %v2220_v37 = vpop.xlane.xlu1 %2219 }
 0x941   : > { %2794 = vmax.xlane.f32.xlu0 %v6000_v49  ;;  %4492 = vrcp.f32 %v2220_v37 }
 0x944   : > { %v2226_v36 = vpop.xlane.xlu1 %2225 }
 0x945   : > { %2798 = vmax.xlane.f32.xlu0 %v6003_v58 }
 0x948   : > { %v2222_v55 = vpop.xlane.xlu1 %2221  ;;  %v2232_v43 = vpop.xlane.xlu0 %2231 }
 0x949   : > { %4494 = vrcp.f32 %v2222_v55 }
 0x94a   : > { %4496 = vrcp.f32 %v2226_v36 }
 0x94c   : > { %v2230_v1 = vpop.xlane.xlu1 %2229 }
 0x94d   : > { %v2228_v38 = vpop.xlane.xlu0 %2227  ;;  %4498 = vrcp.f32 %v2230_v1 }
 0x94e   : > { %v4493_v52 = vpop.eup %4492  ;;  %4500 = vrcp.f32 %v2228_v38 }
 0x94f   : > { %4502 = vrcp.f32 %v2224_v26  ;;  %v2267_v59 = vmul.f32 %v4493_v52, %v5894_v12 }
 0x951   : > { %v2234_v27 = vpop.xlane.xlu0 %2233 }
 0x952   : > { %4504 = vrcp.f32 %v2234_v27 }
 0x953   : > { %4506 = vrcp.f32 %v2232_v43 }
 0x954   : > { %v2236_v61 = vpop.xlane.xlu1 %2235 }
 0x955   : > { %v2240_v23 = vpop.xlane.xlu0 %2239  ;;  %4508 = vrcp.f32 %v2236_v61  ;;  %v4329_v61 = vld [vmem:[#allocation8 + $0x20] sm:$0xff]  }
 0x956   : > { %v4495_v3 = vpop.eup %4494 }
 0x957   : > { %v2268_v9 = vmul.f32 %v4495_v3, %v5903_v16  ;;  %v4497_v26 = vpop.eup %4496 }
 0x958   : > { %v2248_v5 = vpop.xlane.xlu1 %2247 }
 0x959   : > { %v2242_v37 = vpop.xlane.xlu0 %2241  ;;  %v2283_v19 = vpack.c.bf16 %v2268_v9, %v2267_v59 }
 0x95a   : > { %v4499_v52 = vpop.eup %4498 }
 0x95b   : > { %2930 = vrot.lane.b32.xlu0 %v5095_v17, %s4781_s12  ;;  %4052 = vmatprep.mubr.bf16.mxu1 %v2283_v19  ;;  %v4501_v3 = vpop.eup %4500  ;;  %v2270_v17 = vmul.f32 %v4497_v26, %v5898_v14  ;;  %v4328_v19 = vld [vmem:[#allocation8 + $0x28] sm:$0xff]  }
 0x95c   : > { %v2244_v36 = vpop.xlane.xlu1 %2243  ;;  %v4503_v16 = vpop.eup %4502  ;;  %v2271_v43 = vmul.f32 %v4501_v3, %v5913_v63 }
 0x95d   : > { %v2238_v55 = vpop.xlane.xlu0 %2237  ;;  %v2269_v1 = vmul.f32 %v4503_v16, %v5889_v30 }
 0x95e   : > { %4510 = vrcp.f32 %v2238_v55 }
 0x95f   : > { %2926 = vrot.lane.b32.xlu0 %v5116_v32, %s4781_s12  ;;  %4512 = vrcp.f32 %v2242_v37  ;;  %v2272_v32 = vmul.f32 %v4499_v52, %v5911_v56  ;;  %v2284_v27 = vpack.c.bf16 %v2270_v17, %v2269_v1  ;;  %v4505_v59 = vpop.eup %4504 }
 0x960   : > { %v2292_v38 = vpop.permute.xlu1 %2291  ;;  %4514 = vrcp.f32 %v2240_v23  ;;  %v2274_v55 = vmul.f32 %v4505_v59, %v5917_v42 }
 0x961   : > { %v2294_v12 = vpop.permute.xlu0 %2293  ;;  %v2285_v9 = vpack.c.bf16 %v2272_v32, %v2271_v43  ;;  %4516 = vrcp.f32 %v2244_v36 }
 0x962   : > { %4048 = vmatprep.subr.bf16.mxu1 %v2294_v12 }
 0x963   : > { %2924 = vrot.lane.b32.xlu0 %v5134_v35, %s4781_s12  ;;  %4049 = vmatpush3.bf16.msra.mxu1 %v2294_v12  ;;  %v4507_v35 = vpop.eup %4506 }
 0x964   : > { %4050 = vmatprep.subr.bf16.mxu1 %v2292_v38  ;;  %v4509_v37 = vpop.eup %4508  ;;  %v2273_v63 = vmul.f32 %v4507_v35, %v5906_v44 }
 0x965   : > { %v2275_v30 = vmul.f32 %v4509_v37, %v5922_v53 }
 0x966   : > { %v2286_v23 = vpack.c.bf16 %v2274_v55, %v2273_v63 }
 0x967   : > { %4051 = vmatpush3.bf16.msra.mxu1 %v2292_v38 }
 0x968   : > { %4068 = vmatprep.subr.bf16.mxu1 %v4328_v19 }
 0x96a   : > { %4053 = vmatmul.mubr.bf16.vlgmr.msra.gmra.mxu1 %v2284_v27 }
 0x96b   : > { %4056 = vmatprep.mubr.bf16.mxu1 %v2285_v9  ;;  %4069 = vmatpush3.bf16.msra.mxu1 %v4328_v19  ;;  %v4511_v14 = vpop.eup %4510 }
 0x96c   : > { %4070 = vmatprep.subr.bf16.mxu1 %v4329_v61  ;;  %v2276_v56 = vmul.f32 %v4511_v14, %v5934_v7  ;;  %v4513_v26 = vpop.eup %4512 }
 0x96d   : > { %v4515_v12 = vpop.eup %4514  ;;  %v2278_v3 = vmul.f32 %v4513_v26, %v5928_v57 }
 0x96e   : > { %v2287_v52 = vpack.c.bf16 %v2276_v56, %v2275_v30  ;;  %v2277_v16 = vmul.f32 %v4515_v12, %v5920_v22  ;;  %v4517_v43 = vpop.eup %4516 }
 0x96f   : > { %4071 = vmatpush3.bf16.msra.mxu1 %v4329_v61  ;;  %v2279_v22 = vmul.f32 %v4517_v43, %v5932_v34 }
 0x970   : > { %v2288_v38 = vpack.c.bf16 %v2278_v3, %v2277_v16 }
 0x972   : > { %4057 = vmatmul.mubr.bf16.gmra.mxu1 %v2286_v23 }
 0x973   : > { %4060 = vmatprep.mubr.bf16.mxu1 %v2287_v52 }
 0x97a   : > { %4061 = vmatmul.mubr.bf16.gmra.mxu1 %v2288_v38 }
 0x991   : > { %v2777_v42 = vpop.xlane.xlu1 %2776 }
 0x992   : > { %v2246_v7 = vpop.xlane.xlu0 %2245  ;;  %v2804_v30 = vsub.f32 %v5944_v48, %v2777_v42 }
 0x993   : > { %4518 = vrcp.f32 %v2246_v7 }
 0x994   : > { %4520 = vrcp.f32 %v2248_v5  ;;  %v2824_v12 = vmul.f32 1.442695, %v2804_v30  ;;  %v6095_v30 = vpop.f32.mrf.mxu1 }
 0x995   : > { %v2797_v44 = vpop.xlane.xlu1 %2796 }
 0x996   : > { %v2250_v53 = vpop.xlane.xlu0 %2249 }
 0x997   : > { %4522 = vrcp.f32 %v2250_v53 }
 0x999   : > { %v6024_v17 = vpop.permute.xlu1 %2934 }
 0x99a   : > { %v2769_v19 = vpop.xlane.xlu0 %2768  ;;  %4120 = vmatprep.subr.bf16.mxu1 %v6024_v17 }
 0x99b   : > { %v2800_v61 = vsub.f32 %v5956_v4, %v2769_v19 }
 0x99d   : > { %v2816_v56 = vmul.f32 1.442695, %v2800_v61 }
 0x99e   : > { %v2771_v32 = vpop.xlane.xlu0 %2770 }
 0x99f   : > { %v2801_v63 = vsub.f32 %v5959_v41, %v2771_v32 }
 0x9a0   : > { %v4519_v57 = vpop.eup %4518 }
 0x9a1   : > { %v2280_v1 = vmul.f32 %v4519_v57, %v5946_v15  ;;  %v4521_v27 = vpop.eup %4520  ;;  %v2818_v23 = vmul.f32 1.442695, %v2801_v63 }
 0x9a2   : > { %v2773_v36 = vpop.xlane.xlu0 %2772  ;;  %v2281_v14 = vmul.f32 %v4521_v27, %v5926_v28 }
 0x9a3   : > { %v2802_v5 = vsub.f32 %v5962_v2, %v2773_v36  ;;  %v2289_v59 = vpack.c.bf16 %v2280_v1, %v2279_v22 }
 0x9a4   : > { %v4523_v9 = vpop.eup %4522 }
 0x9a5   : > { %v2820_v35 = vmul.f32 1.442695, %v2802_v5  ;;  %4064 = vmatprep.mubr.bf16.mxu1 %v2289_v59  ;;  %v2282_v55 = vmul.f32 %v4523_v9, %v5952_v29 }
 0x9a6   : > { %v2775_v37 = vpop.xlane.xlu0 %2774 }
 0x9a7   : > { %4524 = vpow2.f32 %v2820_v35  ;;  %v2803_v34 = vsub.f32 %v5965_v13, %v2775_v37  ;;  %v2290_v15 = vpack.c.bf16 %v2282_v55, %v2281_v14 }
 0x9a8   : > { %4526 = vpow2.f32 %v2816_v56 }
 0x9a9   : > { %4065 = vmatmul.mubr.bf16.gmra.mxu1 %v2290_v15  ;;  %v2822_v2 = vmul.f32 1.442695, %v2803_v34 }
 0x9aa   : > { %v2779_v4 = vpop.xlane.xlu0 %2778 }
 0x9ab   : > { %4528 = vpow2.f32 %v2822_v2  ;;  %v2805_v28 = vsub.f32 %v5970_v51, %v2779_v4  ;;  %v2814_v51 = vsub.f32 %v5950_v24, %v2797_v44 }
 0x9ac   : > { %4530 = vpow2.f32 %v2818_v23  ;;  %v6099_v23 = vpop.f32.mrf.mxu1 }
 0x9ad   : > { %v2826_v3 = vmul.f32 1.442695, %v2805_v28  ;;  %v2844_v19 = vmul.f32 1.442695, %v2814_v51 }
 0x9ae   : > { %v2781_v26 = vpop.xlane.xlu0 %2780 }
 0x9af   : > { %v2806_v29 = vsub.f32 %v5975_v31, %v2781_v26  ;;  %v6101_v26 = vpop.f32.mrf.mxu1 }
 0x9b1   : > { %v2828_v52 = vmul.f32 1.442695, %v2806_v29  ;;  %v6103_v28 = vpop.f32.mrf.mxu1 }
 0x9b2   : > { %v2783_v13 = vpop.xlane.xlu0 %2782 }
 0x9b3   : > { %4532 = vpow2.f32 %v2828_v52  ;;  %v2807_v41 = vsub.f32 %v5980_v25, %v2783_v13  ;;  %v6105_v29 = vpop.f32.mrf.mxu1 }
 0x9b4   : > { %v6039_v16 = vpop.eup %4524  ;;  %4534 = vpow2.f32 %v2824_v12 }
 0x9b5   : > { %2852 = vadd.xlane.f32.xlu0 %v6039_v16  ;;  %4536 = vpow2.f32 %v2826_v3  ;;  %v2830_v38 = vmul.f32 1.442695, %v2807_v41  ;;  %v6042_v42 = vpop.eup %4526  ;;  %v6107_v52 = vpop.f32.mrf.mxu1 }
 0x9b6   : > { %v2785_v48 = vpop.xlane.xlu0 %2784 }
 0x9b7   : > { %4538 = vpow2.f32 %v2830_v38  ;;  %v2808_v57 = vsub.f32 %v5985_v6, %v2785_v48  ;;  %v6109_v12 = vpop.f32.mrf.mxu1 }
 0x9b8   : > { %v6047_v53 = vpop.eup %4528 }
 0x9b9   : > { %2848 = vadd.xlane.f32.xlu0 %v6042_v42  ;;  %v6050_v32 = vpop.eup %4530  ;;  %v2832_v36 = vmul.f32 1.442695, %v2808_v57  ;;  %v6111_v13 = vpop.f32.mrf.mxu1 }
 0x9ba   : > { %v2787_v31 = vpop.xlane.xlu0 %2786 }
 0x9bb   : > { %v2809_v7 = vsub.f32 %v5988_v11, %v2787_v31  ;;  %v6113_v3 = vpop.f32.mrf.mxu1 }
 0x9bd   : > { %v2834_v25 = vmul.f32 1.442695, %v2809_v7  ;;  %2854 = vadd.xlane.f32.xlu0 %v6047_v53  ;;  %v6115_v41 = vpop.f32.mrf.mxu1 }
 0x9be   : > { %v2789_v43 = vpop.xlane.xlu0 %2788 }
 0x9bf   : > { %4540 = vpow2.f32 %v2834_v25  ;;  %v2810_v22 = vsub.f32 %v5991_v45, %v2789_v43  ;;  %v6117_v48 = vpop.f32.mrf.mxu1 }
 0x9c0   : > { %v6054_v1 = vpop.eup %4532  ;;  %4542 = vpow2.f32 %v2844_v19 }
 0x9c1   : > { %v2836_v24 = vmul.f32 1.442695, %v2810_v22  ;;  %2850 = vadd.xlane.f32.xlu0 %v6050_v32  ;;  %2860 = vadd.xlane.f32.xlu1 %v6054_v1  ;;  %v6058_v44 = vpop.eup %4534 }
 0x9c2   : > { %v2791_v11 = vpop.xlane.xlu0 %2790  ;;  %v6061_v61 = vpop.eup %4536 }
 0x9c3   : > { %4544 = vpow2.f32 %v2836_v24  ;;  %v2811_v27 = vsub.f32 %v5994_v46, %v2791_v11 }
 0x9c4   : > { %4546 = vpow2.f32 %v2832_v36  ;;  %v6066_v59 = vpop.eup %4538 }
 0x9c5   : > { %2858 = vadd.xlane.f32.xlu0 %v6061_v61  ;;  %2856 = vadd.xlane.f32.xlu1 %v6058_v44  ;;  %v2838_v45 = vmul.f32 1.442695, %v2811_v27 }
 0x9c6   : > { %v2793_v6 = vpop.xlane.xlu0 %2792 }
 0x9c7   : > { %v2812_v5 = vsub.f32 %v5997_v21, %v2793_v6  ;;  %4548 = vpow2.f32 %v2838_v45  ;;  %v2933_v6 = vpop.permute.xlu1 %2932 }
 0x9c9   : > { %2862 = vadd.xlane.f32.xlu1 %v6066_v59  ;;  %v2840_v9 = vmul.f32 1.442695, %v2812_v5 }
 0x9ca   : > { %v2795_v35 = vpop.xlane.xlu0 %2794 }
 0x9cb   : > { %v2813_v46 = vsub.f32 %v6000_v49, %v2795_v35  ;;  %4550 = vpow2.f32 %v2840_v9 }
 0x9cc   : > { %v6070_v37 = vpop.eup %4540 }
 0x9cd   : > { %v2842_v14 = vmul.f32 1.442695, %v2813_v46  ;;  %2866 = vadd.xlane.f32.xlu0 %v6070_v37  ;;  %v6073_v56 = vpop.eup %4542 }
 0x9ce   : > { %v2799_v55 = vpop.xlane.xlu0 %2798 }
 0x9cf   : > { %4552 = vpow2.f32 %v2842_v14  ;;  %v2815_v21 = vsub.f32 %v6003_v58, %v2799_v55 }
 0x9d0   : > { %v6076_v34 = vpop.eup %4544 }
 0x9d1   : > { %v2846_v15 = vmul.f32 1.442695, %v2815_v21  ;;  %2876 = vadd.xlane.f32.xlu0 %v6073_v56  ;;  %2868 = vadd.xlane.f32.xlu1 %v6076_v34  ;;  %v6080_v49 = vpop.eup %4546 }
 0x9d2   : > { %v2931_v57 = vpop.permute.xlu0 %2930 }
 0x9d3   : > { %4554 = vpow2.f32 %v2846_v15  ;;  %v2929_v15 = vpop.permute.xlu1 %2928 }
 0x9d4   : > { %v6083_v63 = vpop.eup %4548 }
 0x9d5   : > { %2864 = vadd.xlane.f32.xlu1 %v6080_v49 }
 0x9d6   : > { %v2927_v45 = vpop.permute.xlu0 %2926 }
 0x9d8   : > { %v6086_v4 = vpop.eup %4550 }
 0x9d9   : > { %2870 = vadd.xlane.f32.xlu1 %v6083_v63 }
 0x9da   : > { %v2925_v55 = vpop.permute.xlu0 %2924 }
 0x9dc   : > { %v6088_v2 = vpop.eup %4552 }
 0x9dd   : > { %2872 = vadd.xlane.f32.xlu1 %v6086_v4  ;;  %2874 = vadd.xlane.f32.xlu0 %v6088_v2 }
 0x9e0   : > { %v6092_v58 = vpop.eup %4554 }
 0x9e1   : > { %2878 = vadd.xlane.f32.xlu1 %v6092_v58 }
 0x9f3   : > { %2920 = vrot.lane.b32.xlu0 %v5156_v62, %s4781_s12  ;;  %v6119_v62 = vpop.f32.mrf.mxu1  ;;  %s4700_s12 = scalar_lea.vmem %s4699_s9, 2048 }
 0x9f4   : > { %p4702_p2 = scmp.lt.s32.totalorder %s4700_s12, %s4694_s29 }
 0x9f5   : > { %v6121_v38 = vpop.f32.mrf.mxu1 }
 0x9f6   : > { %p4703_p3 = por %p4702_p2, %p4701_p1 }
 0x9f7   : > { %v6123_v51 = vpop.f32.mrf.mxu1 }
 0x9f8   : > { %6340 = vst [vmem:[#allocation19_spill] sm:$0xff] %v6123_v51  ;;  %p4704_p9 = pnand %p4703_p3, %p4697_p10 }
 0x9f9   : > { %v6125_v31 = vpop.f32.mrf.mxu1 }
 0x9fa   : > { %6341 = vst [vmem:[#allocation20_spill] sm:$0xff] %v6125_v31 }
 0x9fb   : > { %v6127_v7 = vpop.f32.mrf.mxu1 }
 0x9fc   : > { %6342 = vst [vmem:[#allocation21_spill] sm:$0xff] %v6127_v7 }
 0xa2a   : > { %v4054_v25 = vpop.f32.mrf.mxu1 }
 0xa2c   : > { %v2349_v19 = vpop.f32.mrf.mxu1 }
 0xa2e   : > { %v4055_v43 = vpop.f32.mrf.mxu1 }
 0xa2f   : > { %v2413_v11 = vpack.c.bf16 %v4055_v43, %v4054_v25 }
 0xa30   : > { %v2352_v22 = vpop.f32.mrf.mxu1 }
 0xa31   : > { %v2412_v24 = vpack.c.bf16 %v2352_v22, %v2349_v19 }
 0xa32   : > { %v4058_v36 = vpop.f32.mrf.mxu1 }
 0xa33   : > { %4072 = vmatprep.mubr.msk.bf16.mxu1 %vm768_vm0, %v2412_v24 }
 0xa34   : > { %v2365_v27 = vpop.f32.mrf.mxu1  ;;  %4073 = vmatmul.mubr.msk.bf16.vlgmr.msra.gmra.mxu1 %vm768_vm0, %v2413_v11  ;;  %v2923_v11 = vpop.permute.xlu1 %2922 }
 0xa35   : > { %4121 = vmatpush3.bf16.msra.mxu1 %v6024_v17 }
 0xa36   : > { %4122 = vmatprep.subr.bf16.mxu1 %v2933_v6  ;;  %v4059_v5 = vpop.f32.mrf.mxu1 }
 0xa37   : > { %v2415_v46 = vpack.c.bf16 %v4059_v5, %v4058_v36 }
 0xa38   : > { %v2368_v9 = vpop.f32.mrf.mxu1 }
 0xa39   : > { %v2414_v35 = vpack.c.bf16 %v2368_v9, %v2365_v27  ;;  %4123 = vmatpush3.bf16.msra.mxu1 %v2933_v6 }
 0xa3a   : > { %4124 = vmatprep.subr.bf16.mxu1 %v2931_v57  ;;  %v4062_v14 = vpop.f32.mrf.mxu1 }
 0xa3b   : > { %4076 = vmatprep.mubr.msk.bf16.mxu1 %vm768_vm0, %v2414_v35 }
 0xa3c   : > { %v2381_v21 = vpop.f32.mrf.mxu1  ;;  %4077 = vmatmul.mubr.msk.bf16.gmra.mxu1 %vm768_vm0, %v2415_v46 }
 0xa3d   : > { %4125 = vmatpush3.bf16.msra.mxu1 %v2931_v57 }
 0xa3e   : > { %4126 = vmatprep.subr.bf16.mxu1 %v2929_v15  ;;  %v4063_v25 = vpop.f32.mrf.mxu1  ;;  %v2853_v17 = vpop.xlane.xlu0 %2852 }
 0xa3f   : > { %v2417_v22 = vpack.c.bf16 %v4063_v25, %v4062_v14 }
 0xa40   : > { %v2384_v19 = vpop.f32.mrf.mxu1 }
 0xa41   : > { %v2416_v43 = vpack.c.bf16 %v2384_v19, %v2381_v21  ;;  %4127 = vmatpush3.bf16.msra.mxu1 %v2929_v15 }
 0xa42   : > { %4128 = vmatprep.subr.bf16.mxu1 %v2927_v45  ;;  %v2849_v24 = vpop.xlane.xlu0 %2848 }
 0xa43   : > { %4080 = vmatprep.mubr.msk.bf16.mxu1 %vm768_vm0, %v2416_v43 }
 0xa44   : > { %4081 = vmatmul.mubr.msk.bf16.gmra.mxu1 %vm768_vm0, %v2417_v22 }
 0xa45   : > { %4129 = vmatpush3.bf16.msra.mxu1 %v2927_v45 }
 0xa46   : > { %4130 = vmatprep.subr.bf16.mxu1 %v2925_v55  ;;  %v2855_v36 = vpop.xlane.xlu0 %2854 }
 0xa49   : > { %4131 = vmatpush3.bf16.msra.mxu1 %v2925_v55 }
 0xa4a   : > { %4132 = vmatprep.subr.bf16.mxu1 %v2923_v11  ;;  %v2861_v57 = vpop.xlane.xlu1 %2860  ;;  %v2851_v27 = vpop.xlane.xlu0 %2850 }
 0xa4b   : > { %4556 = vrcp.f32 %v2851_v27 }
 0xa4c   : > { %4558 = vrcp.f32 %v2849_v24 }
 0xa4d   : > { %4133 = vmatpush3.bf16.msra.mxu1 %v2923_v11  ;;  %4560 = vrcp.f32 %v2855_v36 }
 0xa4e   : > { %v2857_v6 = vpop.xlane.xlu1 %2856  ;;  %v2859_v5 = vpop.xlane.xlu0 %2858 }
 0xa4f   : > { %4562 = vrcp.f32 %v2857_v6 }
 0xa50   : > { %4564 = vrcp.f32 %v2859_v5 }
 0xa51   : > { %4566 = vrcp.f32 %v2853_v17 }
 0xa52   : > { %v2863_v35 = vpop.xlane.xlu1 %2862 }
 0xa53   : > { %4568 = vrcp.f32 %v2863_v35 }
 0xa56   : > { %v2867_v9 = vpop.xlane.xlu0 %2866 }
 0xa58   : > { %v4557_v25 = vpop.eup %4556 }
 0xa59   : > { %v4559_v22 = vpop.eup %4558  ;;  %v2897_v24 = vmul.f32 %v4557_v25, %v6050_v32 }
 0xa5a   : > { %v2869_v46 = vpop.xlane.xlu1 %2868  ;;  %v2877_v14 = vpop.xlane.xlu0 %2876  ;;  %v2896_v6 = vmul.f32 %v4559_v22, %v6042_v42 }
 0xa5b   : > { %v4561_v17 = vpop.eup %4560 }
 0xa5c   : > { %v4563_v7 = vpop.eup %4562  ;;  %v2912_v51 = vpack.c.bf16 %v2897_v24, %v2896_v6  ;;  %v2899_v32 = vmul.f32 %v4561_v17, %v6047_v53 }
 0xa5e   : > { %v2865_v21 = vpop.xlane.xlu1 %2864 }
 0xa5f   : > { %4570 = vrcp.f32 %v2865_v21 }
 0xa60   : > { %4572 = vrcp.f32 %v2861_v57  ;;  %v2900_v57 = vmul.f32 %v4563_v7, %v6058_v44 }
 0xa61   : > { %4574 = vrcp.f32 %v2867_v9 }
 0xa62   : > { %v2871_v43 = vpop.xlane.xlu1 %2870 }
 0xa63   : > { %4576 = vrcp.f32 %v2871_v43 }
 0xa66   : > { %v2875_v45 = vpop.xlane.xlu0 %2874  ;;  %v2873_v31 = vpop.xlane.xlu1 %2872 }
 0xa67   : > { %4578 = vrcp.f32 %v2873_v31 }
 0xa68   : > { %4580 = vrcp.f32 %v2875_v45 }
 0xa69   : > { %v4066_v55 = vpop.f32.mrf.mxu1  ;;  %4582 = vrcp.f32 %v2869_v46 }
 0xa6a   : > { %v2921_v15 = vpop.permute.xlu0 %2920  ;;  %v2879_v25 = vpop.xlane.xlu1 %2878 }
 0xa6b   : > { %v2397_v19 = vpop.f32.mrf.mxu1  ;;  %4134 = vmatprep.subr.bf16.mxu1 %v2921_v15  ;;  %4584 = vrcp.f32 %v2879_v25 }
 0xa6c   : > { %4135 = vmatpush3.bf16.msra.mxu1 %v2921_v15  ;;  %v4565_v15 = vpop.eup %4564  ;;  %4586 = vrcp.f32 %v2877_v14 }
 0xa6d   : > { %v4067_v11 = vpop.f32.mrf.mxu1  ;;  %v4567_v35 = vpop.eup %4566  ;;  %v2901_v42 = vmul.f32 %v4565_v15, %v6061_v61 }
 0xa6e   : > { %v2419_v5 = vpack.c.bf16 %v4067_v11, %v4066_v55  ;;  %v2898_v9 = vmul.f32 %v4567_v35, %v6039_v16  ;;  %v4569_v55 = vpop.eup %4568  ;;  %v1883_v35 = vadd.f32 %v6099_v23, %v5798_v0  ;;  %v1899_v23 = vadd.f32 %v6107_v52, %v5806_v47 }
 0xa6f   : > { %v2400_v36 = vpop.f32.mrf.mxu1  ;;  %v4571_v22 = vpop.eup %4570  ;;  %v2903_v53 = vmul.f32 %v4569_v55, %v6066_v59  ;;  %v1915_v52 = vadd.f32 %v6115_v41, %v5814_v50 }
 0xa70   : > { %v2418_v27 = vpack.c.bf16 %v2400_v36, %v2397_v19  ;;  %v2913_v21 = vpack.c.bf16 %v2899_v32, %v2898_v9  ;;  %v2914_v19 = vpack.c.bf16 %v2901_v42, %v2900_v57  ;;  %v4573_v11 = vpop.eup %4572  ;;  %v2904_v31 = vmul.f32 %v4571_v22, %v6080_v49 }
 0xa71   : > { %v2902_v44 = vmul.f32 %v4573_v11, %v6054_v1  ;;  %v1886_v9 = vadd.f32 %v6103_v28, %v5802_v54  ;;  %v1902_v28 = vadd.f32 %v6111_v13, %v5810_v8  ;;  %v1918_v13 = vadd.f32 %v6119_v62, %v5818_v18  ;;  %v6348_v62 = vld [vmem:[#allocation18_spill] sm:$0xff] }
 0xa72   : > { %4084 = vmatprep.mubr.msk.bf16.mxu1 %vm768_vm0, %v2418_v27 }
 0xa73   : > { %4085 = vmatmul.mubr.msk.bf16.gmra.mxu1 %vm768_vm0, %v2419_v5  ;;  %v2915_v7 = vpack.c.bf16 %v2903_v53, %v2902_v44  ;;  %v6343_v44 = vld [vmem:[#allocation15_spill] sm:$0xff] }
 0xa74   : > { %4136 = vmatprep.mubr.bf16.mxu1 %v2912_v51  ;;  %v4575_v51 = vpop.eup %4574  ;;  %v1939_v50 = vadd.f32 %v6121_v38, %v6343_v44 }
 0xa75   : > { %v2905_v61 = vmul.f32 %v4575_v51, %v6070_v37  ;;  %v4577_v16 = vpop.eup %4576  ;;  %v4330_v37 = vld [vmem:[#allocation8 + $0x38] sm:$0xff]  }
 0xa76   : > { %v4579_v46 = vpop.eup %4578  ;;  %v2907_v36 = vmul.f32 %v4577_v16, %v6083_v63  ;;  %4152 = vmatprep.subr.bf16.mxu1 %v4330_v37  ;;  %v6345_v16 = vld [vmem:[#allocation19_spill] sm:$0xff] }
 0xa77   : > { %v2916_v45 = vpack.c.bf16 %v2905_v61, %v2904_v31  ;;  %v4581_v43 = vpop.eup %4580  ;;  %v2908_v27 = vmul.f32 %v4579_v46, %v6086_v4  ;;  %v4331_v4 = vld [vmem:[#allocation8 + $0x30] sm:$0xff]   ;;  %v6344_v61 = vld [vmem:[#allocation16_spill] sm:$0xff] }
 0xa78   : > { %v4583_v24 = vpop.eup %4582  ;;  %v2909_v59 = vmul.f32 %v4581_v43, %v6088_v2 }
 0xa79   : > { %v2906_v49 = vmul.f32 %v4583_v24, %v6076_v34  ;;  %v4585_v1 = vpop.eup %4584  ;;  %v1891_v34 = vadd.f32 %v6095_v30, %v5796_v60  ;;  %v1907_v60 = vadd.f32 %v6105_v29, %v5804_v33  ;;  %v1923_v29 = vadd.f32 %v6113_v3, %v5812_v20 }
 0xa7a   : > { %v2918_v6 = vpack.c.bf16 %v2909_v59, %v2908_v27  ;;  %v4587_v17 = vpop.eup %4586  ;;  %v2911_v5 = vmul.f32 %v4585_v1, %v6092_v58  ;;  %v1894_v58 = vadd.f32 %v6101_v26, %v5800_v40  ;;  %v1910_v26 = vadd.f32 %v6109_v12, %v5808_v10 }
 0xa7b   : > { %4137 = vmatmul.mubr.bf16.vlgmr.msra.gmra.mxu1 %v2913_v21  ;;  %v2917_v14 = vpack.c.bf16 %v2907_v36, %v2906_v49  ;;  %v2910_v15 = vmul.f32 %v4587_v17, %v6073_v56  ;;  %v1926_v12 = vadd.f32 %v6117_v48, %v5816_v39  ;;  %v6346_v48 = vld [vmem:[#allocation17_spill] sm:$0xff] }
 0xa7c   : > { %4140 = vmatprep.mubr.bf16.mxu1 %v2914_v19  ;;  %4153 = vmatpush3.bf16.msra.mxu1 %v4330_v37  ;;  %v6349_v36 = vld [vmem:[#allocation21_spill] sm:$0xff] }
 0xa7d   : > { %v2919_v63 = vpack.c.bf16 %v2911_v5, %v2910_v15  ;;  %4154 = vmatprep.subr.bf16.mxu1 %v4331_v4  ;;  %v1934_v27 = vadd.f32 %v6349_v36, %v6348_v62 }
 0xa80   : > { %4155 = vmatpush3.bf16.msra.mxu1 %v4331_v4 }
 0xa83   : > { %4141 = vmatmul.mubr.bf16.gmra.mxu1 %v2915_v7  ;;  %v1931_v7 = vadd.f32 %v6345_v16, %v6344_v61 }
 0xa84   : > { %4144 = vmatprep.mubr.bf16.mxu1 %v2916_v45  ;;  %v6347_v45 = vld [vmem:[#allocation20_spill] sm:$0xff] }
 0xa85   : > { %v1942_v43 = vadd.f32 %v6347_v45, %v6346_v48 }
 0xa8b   : > { %4145 = vmatmul.mubr.bf16.gmra.mxu1 %v2917_v14 }
 0xa8c   : > { %4148 = vmatprep.mubr.bf16.mxu1 %v2918_v6 }
 0xa93   : > { %4149 = vmatmul.mubr.bf16.gmra.mxu1 %v2919_v63 }
 0xaf4   : > { %v4074_v2 = vpop.f32.mrf.mxu1 }
 0xaf5   : > { %v6158_v32 = vadd.f32 %v4074_v2, %v1891_v34 }
 0xaf6   : > { %v2495_v57 = vpop.f32.mrf.mxu1 }
 0xaf7   : > { %v6162_v42 = vadd.f32 %v2495_v57, %v1883_v35 }
 0xaf8   : > { %v4075_v56 = vpop.f32.mrf.mxu1 }
 0xaf9   : > { %v6166_v21 = vadd.f32 %v4075_v56, %v1894_v58 }
 0xafa   : > { %v2498_v55 = vpop.f32.mrf.mxu1 }
 0xafb   : > { %v6170_v30 = vadd.f32 %v2498_v55, %v1886_v9 }
 0xafc   : > { %v4078_v0 = vpop.f32.mrf.mxu1 }
 0xafd   : > { %v6174_v25 = vadd.f32 %v4078_v0, %v1907_v60 }
 0xafe   : > { %v2511_v40 = vpop.f32.mrf.mxu1 }
 0xaff   : > { %v6178_v19 = vadd.f32 %v2511_v40, %v1899_v23 }
 0xb00   : > { %v4079_v54 = vpop.f32.mrf.mxu1 }
 0xb01   : > { %v6182_v22 = vadd.f32 %v4079_v54, %v1910_v26 }
 0xb02   : > { %v2514_v33 = vpop.f32.mrf.mxu1 }
 0xb03   : > { %v6186_v11 = vadd.f32 %v2514_v33, %v1902_v28 }
 0xb04   : > { %v4082_v47 = vpop.f32.mrf.mxu1 }
 0xb05   : > { %v6190_v51 = vadd.f32 %v4082_v47, %v1923_v29 }
 0xb06   : > { %v2527_v10 = vpop.f32.mrf.mxu1 }
 0xb07   : > { %v6194_v53 = vadd.f32 %v2527_v10, %v1915_v52  ;;  %v3533_v52 = vld [vmem:[%s6313_s5] ss:$0 sm:$0xff] }
 0xb08   : > { %v4083_v8 = vpop.f32.mrf.mxu1 }
 0xb09   : > { %v6198_v31 = vadd.f32 %v4083_v8, %v1926_v12 }
 0xb0a   : > { %v2530_v20 = vpop.f32.mrf.mxu1 }
 0xb0b   : > { %v6200_v3 = vadd.f32 %v2530_v20, %v1918_v13 }
 0xb33   : > { %v4086_v41 = vpop.f32.mrf.mxu1 }
 0xb34   : > { %v6206_v46 = vadd.f32 %v4086_v41, %v1939_v50 }
 0xb35   : > { %v2543_v39 = vpop.f32.mrf.mxu1 }
 0xb36   : > { %v6210_v24 = vadd.f32 %v2543_v39, %v1931_v7 }
 0xb37   : > { %v4087_v18 = vpop.f32.mrf.mxu1 }
 0xb38   : > { %v6214_v59 = vadd.f32 %v4087_v18, %v1942_v43 }
 0xb39   : > { %v2546_v49 = vpop.f32.mrf.mxu1 }
 0xb3a   : > { %v6216_v38 = vadd.f32 %v2546_v49, %v1934_v27 }
 0xb3b   : > { %v4138_v14 = vpop.f32.mrf.mxu1 }
 0xb3d   : > { %v2978_v1 = vpop.f32.mrf.mxu1 }
 0xb3f   : > { %v4139_v6 = vpop.f32.mrf.mxu1 }
 0xb40   : > { %v3042_v5 = vpack.c.bf16 %v4139_v6, %v4138_v14 }
 0xb41   : > { %v2981_v37 = vpop.f32.mrf.mxu1 }
 0xb42   : > { %v3041_v17 = vpack.c.bf16 %v2981_v37, %v2978_v1 }
 0xb43   : > { %v4142_v15 = vpop.f32.mrf.mxu1 }
 0xb44   : > { %4156 = vmatprep.mubr.msk.bf16.mxu1 %vm768_vm0, %v3041_v17 }
 0xb45   : > { %v2994_v63 = vpop.f32.mrf.mxu1  ;;  %4157 = vmatmul.mubr.msk.bf16.vlgmr.msra.gmra.mxu1 %vm768_vm0, %v3042_v5 }
 0xb47   : > { %v4143_v4 = vpop.f32.mrf.mxu1 }
 0xb48   : > { %v3044_v35 = vpack.c.bf16 %v4143_v4, %v4142_v15 }
 0xb49   : > { %v2997_v34 = vpop.f32.mrf.mxu1 }
 0xb4a   : > { %v3043_v2 = vpack.c.bf16 %v2997_v34, %v2994_v63 }
 0xb4b   : > { %v4146_v57 = vpop.f32.mrf.mxu1 }
 0xb4c   : > { %4160 = vmatprep.mubr.msk.bf16.mxu1 %vm768_vm0, %v3043_v2 }
 0xb4d   : > { %v3010_v58 = vpop.f32.mrf.mxu1  ;;  %4161 = vmatmul.mubr.msk.bf16.gmra.mxu1 %vm768_vm0, %v3044_v35 }
 0xb4f   : > { %v4147_v56 = vpop.f32.mrf.mxu1 }
 0xb50   : > { %v3046_v60 = vpack.c.bf16 %v4147_v56, %v4146_v57 }
 0xb51   : > { %v3013_v9 = vpop.f32.mrf.mxu1 }
 0xb52   : > { %v3045_v55 = vpack.c.bf16 %v3013_v9, %v3010_v58 }
 0xb53   : > { %v4150_v0 = vpop.f32.mrf.mxu1 }
 0xb54   : > { %4164 = vmatprep.mubr.msk.bf16.mxu1 %vm768_vm0, %v3045_v55 }
 0xb55   : > { %v3026_v23 = vpop.f32.mrf.mxu1  ;;  %4165 = vmatmul.mubr.msk.bf16.gmra.mxu1 %vm768_vm0, %v3046_v60 }
 0xb57   : > { %v4151_v40 = vpop.f32.mrf.mxu1 }
 0xb58   : > { %v3048_v28 = vpack.c.bf16 %v4151_v40, %v4150_v0 }
 0xb59   : > { %v3029_v26 = vpop.f32.mrf.mxu1 }
 0xb5a   : > { %v3047_v54 = vpack.c.bf16 %v3029_v26, %v3026_v23 }
 0xb5c   : > { %4168 = vmatprep.mubr.msk.bf16.mxu1 %vm768_vm0, %v3047_v54 }
 0xb5d   : > { %4169 = vmatmul.mubr.msk.bf16.gmra.mxu1 %vm768_vm0, %v3048_v28 }
 0xc05   : > { %v4158_v33 = vpop.f32.mrf.mxu1 }
 0xc06   : > { %v3189_v47 = vadd.f32 %v4158_v33, %v6158_v32 }
 0xc07   : > { %v3124_v29 = vpop.f32.mrf.mxu1 }
 0xc08   : > { %v3187_v12 = vadd.f32 %v3124_v29, %v6162_v42  ;;  %v3212_v20 = vadd.f32 %v3533_v52, %v3189_v47 }
 0xc09   : > { %v4159_v10 = vpop.f32.mrf.mxu1 }
 0xc0a   : > { %v3190_v8 = vadd.f32 %v4159_v10, %v6166_v21  ;;  %v3210_v61 = vadd.f32 %v3533_v52, %v3187_v12 }
 0xc0b   : > { %v3127_v13 = vpop.f32.mrf.mxu1 }
 0xc0c   : > { %v3213_v44 = vadd.f32 %v3533_v52, %v3190_v8  ;;  %v3188_v50 = vadd.f32 %v3127_v13, %v6170_v30 }
 0xc0d   : > { %v4162_v41 = vpop.f32.mrf.mxu1 }
 0xc0e   : > { %v3581_v16 = vpack.c.bf16 %v3213_v44, %v3212_v20  ;;  %v3211_v7 = vadd.f32 %v3533_v52, %v3188_v50  ;;  %v3193_v39 = vadd.f32 %v4162_v41, %v6174_v25 }
 0xc0f   : > { %v3140_v32 = vpop.f32.mrf.mxu1 }
 0xc10   : > { %3613 = vst [vmem:[%s6234_s20 + $0x8] sm:$0xff] %v3581_v16   ;;  %v3576_v42 = vpack.c.bf16 %v3211_v7, %v3210_v61  ;;  %v3191_v48 = vadd.f32 %v3140_v32, %v6178_v19  ;;  %v3216_v43 = vadd.f32 %v3533_v52, %v3193_v39 }
 0xc11   : > { %v4163_v21 = vpop.f32.mrf.mxu1 }
 0xc12   : > { %3577 = vst [vmem:[%s6234_s20] sm:$0xff] %v3576_v42   ;;  %v3194_v30 = vadd.f32 %v4163_v21, %v6182_v22  ;;  %v3214_v27 = vadd.f32 %v3533_v52, %v3191_v48 }
 0xc13   : > { %v3143_v45 = vpop.f32.mrf.mxu1 }
 0xc14   : > { %v3217_v18 = vadd.f32 %v3533_v52, %v3194_v30  ;;  %v3192_v62 = vadd.f32 %v3143_v45, %v6186_v11 }
 0xc15   : > { %v4166_v36 = vpop.f32.mrf.mxu1 }
 0xc16   : > { %v3591_v49 = vpack.c.bf16 %v3217_v18, %v3216_v43  ;;  %v3215_v14 = vadd.f32 %v3533_v52, %v3192_v62  ;;  %v3197_v6 = vadd.f32 %v4166_v36, %v6190_v51 }
 0xc17   : > { %v3156_v1 = vpop.f32.mrf.mxu1 }
 0xc18   : > { %3615 = vst [vmem:[%s6234_s20 + $0x18] sm:$0xff] %v3591_v49   ;;  %v3586_v25 = vpack.c.bf16 %v3215_v14, %v3214_v27  ;;  %v3195_v19 = vadd.f32 %v3156_v1, %v6194_v53  ;;  %v3220_v5 = vadd.f32 %v3533_v52, %v3197_v6 }
 0xc19   : > { %v4167_v37 = vpop.f32.mrf.mxu1 }
 0xc1a   : > { %3614 = vst [vmem:[%s6234_s20 + $0x10] sm:$0xff] %v3586_v25   ;;  %v3198_v22 = vadd.f32 %v4167_v37, %v6198_v31  ;;  %v3218_v4 = vadd.f32 %v3533_v52, %v3195_v19 }
 0xc1b   : > { %v3159_v17 = vpop.f32.mrf.mxu1 }
 0xc1c   : > { %v3221_v11 = vadd.f32 %v3533_v52, %v3198_v22  ;;  %v3196_v15 = vadd.f32 %v3159_v17, %v6200_v3 }
 0xc1d   : > { %v4170_v63 = vpop.f32.mrf.mxu1 }
 0xc1e   : > { %v3601_v34 = vpack.c.bf16 %v3221_v11, %v3220_v5  ;;  %v3219_v2 = vadd.f32 %v3533_v52, %v3196_v15  ;;  %v3201_v57 = vadd.f32 %v4170_v63, %v6206_v46 }
 0xc1f   : > { %v3172_v35 = vpop.f32.mrf.mxu1 }
 0xc20   : > { %3617 = vst [vmem:[%s6234_s20 + $0x28] sm:$0xff] %v3601_v34   ;;  %v3596_v51 = vpack.c.bf16 %v3219_v2, %v3218_v4  ;;  %v3199_v31 = vadd.f32 %v3172_v35, %v6210_v24  ;;  %v3224_v56 = vadd.f32 %v3533_v52, %v3201_v57 }
 0xc21   : > { %v4171_v53 = vpop.f32.mrf.mxu1 }
 0xc22   : > { %3616 = vst [vmem:[%s6234_s20 + $0x20] sm:$0xff] %v3596_v51   ;;  %v3202_v3 = vadd.f32 %v4171_v53, %v6214_v59  ;;  %v3222_v60 = vadd.f32 %v3533_v52, %v3199_v31 }
 0xc23   : > { %v3175_v58 = vpop.f32.mrf.mxu1 }
 0xc24   : > { %v3225_v9 = vadd.f32 %v3533_v52, %v3202_v3  ;;  %v3200_v55 = vadd.f32 %v3175_v58, %v6216_v38 }
 0xc26   : > { %v3611_v0 = vpack.c.bf16 %v3225_v9, %v3224_v56  ;;  %v3223_v23 = vadd.f32 %v3533_v52, %v3200_v55 }
 0xc28   : > { %3619 = vst [vmem:[%s6234_s20 + $0x38] sm:$0xff] %v3611_v0   ;;  %v3606_v46 = vpack.c.bf16 %v3223_v23, %v3222_v60 }
 0xc2a   : > { %3618 = vst [vmem:[%s6234_s20 + $0x30] sm:$0xff] %v3606_v46  }
 0xc2b   : > { %4707 = shalt.err (!%p4704_p9)
}
 0xc2c   : > { %s4708_s14 = scalar_lea.hbm %s6259_s7, 1024  ;;  %s4712_s20 = scalar_lea.hbm %s6314_s6, 2048 }
 0xc2d   : > { %p4709_p7 = scmp.ne.s32.totalorder %s6259_s7, %s4708_s14  ;;  %p4713_p6 = scmp.lt.s32.totalorder %s6259_s7, %s6314_s6 }
 0xc2e   : > { %p4714_p11 = scmp.lt.s32.totalorder %s4712_s20, %s4708_s14 }
 0xc2f   : > { %p4710_p4 = pnand %p4709_p7, %p6350_p0 }
 0xc30   : > { %p4715_p13 = por %p4714_p11, %p4713_p6 }
 0xc31   : > { %p4711_p8 = pneg %p4710_p4 }
 0xc33   : > { %p4716_p12 = pnand %p4715_p13, %p4711_p8 }
 0xc35   : > { %4719 = shalt.err (!%p4716_p12)
}
 0xc36   : > { %s4783_s26 = smov 4  }
 0xc37   : > { %4218 = dma.vmem_to_hbm [thread:$0]  (%p6350_p0), %s6262_s30, 1024, %s6259_s7, %s3307_s27, %s4780_s11, %s4780_s11, %s4783_s26  }
 0xc38 PF: > { %s3335_s29 = sand.u32 1, %s4754_s21   ;;  %p6351_p5 = scmp.ne.s32.totalorder %s6322_s28, 0 }
 0xc39   : > { %p6352_p10 = scmp.ge.s32.totalorder %s4766_s24, 2  ;;  %s3336_s25 = scalar_lea.sflag [#allocation4], %s3335_s29 }
 0xc3b   : > { %p4235_p1 = pnand %p6352_p10, %p6351_p5 }
 0xc3d   : > { %p4236_p2 = pneg %p4235_p1 }
 0xc3f   : > { %4749 = dma.done.wait (%p4236_p2), %s3336_s25, 1024  }
 0xc40   : > { %4751 = vsyncadd (%p4236_p2), %s3336_s25, 4294966272  ;;  %p21_p3 = scmp.ge.s32.totalorder %s4902_s13, 4   ;;  %s6353_s21 = smov %s4758_s22 }
 0xc41   : > { %s6354_s22 = smov %s4762_s23  ;;  %s6355_s23 = smov %s4912_s16 }
 0xc42   : > { %s6356_s24 = smov %s4902_s13  ;;  %23 = sbr.rel (!%p21_p3) target bundleno = 7 (0x7), region = 107 }
 0xc47   :  { %3341 = vsyncpa [#allocation3], 1 }
 0xc48   :  { %3343 = vsyncpa [#allocation3 + $0x1], 1 }
 0xc49   :  { %3344 = vsyncpa [#allocation6], 1 }
 0xc4a   :  { %3345 = vsyncpa [#allocation9], 1 }
 0xc4b   :  { %3346 = vsyncpa [#allocation4], 1 }
 0xc4c   :  { %3348 = vsyncpa [#allocation4 + $0x1], 1 }

</bundles_post_ra>
